<compile_context>
chip_gen: v7x
topology: tpu7x:2x2x1
jax: 0.10.0
libtpu: 0.0.40
codegen_flags: <defaults>
</compile_context>

<pallas_src>
import jax
import jax.numpy as jnp
from jax import lax
from jax.experimental import pallas as pl
from jax.experimental.pallas import tpu as pltpu

BN_EPS = 1e-5
L2_EPS = 1e-12
_VMEM_LIMIT = 32 * 1024 * 1024     # explicit scoped-VMEM limit (all generations)
_TILE_BUDGET = 24 * 1024 * 1024    # double-buffered working-set budget


def _round_up(x, m):
    return ((x + m - 1) // m) * m


def _mosaic_params(*sems):
    return pltpu.CompilerParams(dimension_semantics=tuple(sems),
                                vmem_limit_bytes=_VMEM_LIMIT)


def _choose_tm(m, per_row_bytes, fixed_bytes, *, cap=512):
    """Largest multiple-of-16 row tile whose double-buffered working set fits
    the VMEM budget, capped so >=2 grid tiles exist when m allows (megacore)."""
    tm = min(cap, _round_up(m, 16))
    if m >= 32:
        tm = min(tm, _round_up((m + 1) // 2, 16))
    while tm > 16 and 2 * (fixed_bytes + tm * per_row_bytes) > _TILE_BUDGET:
        tm = _round_up(tm // 2, 16)
    return tm


# --------------------------------------------------------------------------
# Kernel 1: grouped matmul + bias with fused per-tile BN partial statistics.
#   lhs: (G, Mp, K) bf16   w: (G, K, C) bf16   bias: (1, C) f32
#   y:   (G, Mp, C) bf16   stats: (G, n_tiles, 2, C) f32  [sum, sumsq]
# --------------------------------------------------------------------------
def _matmul_bias_stats_kernel(lhs_ref, w_ref, b_ref, y_ref, stat_ref):
    y = jnp.dot(lhs_ref[0], w_ref[0],
                preferred_element_type=jnp.float32) + b_ref[...]
    y_ref[0] = y.astype(y_ref.dtype)
    s = jnp.sum(y, axis=0, keepdims=True)
    ss = jnp.sum(y * y, axis=0, keepdims=True)
    stat_ref[0, 0] = jnp.concatenate([s, ss], axis=0)     # one (2, C) store


def matmul_bias_stats(lhs, w, bias):
    """lhs: (G, M, K), w: (G, K, C), bias: (C,).

    Returns (y (G, Mp, C) bf16, sum (C,) f32, sumsq (C,) f32); the sums are
    exact over the G*M real rows (zero-pad contribution removed)."""
    G, M, K = lhs.shape
    C = w.shape[-1]
    per_row = K * 2 + C * 2                 # bf16 lhs row + bf16 y row
    fixed = K * C * 2 + 16 * C * 4          # bf16 weight tile + bias/stats
    TM = _choose_tm(M, per_row, fixed)
    Mp = _round_up(M, TM)
    if Mp != M:
        lhs = jnp.pad(lhs, ((0, 0), (0, Mp - M), (0, 0)))
    n_tiles = Mp // TM
    bias_f32 = bias.reshape(1, C).astype(jnp.float32)

    y, stats = pl.pallas_call(
        _matmul_bias_stats_kernel,
        out_shape=(jax.ShapeDtypeStruct((G, Mp, C), jnp.bfloat16),
                   jax.ShapeDtypeStruct((G, n_tiles, 2, C), jnp.float32)),
        grid=(G, n_tiles),
        in_specs=[pl.BlockSpec((1, TM, K), lambda g, i: (g, i, 0)),
                  pl.BlockSpec((1, K, C), lambda g, i: (g, 0, 0)),
                  pl.BlockSpec((1, C), lambda g, i: (0, 0))],
        out_specs=(pl.BlockSpec((1, TM, C), lambda g, i: (g, i, 0)),
                   pl.BlockSpec((1, 1, 2, C), lambda g, i: (g, i, 0, 0))),
        compiler_params=_mosaic_params("parallel", "parallel"),
    )(lhs.astype(jnp.bfloat16), w.astype(jnp.bfloat16), bias_f32)

    # Padded lhs rows are exactly zero, so their f32 y rows equal `bias`;
    # remove their contribution so the batch statistics are exact.
    tot = jnp.sum(stats, axis=(0, 1))                       # (2, C)
    n_pad = G * (Mp - M)
    s = tot[0] - n_pad * bias_f32[0]
    ss = tot[1] - n_pad * bias_f32[0] * bias_f32[0]
    return y, s, ss


# --------------------------------------------------------------------------
# Kernel 1b: plain matmul + bias (no BN stats) -- LSTM input projection.
# --------------------------------------------------------------------------
def _matmul_bias_kernel(lhs_ref, w_ref, b_ref, y_ref):
    y_ref[...] = (jnp.dot(lhs_ref[...], w_ref[...],
                          preferred_element_type=jnp.float32)
                  + b_ref[...]).astype(y_ref.dtype)


def matmul_bias(a, b, bias):
    """(M, K) @ (K, N) + bias, bf16 MXU inputs, f32 output."""
    M, K = a.shape
    N = b.shape[-1]
    per_row = K * 2 + N * 4
    fixed = K * N * 2 + N * 4
    TM = _choose_tm(M, per_row, fixed)
    Mp = _round_up(M, TM)
    if Mp != M:
        a = jnp.pad(a, ((0, Mp - M), (0, 0)))
    out = pl.pallas_call(
        _matmul_bias_kernel,
        out_shape=jax.ShapeDtypeStruct((Mp, N), jnp.float32),
        grid=(Mp // TM,),
        in_specs=[pl.BlockSpec((TM, K), lambda i: (i, 0)),
                  pl.BlockSpec((K, N), lambda i: (0, 0)),
                  pl.BlockSpec((1, N), lambda i: (0, 0))],
        out_specs=pl.BlockSpec((TM, N), lambda i: (i, 0)),
        compiler_params=_mosaic_params("parallel"),
    )(a.astype(jnp.bfloat16), b.astype(jnp.bfloat16),
      bias.reshape(1, N).astype(jnp.float32))
    return out[:M]


# --------------------------------------------------------------------------
# Kernel 2: BN affine + tanh (+ optional fused per-pixel L2 normalize),
# lane-dense (pixels folded into 128-wide lanes when C < 128), tiled over
# rows, megacore-parallel.
# --------------------------------------------------------------------------
def _bn_tanh_kernel(y_ref, scale_ref, shift_ref, o_ref):
    y = y_ref[...].astype(jnp.float32) * scale_ref[...] + shift_ref[...]
    o_ref[...] = jnp.tanh(y)


def _bn_tanh_l2_dense_kernel(y_ref, scale_ref, shift_ref, mask_ref, o_ref):
    # Channels are folded into lanes; the per-pixel (group of C lanes) L2 norm
    # is reduce+broadcast via a block-diagonal (128,128) matmul -> lane-dense.
    y = jnp.tanh(y_ref[...].astype(jnp.float32) * scale_ref[...]
                 + shift_ref[...])
    n2 = jnp.dot(y * y, mask_ref[...], preferred_element_type=jnp.float32)
    o_ref[...] = y * lax.rsqrt(jnp.maximum(n2, L2_EPS * L2_EPS))


def _bn_tanh_l2_narrow_kernel(y_ref, scale_ref, shift_ref, o_ref):
    y = jnp.tanh(y_ref[...].astype(jnp.float32) * scale_ref[...]
                 + shift_ref[...])
    n2 = jnp.sum(y * y, axis=-1, keepdims=True)
    o_ref[...] = y * lax.rsqrt(jnp.maximum(n2, L2_EPS * L2_EPS))


def bn_tanh(y2d, mean, var, gamma, beta, *, l2norm=False):
    """y2d: (M, C) pre-BN activations (bf16 ok). Normalize with the supplied
    batch statistics, BN affine, tanh, optionally per-row (pixel) L2 norm."""
    M, C = y2d.shape
    var = jnp.maximum(var, 0.0)            # guard E[x^2]-E[x]^2 cancellation
    inv = lax.rsqrt(var + BN_EPS)
    scale = (gamma * inv).astype(jnp.float32)
    shift = (beta - mean * gamma * inv).astype(jnp.float32)

    fold = (C < 128) and (128 % C == 0) and ((M * C) % 128 == 0)
    if fold:
        W = 128
        rows = (M * C) // W
        y2 = y2d.reshape(rows, W)          # row-major fold: lane l has ch l%C
        scale_w = jnp.tile(scale, W // C).reshape(1, W)
        shift_w = jnp.tile(shift, W // C).reshape(1, W)
    else:
        W, rows = C, M
        y2 = y2d
        scale_w = scale.reshape(1, C)
        shift_w = shift.reshape(1, C)

    per_row = W * (2 + 4 + 4)              # bf16 in + f32 out + f32 temps
    TM = _choose_tm(rows, per_row, 3 * W * 4, cap=1024)
    Rp = _round_up(rows, TM)
    if Rp != rows:
        y2 = jnp.pad(y2, ((0, Rp - rows), (0, 0)))
    grid = (Rp // TM,)
    out_shape = jax.ShapeDtypeStruct((Rp, W), jnp.float32)
    row_spec = pl.BlockSpec((TM, W), lambda i: (i, 0))
    vec_spec = pl.BlockSpec((1, W), lambda i: (0, 0))

    if not l2norm:
        out = pl.pallas_call(
            _bn_tanh_kernel, out_shape=out_shape, grid=grid,
            in_specs=[row_spec, vec_spec, vec_spec], out_specs=row_spec,
            compiler_params=_mosaic_params("parallel"),
        )(y2, scale_w, shift_w)
    elif fold:
        lane = jnp.arange(W) // C
        mask = (lane[:, None] == lane[None, :]).astype(jnp.float32)
        out = pl.pallas_call(
            _bn_tanh_l2_dense_kernel, out_shape=out_shape, grid=grid,
            in_specs=[row_spec, vec_spec, vec_spec,
                      pl.BlockSpec((W, W), lambda i: (0, 0))],
            out_specs=row_spec,
            compiler_params=_mosaic_params("parallel"),
        )(y2, scale_w, shift_w, mask)
    else:
        out = pl.pallas_call(
            _bn_tanh_l2_narrow_kernel, out_shape=out_shape, grid=grid,
            in_specs=[row_spec, vec_spec, vec_spec], out_specs=row_spec,
            compiler_params=_mosaic_params("parallel"),
        )(y2, scale_w, shift_w)

    out = out[:rows]
    if fold:
        out = out.reshape(M, C)
    return out


# --------------------------------------------------------------------------
# Conv2d(k=4, s=2, p=1) + BatchNorm2d(batch stats) + tanh  (CnnCell)
# --------------------------------------------------------------------------
def cnn_cell(x_nhwc, p):
    N, H, W, Cin = x_nhwc.shape
    Cout = p["w"].shape[0]
    OH, OW = H // 2, W // 2
    M = N * OH * OW

    xb = x_nhwc.astype(jnp.bfloat16)
    xp = jnp.pad(xb, ((0, 0), (1, 1), (1, 1), (0, 0)))
    cols = [xp[:, kh:kh + 2 * OH:2, kw:kw + 2 * OW:2, :]
            for kh in range(4) for kw in range(4)]
    patches = jnp.concatenate(cols, axis=-1).reshape(1, M, 16 * Cin)
    w_flat = jnp.transpose(p["w"], (2, 3, 1, 0)).reshape(1, 16 * Cin, Cout)

    y, s, ss = matmul_bias_stats(patches, w_flat, p["b"])
    cnt = float(M)
    mean = s / cnt
    var = ss / cnt - mean * mean                      # biased (train-mode BN)

    G, Mp, _ = y.shape
    out = bn_tanh(y.reshape(G * Mp, Cout), mean, var, p["gamma"], p["beta"])
    return out[:M].reshape(N, OH, OW, Cout)


# --------------------------------------------------------------------------
# ConvTranspose2d(k=4, s=2, p=1) + BatchNorm2d(batch stats) + tanh (DeCnnCell)
# via the polyphase (sub-pixel) decomposition.
# --------------------------------------------------------------------------
_DECONV_OFF = {0: (0, 1), 1: (1, 2)}   # output parity -> padded-input offsets
_DECONV_TAP = {0: (3, 1), 1: (2, 0)}   # output parity -> kernel tap indices


def decnn_cell(x_nhwc, p, *, l2norm=False):
    N, H, W, Cin = x_nhwc.shape
    Cout = p["w"].shape[1]
    M = N * H * W

    xb = x_nhwc.astype(jnp.bfloat16)
    xp = jnp.pad(xb, ((0, 0), (1, 1), (1, 1), (0, 0)))

    lhs_groups, w_groups = [], []
    for py in (0, 1):
        for px in (0, 1):
            roff, coff = _DECONV_OFF[py], _DECONV_OFF[px]
            rtap, ctap = _DECONV_TAP[py], _DECONV_TAP[px]
            cols = [xp[:, roff[sh]:roff[sh] + H, coff[sw]:coff[sw] + W, :]
                    for sh in (0, 1) for sw in (0, 1)]
            lhs_groups.append(
                jnp.concatenate(cols, axis=-1).reshape(M, 4 * Cin))
            taps = [p["w"][:, :, rtap[sh], ctap[sw]]          # (Cin, Cout)
                    for sh in (0, 1) for sw in (0, 1)]
            w_groups.append(jnp.concatenate(taps, axis=0))    # (4*Cin, Cout)

    lhs = jnp.stack(lhs_groups, axis=0)                       # (4, M, 4*Cin)
    wg = jnp.stack(w_groups, axis=0)                          # (4, 4*Cin, Cout)

    y, s, ss = matmul_bias_stats(lhs, wg, p["b"])
    cnt = float(4 * M)
    mean = s / cnt
    var = ss / cnt - mean * mean

    G, Mp, _ = y.shape
    out = bn_tanh(y.reshape(G * Mp, Cout), mean, var, p["gamma"], p["beta"],
                  l2norm=l2norm)
    out = out.reshape(2, 2, Mp, Cout)[:, :, :M]               # (py, px, M, C)
    out = out.reshape(2, 2, N, H, W, Cout)
    out = jnp.transpose(out, (2, 3, 0, 4, 1, 5))              # (N,H,py,W,px,C)
    return out.reshape(N, 2 * H, 2 * W, Cout)


# --------------------------------------------------------------------------
# LSTM: input projection hoisted (one big MXU matmul, no BN-stats path); the
# whole recurrence runs as ONE kernel invocation (lax.fori_loop over T), with
# xg and W_hh resident in VMEM and only h @ W_hh + gate elementwise per step.
# --------------------------------------------------------------------------
def _lstm_kernel(xg_ref, whh_ref, o_ref):
    T, B, _ = xg_ref.shape
    Hn = whh_ref.shape[0]

    def step(t, carry):
        h, c = carry
        gates = xg_ref[t] + jnp.dot(h.astype(jnp.bfloat16), whh_ref[...],
                                    preferred_element_type=jnp.float32)
        i = jax.nn.sigmoid(gates[:, 0 * Hn:1 * Hn])
        f = jax.nn.sigmoid(gates[:, 1 * Hn:2 * Hn])
        g = jnp.tanh(gates[:, 2 * Hn:3 * Hn])
        o = jax.nn.sigmoid(gates[:, 3 * Hn:4 * Hn])
        c = f * c + i * g
        h = o * jnp.tanh(c)
        o_ref[t] = h
        return (h, c)

    zero = jnp.zeros((B, Hn), jnp.float32)
    lax.fori_loop(0, T, step, (zero, zero))


def lstm_layer(x_tbv, w_ih, w_hh, b_ih, b_hh):
    """Single-layer LSTM (PyTorch gate order i,f,g,o), zero initial state."""
    T, B, V = x_tbv.shape
    Hn = w_hh.shape[1]
    bias = (b_ih + b_hh).astype(jnp.float32)
    # Hoisted input projection: one (T*B, V) x (V, 4H) MXU matmul (no stats).
    xg = matmul_bias(x_tbv.reshape(T * B, V), jnp.transpose(w_ih), bias)
    xg = xg.reshape(T, B, 4 * Hn)
    Bp = _round_up(B, 8)                       # sublane-aligned recurrence
    if Bp != B:
        xg = jnp.pad(xg, ((0, 0), (0, Bp - B), (0, 0)))
    whh_t = jnp.transpose(w_hh).astype(jnp.bfloat16)          # (H, 4H)
    # TODO(synk): for large T*B*4H, double-buffer xg with pltpu.emit_pipeline
    # instead of holding the whole sequence in VMEM.
    out = pl.pallas_call(
        _lstm_kernel,
        out_shape=jax.ShapeDtypeStruct((T, Bp, Hn), jnp.float32),
        grid=(1,),
        in_specs=[pl.BlockSpec((T, Bp, 4 * Hn), lambda i: (0, 0, 0)),
                  pl.BlockSpec((Hn, 4 * Hn), lambda i: (0, 0))],
        out_specs=pl.BlockSpec((T, Bp, Hn), lambda i: (0, 0, 0)),
        compiler_params=_mosaic_params("arbitrary"),
    )(xg, whh_t)
    return out[:, :B]


# --------------------------------------------------------------------------
# FramePredictor forward
# --------------------------------------------------------------------------
def frame_predictor_forward(x_btchw, params):
    b, t, c, h, w = x_btchw.shape
    x = x_btchw.reshape(b * t, c, h, w)
    x = jnp.transpose(x, (0, 2, 3, 1))                        # NCHW -> NHWC

    # Encoder
    for p in params["encoder"]:
        x = cnn_cell(x, p)

    bt, fh, fw, fc = x.shape
    # flatten in PyTorch's NCHW order: (b*t, fc, fh, fw) -> (b, t, fc*fh*fw)
    z = jnp.transpose(x, (0, 3, 1, 2)).reshape(b, t, fc * fh * fw)

    # ResidualNetwork: stacked LSTM layers, then x = x + rnn_out
    z_tbv = jnp.transpose(z, (1, 0, 2))                       # (T, B, V)
    rnn = z_tbv
    for p in params["lstm"]:
        rnn = lstm_layer(rnn, p["w_ih"], p["w_hh"], p["b_ih"], p["b_hh"])
    z_tbv = z_tbv + rnn
    z = jnp.transpose(z_tbv, (1, 0, 2))                       # (B, T, V)

    x = z.reshape(b * t, fc, fh, fw)
    x = jnp.transpose(x, (0, 2, 3, 1))                        # NHWC

    # Decoder (batch-stat BN couples all T frames, so all must be decoded).
    # The per-pixel L2 normalize is fused into the last layer's epilogue.
    n_dec = len(params["decoder"])
    for li, p in enumerate(params["decoder"]):
        x = decnn_cell(x, p, l2norm=(li == n_dec - 1))

    x = x.reshape(b, t, h, w, c)[:, -1]                       # (b, h, w, c)
    return jnp.transpose(x, (0, 3, 1, 2))                     # (b, c, h, w)


# --------------------------------------------------------------------------
# Deterministic parameter init (synthetic; shapes follow the module __init__)
# --------------------------------------------------------------------------
def init_params(key, channels, input_size, num_lstms):
    params = {"encoder": [], "decoder": [], "lstm": []}

    def nrm(k, shape, scale):
        return scale * jax.random.normal(k, shape, jnp.float32)

    n_enc = len(channels) - 1
    keys = jax.random.split(key, 4 * n_enc + 4 * num_lstms + 4 * n_enc)
    ki = 0

    # Encoder: Conv2d(channels[i], channels[i+1], 4, 2, 1) + BN
    for i in range(n_enc):
        cin, cout = channels[i], channels[i + 1]
        params["encoder"].append({
            "w": nrm(keys[ki], (cout, cin, 4, 4), 0.1),
            "b": nrm(keys[ki + 1], (cout,), 0.05),
            "gamma": jnp.ones((cout,), jnp.float32),
            "beta": jnp.zeros((cout,), jnp.float32),
        })
        ki += 2

    # Decoder: ConvTranspose2d(channels[-i], channels[-(i+1)], 4, 2, 1) + BN
    for i in range(1, len(channels)):
        cin, cout = channels[-i], channels[-(i + 1)]
        params["decoder"].append({
            "w": nrm(keys[ki], (cin, cout, 4, 4), 0.1),
            "b": nrm(keys[ki + 1], (cout,), 0.05),
            "gamma": jnp.ones((cout,), jnp.float32),
            "beta": jnp.zeros((cout,), jnp.float32),
        })
        ki += 2

    # Residual LSTM network: num_lstms cells, 1 layer each, hidden = vector_size
    V = int(channels[-1] * (input_size / 2 ** (len(channels) - 1)) ** 2)
    for _ in range(num_lstms):
        params["lstm"].append({
            "w_ih": nrm(keys[ki], (4 * V, V), 0.05),
            "w_hh": nrm(keys[ki + 1], (4 * V, V), 0.05),
            "b_ih": nrm(keys[ki + 2], (4 * V,), 0.02),
            "b_hh": nrm(keys[ki + 3], (4 * V,), 0.02),
        })
        ki += 4
    return params


if __name__ == "__main__":
    channels = (4, 8, 16)
    b, t, input_size = 2, 4, 16    # spatial 16 -> 8 -> 4; vector_size = 16*4*4 = 256
    num_lstms = 2

    key = jax.random.PRNGKey(0)
    kx, kp = jax.random.split(key)
    x = jax.random.normal(kx, (b, t, channels[0], input_size, input_size),
                          jnp.float32)
    params = init_params(kp, channels, input_size, num_lstms)

    fwd = jax.jit(frame_predictor_forward)
    out = fwd(x, params)
    out = jax.block_until_ready(out)
    assert out.shape == (b, channels[0], input_size, input_size), out.shape
    assert bool(jnp.all(jnp.isfinite(out)))
    print("KERNEL_OK")
</pallas_src>

<mosaic_0001>
module attributes {stable_mosaic.version = 11 : i64} {
  func.func @_matmul_bias_stats_kernel(%arg0: i32, %arg1: i32, %arg2: memref<1x256x64xbf16, #tpu.memory_space<vmem>>, %arg3: memref<1x64x8xbf16, #tpu.memory_space<vmem>>, %arg4: memref<1x8xf32, #tpu.memory_space<vmem>>, %arg5: memref<1x256x8xbf16, #tpu.memory_space<vmem>>, %arg6: memref<1x1x2x8xf32, #tpu.memory_space<vmem>>) attributes {dimension_semantics = [#tpu.dimension_semantics<parallel>, #tpu.dimension_semantics<parallel>], iteration_bounds = array<i64: 1, 2>, scalar_prefetch = 0 : i64, scratch_operands = 0 : i64, tpu.core_type = #tpu.core_type<tc>, window_params = [{transform_indices = @transform_0, window_bounds = array<i64: 1, 256, 64>}, {transform_indices = @transform_1, window_bounds = array<i64: 1, 64, 8>}, {pipeline_mode = #tpu.pipeline_mode<synchronous>, transform_indices = @transform_2, window_bounds = array<i64: 1, 8>}, {transform_indices = @transform_3, window_bounds = array<i64: 1, 256, 8>}, {transform_indices = @transform_4, window_bounds = array<i64: 1, 1, 2, 8>}]} {
    %c0 = arith.constant 0 : index
    %c0_0 = arith.constant 0 : index
    %c0_1 = arith.constant 0 : index
    %0 = vector.load %arg2[%c0, %c0_0, %c0_1] : memref<1x256x64xbf16, #tpu.memory_space<vmem>>, vector<1x256x64xbf16>
    %1 = vector.shape_cast %0 : vector<1x256x64xbf16> to vector<256x64xbf16>
    %c0_2 = arith.constant 0 : index
    %c0_3 = arith.constant 0 : index
    %c0_4 = arith.constant 0 : index
    %2 = vector.load %arg3[%c0_2, %c0_3, %c0_4] : memref<1x64x8xbf16, #tpu.memory_space<vmem>>, vector<1x64x8xbf16>
    %3 = vector.shape_cast %2 : vector<1x64x8xbf16> to vector<64x8xbf16>
    %cst = arith.constant dense<0.000000e+00> : vector<256x8xf32>
    %4 = tpu.matmul %1, %3, %cst {dimension_numbers = #tpu.dot_dimension_numbers<[1], [0], [0], [1], [0, 0, 1, 1], [], []>} : vector<256x64xbf16>, vector<64x8xbf16>, vector<256x8xf32> -> vector<256x8xf32>
    %c0_5 = arith.constant 0 : index
    %c0_6 = arith.constant 0 : index
    %5 = vector.load %arg4[%c0_5, %c0_6] : memref<1x8xf32, #tpu.memory_space<vmem>>, vector<1x8xf32>
    %6 = vector.broadcast %5 : vector<1x8xf32> to vector<256x8xf32>
    %7 = arith.addf %4, %6 : vector<256x8xf32>
    %8 = arith.truncf %7 : vector<256x8xf32> to vector<256x8xbf16>
    %c0_7 = arith.constant 0 : index
    %c0_8 = arith.constant 0 : index
    %c0_9 = arith.constant 0 : index
    %9 = vector.load %arg5[%c0_7, %c0_8, %c0_9] : memref<1x256x8xbf16, #tpu.memory_space<vmem>>, vector<1x256x8xbf16>
    %10 = vector.shape_cast %9 : vector<1x256x8xbf16> to vector<256x8xbf16>
    %11 = vector.shape_cast %8 : vector<256x8xbf16> to vector<1x256x8xbf16>
    tpu.vector_store %arg5[%c0_7, %c0_8, %c0_9], %11 {strides = array<i32>} : memref<1x256x8xbf16, #tpu.memory_space<vmem>>, vector<1x256x8xbf16>,
    %cst_10 = arith.constant dense<0.000000e+00> : vector<8xf32>
    %12 = vector.multi_reduction <add>, %7, %cst_10 [0] : vector<256x8xf32> to vector<8xf32>
    %13 = vector.shape_cast %12 : vector<8xf32> to vector<1x8xf32>
    %14 = arith.mulf %7, %7 : vector<256x8xf32>
    %cst_11 = arith.constant dense<0.000000e+00> : vector<8xf32>
    %15 = vector.multi_reduction <add>, %14, %cst_11 [0] : vector<256x8xf32> to vector<8xf32>
    %16 = vector.shape_cast %15 : vector<8xf32> to vector<1x8xf32>
    %17 = tpu.concatenate %13, %16 in 0 : vector<1x8xf32>, vector<1x8xf32> -> vector<2x8xf32>
    %c0_12 = arith.constant 0 : index
    %c0_13 = arith.constant 0 : index
    %c0_14 = arith.constant 0 : index
    %c0_15 = arith.constant 0 : index
    %18 = vector.load %arg6[%c0_12, %c0_13, %c0_14, %c0_15] : memref<1x1x2x8xf32, #tpu.memory_space<vmem>>, vector<1x1x2x8xf32>
    %19 = vector.shape_cast %18 : vector<1x1x2x8xf32> to vector<2x8xf32>
    %20 = vector.shape_cast %17 : vector<2x8xf32> to vector<1x1x2x8xf32>
    tpu.vector_store %arg6[%c0_12, %c0_13, %c0_14, %c0_15], %20 {strides = array<i32>} : memref<1x1x2x8xf32, #tpu.memory_space<vmem>>, vector<1x1x2x8xf32>,
    return
  }
  func.func @transform_0(%arg0: i32, %arg1: i32) -> (i32, i32, i32) {
    %c0_i32 = arith.constant 0 : i32
    %c0_i32_0 = arith.constant 0 : i32
    return %arg0, %arg1, %c0_i32 : i32, i32, i32
  }
  func.func @transform_1(%arg0: i32, %arg1: i32) -> (i32, i32, i32) {
    %c0_i32 = arith.constant 0 : i32
    %c0_i32_0 = arith.constant 0 : i32
    %c0_i32_1 = arith.constant 0 : i32
    return %arg0, %c0_i32, %c0_i32_0 : i32, i32, i32
  }
  func.func @transform_2(%arg0: i32, %arg1: i32) -> (i32, i32) {
    %c0_i32 = arith.constant 0 : i32
    %c0_i32_0 = arith.constant 0 : i32
    %c0_i32_1 = arith.constant 0 : i32
    return %c0_i32, %c0_i32_0 : i32, i32
  }
  func.func @transform_3(%arg0: i32, %arg1: i32) -> (i32, i32, i32) {
    %c0_i32 = arith.constant 0 : i32
    %c0_i32_0 = arith.constant 0 : i32
    return %arg0, %arg1, %c0_i32 : i32, i32, i32
  }
  func.func @transform_4(%arg0: i32, %arg1: i32) -> (i32, i32, i32, i32) {
    %c0_i32 = arith.constant 0 : i32
    %c0_i32_0 = arith.constant 0 : i32
    %c0_i32_1 = arith.constant 0 : i32
    return %arg0, %arg1, %c0_i32, %c0_i32_0 : i32, i32, i32, i32
  }
}

module attributes {stable_mosaic.version = 11 : i64} {
  func.func @_bn_tanh_kernel(%arg0: i32, %arg1: memref<16x128xbf16, #tpu.memory_space<vmem>>, %arg2: memref<1x128xf32, #tpu.memory_space<vmem>>, %arg3: memref<1x128xf32, #tpu.memory_space<vmem>>, %arg4: memref<16x128xf32, #tpu.memory_space<vmem>>) attributes {dimension_semantics = [#tpu.dimension_semantics<parallel>], iteration_bounds = array<i64: 2>, scalar_prefetch = 0 : i64, scratch_operands = 0 : i64, tpu.core_type = #tpu.core_type<tc>, window_params = [{transform_indices = @transform_0, window_bounds = array<i64: 16, 128>}, {pipeline_mode = #tpu.pipeline_mode<synchronous>, transform_indices = @transform_1, window_bounds = array<i64: 1, 128>}, {pipeline_mode = #tpu.pipeline_mode<synchronous>, transform_indices = @transform_2, window_bounds = array<i64: 1, 128>}, {transform_indices = @transform_3, window_bounds = array<i64: 16, 128>}]} {
    %c0 = arith.constant 0 : index
    %c0_0 = arith.constant 0 : index
    %0 = vector.load %arg1[%c0, %c0_0] : memref<16x128xbf16, #tpu.memory_space<vmem>>, vector<16x128xbf16>
    %1 = arith.extf %0 : vector<16x128xbf16> to vector<16x128xf32>
    %c0_1 = arith.constant 0 : index
    %c0_2 = arith.constant 0 : index
    %2 = vector.load %arg2[%c0_1, %c0_2] : memref<1x128xf32, #tpu.memory_space<vmem>>, vector<1x128xf32>
    %3 = vector.broadcast %2 : vector<1x128xf32> to vector<16x128xf32>
    %4 = arith.mulf %1, %3 : vector<16x128xf32>
    %c0_3 = arith.constant 0 : index
    %c0_4 = arith.constant 0 : index
    %5 = vector.load %arg3[%c0_3, %c0_4] : memref<1x128xf32, #tpu.memory_space<vmem>>, vector<1x128xf32>
    %6 = vector.broadcast %5 : vector<1x128xf32> to vector<16x128xf32>
    %7 = arith.addf %4, %6 : vector<16x128xf32>
    %8 = math.tanh %7 : vector<16x128xf32>
    %c0_5 = arith.constant 0 : index
    %c0_6 = arith.constant 0 : index
    %9 = vector.load %arg4[%c0_5, %c0_6] : memref<16x128xf32, #tpu.memory_space<vmem>>, vector<16x128xf32>
    tpu.vector_store %arg4[%c0_5, %c0_6], %8 {strides = array<i32>} : memref<16x128xf32, #tpu.memory_space<vmem>>, vector<16x128xf32>,
    return
  }
  func.func @transform_0(%arg0: i32) -> (i32, i32) {
    %c0_i32 = arith.constant 0 : i32
    %c0_i32_0 = arith.constant 0 : i32
    return %arg0, %c0_i32 : i32, i32
  }
  func.func @transform_1(%arg0: i32) -> (i32, i32) {
    %c0_i32 = arith.constant 0 : i32
    %c0_i32_0 = arith.constant 0 : i32
    %c0_i32_1 = arith.constant 0 : i32
    return %c0_i32, %c0_i32_0 : i32, i32
  }
  func.func @transform_2(%arg0: i32) -> (i32, i32) {
    %c0_i32 = arith.constant 0 : i32
    %c0_i32_0 = arith.constant 0 : i32
    %c0_i32_1 = arith.constant 0 : i32
    return %c0_i32, %c0_i32_0 : i32, i32
  }
  func.func @transform_3(%arg0: i32) -> (i32, i32) {
    %c0_i32 = arith.constant 0 : i32
    %c0_i32_0 = arith.constant 0 : i32
    return %arg0, %c0_i32 : i32, i32
  }
}

module attributes {stable_mosaic.version = 11 : i64} {
  func.func @_matmul_bias_stats_kernel(%arg0: i32, %arg1: i32, %arg2: memref<1x64x128xbf16, #tpu.memory_space<vmem>>, %arg3: memref<1x128x16xbf16, #tpu.memory_space<vmem>>, %arg4: memref<1x16xf32, #tpu.memory_space<vmem>>, %arg5: memref<1x64x16xbf16, #tpu.memory_space<vmem>>, %arg6: memref<1x1x2x16xf32, #tpu.memory_space<vmem>>) attributes {dimension_semantics = [#tpu.dimension_semantics<parallel>, #tpu.dimension_semantics<parallel>], iteration_bounds = array<i64: 1, 2>, scalar_prefetch = 0 : i64, scratch_operands = 0 : i64, tpu.core_type = #tpu.core_type<tc>, window_params = [{transform_indices = @transform_0, window_bounds = array<i64: 1, 64, 128>}, {transform_indices = @transform_1, window_bounds = array<i64: 1, 128, 16>}, {pipeline_mode = #tpu.pipeline_mode<synchronous>, transform_indices = @transform_2, window_bounds = array<i64: 1, 16>}, {transform_indices = @transform_3, window_bounds = array<i64: 1, 64, 16>}, {transform_indices = @transform_4, window_bounds = array<i64: 1, 1, 2, 16>}]} {
    %c0 = arith.constant 0 : index
    %c0_0 = arith.constant 0 : index
    %c0_1 = arith.constant 0 : index
    %0 = vector.load %arg2[%c0, %c0_0, %c0_1] : memref<1x64x128xbf16, #tpu.memory_space<vmem>>, vector<1x64x128xbf16>
    %1 = vector.shape_cast %0 : vector<1x64x128xbf16> to vector<64x128xbf16>
    %c0_2 = arith.constant 0 : index
    %c0_3 = arith.constant 0 : index
    %c0_4 = arith.constant 0 : index
    %2 = vector.load %arg3[%c0_2, %c0_3, %c0_4] : memref<1x128x16xbf16, #tpu.memory_space<vmem>>, vector<1x128x16xbf16>
    %3 = vector.shape_cast %2 : vector<1x128x16xbf16> to vector<128x16xbf16>
    %cst = arith.constant dense<0.000000e+00> : vector<64x16xf32>
    %4 = tpu.matmul %1, %3, %cst {dimension_numbers = #tpu.dot_dimension_numbers<[1], [0], [0], [1], [0, 0, 1, 1], [], []>} : vector<64x128xbf16>, vector<128x16xbf16>, vector<64x16xf32> -> vector<64x16xf32>
    %c0_5 = arith.constant 0 : index
    %c0_6 = arith.constant 0 : index
    %5 = vector.load %arg4[%c0_5, %c0_6] : memref<1x16xf32, #tpu.memory_space<vmem>>, vector<1x16xf32>
    %6 = vector.broadcast %5 : vector<1x16xf32> to vector<64x16xf32>
    %7 = arith.addf %4, %6 : vector<64x16xf32>
    %8 = arith.truncf %7 : vector<64x16xf32> to vector<64x16xbf16>
    %c0_7 = arith.constant 0 : index
    %c0_8 = arith.constant 0 : index
    %c0_9 = arith.constant 0 : index
    %9 = vector.load %arg5[%c0_7, %c0_8, %c0_9] : memref<1x64x16xbf16, #tpu.memory_space<vmem>>, vector<1x64x16xbf16>
    %10 = vector.shape_cast %9 : vector<1x64x16xbf16> to vector<64x16xbf16>
    %11 = vector.shape_cast %8 : vector<64x16xbf16> to vector<1x64x16xbf16>
    tpu.vector_store %arg5[%c0_7, %c0_8, %c0_9], %11 {strides = array<i32>} : memref<1x64x16xbf16, #tpu.memory_space<vmem>>, vector<1x64x16xbf16>,
    %cst_10 = arith.constant dense<0.000000e+00> : vector<16xf32>
    %12 = vector.multi_reduction <add>, %7, %cst_10 [0] : vector<64x16xf32> to vector<16xf32>
    %13 = vector.shape_cast %12 : vector<16xf32> to vector<1x16xf32>
    %14 = arith.mulf %7, %7 : vector<64x16xf32>
    %cst_11 = arith.constant dense<0.000000e+00> : vector<16xf32>
    %15 = vector.multi_reduction <add>, %14, %cst_11 [0] : vector<64x16xf32> to vector<16xf32>
    %16 = vector.shape_cast %15 : vector<16xf32> to vector<1x16xf32>
    %17 = tpu.concatenate %13, %16 in 0 : vector<1x16xf32>, vector<1x16xf32> -> vector<2x16xf32>
    %c0_12 = arith.constant 0 : index
    %c0_13 = arith.constant 0 : index
    %c0_14 = arith.constant 0 : index
    %c0_15 = arith.constant 0 : index
    %18 = vector.load %arg6[%c0_12, %c0_13, %c0_14, %c0_15] : memref<1x1x2x16xf32, #tpu.memory_space<vmem>>, vector<1x1x2x16xf32>
    %19 = vector.shape_cast %18 : vector<1x1x2x16xf32> to vector<2x16xf32>
    %20 = vector.shape_cast %17 : vector<2x16xf32> to vector<1x1x2x16xf32>
    tpu.vector_store %arg6[%c0_12, %c0_13, %c0_14, %c0_15], %20 {strides = array<i32>} : memref<1x1x2x16xf32, #tpu.memory_space<vmem>>, vector<1x1x2x16xf32>,
    return
  }
  func.func @transform_0(%arg0: i32, %arg1: i32) -> (i32, i32, i32) {
    %c0_i32 = arith.constant 0 : i32
    %c0_i32_0 = arith.constant 0 : i32
    return %arg0, %arg1, %c0_i32 : i32, i32, i32
  }
  func.func @transform_1(%arg0: i32, %arg1: i32) -> (i32, i32, i32) {
    %c0_i32 = arith.constant 0 : i32
    %c0_i32_0 = arith.constant 0 : i32
    %c0_i32_1 = arith.constant 0 : i32
    return %arg0, %c0_i32, %c0_i32_0 : i32, i32, i32
  }
  func.func @transform_2(%arg0: i32, %arg1: i32) -> (i32, i32) {
    %c0_i32 = arith.constant 0 : i32
    %c0_i32_0 = arith.constant 0 : i32
    %c0_i32_1 = arith.constant 0 : i32
    return %c0_i32, %c0_i32_0 : i32, i32
  }
  func.func @transform_3(%arg0: i32, %arg1: i32) -> (i32, i32, i32) {
    %c0_i32 = arith.constant 0 : i32
    %c0_i32_0 = arith.constant 0 : i32
    return %arg0, %arg1, %c0_i32 : i32, i32, i32
  }
  func.func @transform_4(%arg0: i32, %arg1: i32) -> (i32, i32, i32, i32) {
    %c0_i32 = arith.constant 0 : i32
    %c0_i32_0 = arith.constant 0 : i32
    %c0_i32_1 = arith.constant 0 : i32
    return %arg0, %arg1, %c0_i32, %c0_i32_0 : i32, i32, i32, i32
  }
}

module attributes {stable_mosaic.version = 11 : i64} {
  func.func @_bn_tanh_kernel(%arg0: i32, %arg1: memref<16x128xbf16, #tpu.memory_space<vmem>>, %arg2: memref<1x128xf32, #tpu.memory_space<vmem>>, %arg3: memref<1x128xf32, #tpu.memory_space<vmem>>, %arg4: memref<16x128xf32, #tpu.memory_space<vmem>>) attributes {dimension_semantics = [#tpu.dimension_semantics<parallel>], iteration_bounds = array<i64: 1>, scalar_prefetch = 0 : i64, scratch_operands = 0 : i64, tpu.core_type = #tpu.core_type<tc>, window_params = [{transform_indices = @transform_0, window_bounds = array<i64: 16, 128>}, {pipeline_mode = #tpu.pipeline_mode<synchronous>, transform_indices = @transform_1, window_bounds = array<i64: 1, 128>}, {pipeline_mode = #tpu.pipeline_mode<synchronous>, transform_indices = @transform_2, window_bounds = array<i64: 1, 128>}, {transform_indices = @transform_3, window_bounds = array<i64: 16, 128>}]} {
    %c0 = arith.constant 0 : index
    %c0_0 = arith.constant 0 : index
    %0 = vector.load %arg1[%c0, %c0_0] : memref<16x128xbf16, #tpu.memory_space<vmem>>, vector<16x128xbf16>
    %1 = arith.extf %0 : vector<16x128xbf16> to vector<16x128xf32>
    %c0_1 = arith.constant 0 : index
    %c0_2 = arith.constant 0 : index
    %2 = vector.load %arg2[%c0_1, %c0_2] : memref<1x128xf32, #tpu.memory_space<vmem>>, vector<1x128xf32>
    %3 = vector.broadcast %2 : vector<1x128xf32> to vector<16x128xf32>
    %4 = arith.mulf %1, %3 : vector<16x128xf32>
    %c0_3 = arith.constant 0 : index
    %c0_4 = arith.constant 0 : index
    %5 = vector.load %arg3[%c0_3, %c0_4] : memref<1x128xf32, #tpu.memory_space<vmem>>, vector<1x128xf32>
    %6 = vector.broadcast %5 : vector<1x128xf32> to vector<16x128xf32>
    %7 = arith.addf %4, %6 : vector<16x128xf32>
    %8 = math.tanh %7 : vector<16x128xf32>
    %c0_5 = arith.constant 0 : index
    %c0_6 = arith.constant 0 : index
    %9 = vector.load %arg4[%c0_5, %c0_6] : memref<16x128xf32, #tpu.memory_space<vmem>>, vector<16x128xf32>
    tpu.vector_store %arg4[%c0_5, %c0_6], %8 {strides = array<i32>} : memref<16x128xf32, #tpu.memory_space<vmem>>, vector<16x128xf32>,
    return
  }
  func.func @transform_0(%arg0: i32) -> (i32, i32) {
    %c0_i32 = arith.constant 0 : i32
    %c0_i32_0 = arith.constant 0 : i32
    return %arg0, %c0_i32 : i32, i32
  }
  func.func @transform_1(%arg0: i32) -> (i32, i32) {
    %c0_i32 = arith.constant 0 : i32
    %c0_i32_0 = arith.constant 0 : i32
    %c0_i32_1 = arith.constant 0 : i32
    return %c0_i32, %c0_i32_0 : i32, i32
  }
  func.func @transform_2(%arg0: i32) -> (i32, i32) {
    %c0_i32 = arith.constant 0 : i32
    %c0_i32_0 = arith.constant 0 : i32
    %c0_i32_1 = arith.constant 0 : i32
    return %c0_i32, %c0_i32_0 : i32, i32
  }
  func.func @transform_3(%arg0: i32) -> (i32, i32) {
    %c0_i32 = arith.constant 0 : i32
    %c0_i32_0 = arith.constant 0 : i32
    return %arg0, %c0_i32 : i32, i32
  }
}

module attributes {stable_mosaic.version = 11 : i64} {
  func.func @_matmul_bias_kernel(%arg0: i32, %arg1: memref<16x256xbf16, #tpu.memory_space<vmem>>, %arg2: memref<256x1024xbf16, #tpu.memory_space<vmem>>, %arg3: memref<1x1024xf32, #tpu.memory_space<vmem>>, %arg4: memref<16x1024xf32, #tpu.memory_space<vmem>>) attributes {dimension_semantics = [#tpu.dimension_semantics<parallel>], iteration_bounds = array<i64: 1>, scalar_prefetch = 0 : i64, scratch_operands = 0 : i64, tpu.core_type = #tpu.core_type<tc>, window_params = [{transform_indices = @transform_0, window_bounds = array<i64: 16, 256>}, {pipeline_mode = #tpu.pipeline_mode<synchronous>, transform_indices = @transform_1, window_bounds = array<i64: 256, 1024>}, {pipeline_mode = #tpu.pipeline_mode<synchronous>, transform_indices = @transform_2, window_bounds = array<i64: 1, 1024>}, {transform_indices = @transform_3, window_bounds = array<i64: 16, 1024>}]} {
    %c0 = arith.constant 0 : index
    %c0_0 = arith.constant 0 : index
    %0 = vector.load %arg1[%c0, %c0_0] : memref<16x256xbf16, #tpu.memory_space<vmem>>, vector<16x256xbf16>
    %c0_1 = arith.constant 0 : index
    %c0_2 = arith.constant 0 : index
    %1 = vector.load %arg2[%c0_1, %c0_2] : memref<256x1024xbf16, #tpu.memory_space<vmem>>, vector<256x1024xbf16>
    %cst = arith.constant dense<0.000000e+00> : vector<16x1024xf32>
    %2 = tpu.matmul %0, %1, %cst {dimension_numbers = #tpu.dot_dimension_numbers<[1], [0], [0], [1], [0, 0, 1, 1], [], []>} : vector<16x256xbf16>, vector<256x1024xbf16>, vector<16x1024xf32> -> vector<16x1024xf32>
    %c0_3 = arith.constant 0 : index
    %c0_4 = arith.constant 0 : index
    %3 = vector.load %arg3[%c0_3, %c0_4] : memref<1x1024xf32, #tpu.memory_space<vmem>>, vector<1x1024xf32>
    %4 = vector.broadcast %3 : vector<1x1024xf32> to vector<16x1024xf32>
    %5 = arith.addf %2, %4 : vector<16x1024xf32>
    %c0_5 = arith.constant 0 : index
    %c0_6 = arith.constant 0 : index
    %6 = vector.load %arg4[%c0_5, %c0_6] : memref<16x1024xf32, #tpu.memory_space<vmem>>, vector<16x1024xf32>
    tpu.vector_store %arg4[%c0_5, %c0_6], %5 {strides = array<i32>} : memref<16x1024xf32, #tpu.memory_space<vmem>>, vector<16x1024xf32>,
    return
  }
  func.func @transform_0(%arg0: i32) -> (i32, i32) {
    %c0_i32 = arith.constant 0 : i32
    %c0_i32_0 = arith.constant 0 : i32
    return %arg0, %c0_i32 : i32, i32
  }
  func.func @transform_1(%arg0: i32) -> (i32, i32) {
    %c0_i32 = arith.constant 0 : i32
    %c0_i32_0 = arith.constant 0 : i32
    %c0_i32_1 = arith.constant 0 : i32
    return %c0_i32, %c0_i32_0 : i32, i32
  }
  func.func @transform_2(%arg0: i32) -> (i32, i32) {
    %c0_i32 = arith.constant 0 : i32
    %c0_i32_0 = arith.constant 0 : i32
    %c0_i32_1 = arith.constant 0 : i32
    return %c0_i32, %c0_i32_0 : i32, i32
  }
  func.func @transform_3(%arg0: i32) -> (i32, i32) {
    %c0_i32 = arith.constant 0 : i32
    %c0_i32_0 = arith.constant 0 : i32
    return %arg0, %c0_i32 : i32, i32
  }
}

module attributes {stable_mosaic.version = 11 : i64} {
  func.func @_lstm_kernel(%arg0: i32, %arg1: memref<4x8x1024xf32, #tpu.memory_space<vmem>>, %arg2: memref<256x1024xbf16, #tpu.memory_space<vmem>>, %arg3: memref<4x8x256xf32, #tpu.memory_space<vmem>>) attributes {dimension_semantics = [#tpu.dimension_semantics<arbitrary>], iteration_bounds = array<i64: 1>, scalar_prefetch = 0 : i64, scratch_operands = 0 : i64, tpu.core_type = #tpu.core_type<tc>, window_params = [{pipeline_mode = #tpu.pipeline_mode<synchronous>, transform_indices = @transform_0, window_bounds = array<i64: 4, 8, 1024>}, {pipeline_mode = #tpu.pipeline_mode<synchronous>, transform_indices = @transform_1, window_bounds = array<i64: 256, 1024>}, {pipeline_mode = #tpu.pipeline_mode<synchronous>, transform_indices = @transform_2, window_bounds = array<i64: 4, 8, 256>}]} {
    %cst = arith.constant 0.000000e+00 : f32
    %0 = vector.broadcast %cst : f32 to vector<8x256xf32>
    %c0_i32 = arith.constant 0 : i32
    %c4_i32 = arith.constant 4 : i32
    %1 = arith.addi %c0_i32, %c4_i32 : i32
    %c1_i32 = arith.constant 1 : i32
    %2:2 = scf.for %arg4 = %c0_i32 to %1 step %c1_i32 iter_args(%arg5 = %0, %arg6 = %0) -> (vector<8x256xf32>, vector<8x256xf32>)  : i32 {
      %3 = arith.index_cast %arg4 : i32 to index
      %c0 = arith.constant 0 : index
      %c0_1 = arith.constant 0 : index
      %4 = vector.load %arg1[%3, %c0, %c0_1] : memref<4x8x1024xf32, #tpu.memory_space<vmem>>, vector<1x8x1024xf32>
      %5 = vector.shape_cast %4 : vector<1x8x1024xf32> to vector<8x1024xf32>
      %6 = arith.truncf %arg5 : vector<8x256xf32> to vector<8x256xbf16>
      %c0_2 = arith.constant 0 : index
      %c0_3 = arith.constant 0 : index
      %7 = vector.load %arg2[%c0_2, %c0_3] : memref<256x1024xbf16, #tpu.memory_space<vmem>>, vector<256x1024xbf16>
      %cst_4 = arith.constant dense<0.000000e+00> : vector<8x1024xf32>
      %8 = tpu.matmul %6, %7, %cst_4 {dimension_numbers = #tpu.dot_dimension_numbers<[1], [0], [0], [1], [0, 0, 1, 1], [], []>} : vector<8x256xbf16>, vector<256x1024xbf16>, vector<8x1024xf32> -> vector<8x1024xf32>
      %9 = arith.addf %5, %8 : vector<8x1024xf32>
      %10 = vector.extract_strided_slice %9 {offsets = [0, 0], sizes = [8, 256], strides = [1, 1]} : vector<8x1024xf32> to vector<8x256xf32>
      %11 = arith.negf %10 : vector<8x256xf32>
      %12 = math.exp %11 : vector<8x256xf32>
      %cst_5 = arith.constant 1.000000e+00 : f32
      %13 = vector.broadcast %cst_5 : f32 to vector<8x256xf32>
      %14 = arith.addf %13, %12 : vector<8x256xf32>
      %15 = arith.divf %13, %14 : vector<8x256xf32>
      %16 = vector.extract_strided_slice %9 {offsets = [0, 256], sizes = [8, 256], strides = [1, 1]} : vector<8x1024xf32> to vector<8x256xf32>
      %17 = arith.negf %16 : vector<8x256xf32>
      %18 = math.exp %17 : vector<8x256xf32>
      %cst_6 = arith.constant 1.000000e+00 : f32
      %19 = vector.broadcast %cst_6 : f32 to vector<8x256xf32>
      %20 = arith.addf %19, %18 : vector<8x256xf32>
      %21 = arith.divf %19, %20 : vector<8x256xf32>
      %22 = vector.extract_strided_slice %9 {offsets = [0, 512], sizes = [8, 256], strides = [1, 1]} : vector<8x1024xf32> to vector<8x256xf32>
      %23 = math.tanh %22 : vector<8x256xf32>
      %24 = vector.extract_strided_slice %9 {offsets = [0, 768], sizes = [8, 256], strides = [1, 1]} : vector<8x1024xf32> to vector<8x256xf32>
      %25 = arith.negf %24 : vector<8x256xf32>
      %26 = math.exp %25 : vector<8x256xf32>
      %cst_7 = arith.constant 1.000000e+00 : f32
      %27 = vector.broadcast %cst_7 : f32 to vector<8x256xf32>
      %28 = arith.addf %27, %26 : vector<8x256xf32>
      %29 = arith.divf %27, %28 : vector<8x256xf32>
      %30 = arith.mulf %21, %arg6 : vector<8x256xf32>
      %31 = arith.mulf %15, %23 : vector<8x256xf32>
      %32 = arith.addf %30, %31 : vector<8x256xf32>
      %33 = math.tanh %32 : vector<8x256xf32>
      %34 = arith.mulf %29, %33 : vector<8x256xf32>
      %35 = arith.index_cast %arg4 : i32 to index
      %c0_8 = arith.constant 0 : index
      %c0_9 = arith.constant 0 : index
      %36 = vector.load %arg3[%35, %c0_8, %c0_9] : memref<4x8x256xf32, #tpu.memory_space<vmem>>, vector<1x8x256xf32>
      %37 = vector.shape_cast %36 : vector<1x8x256xf32> to vector<8x256xf32>
      %38 = vector.shape_cast %34 : vector<8x256xf32> to vector<1x8x256xf32>
      tpu.vector_store %arg3[%35, %c0_8, %c0_9], %38 {strides = array<i32>} : memref<4x8x256xf32, #tpu.memory_space<vmem>>, vector<1x8x256xf32>,
      scf.yield %34, %32 : vector<8x256xf32>, vector<8x256xf32>
    }
    %c4_i32_0 = arith.constant 4 : i32
    return
  }
  func.func @transform_0(%arg0: i32) -> (i32, i32, i32) {
    %c0_i32 = arith.constant 0 : i32
    %c0_i32_0 = arith.constant 0 : i32
    %c0_i32_1 = arith.constant 0 : i32
    %c0_i32_2 = arith.constant 0 : i32
    return %c0_i32, %c0_i32_0, %c0_i32_1 : i32, i32, i32
  }
  func.func @transform_1(%arg0: i32) -> (i32, i32) {
    %c0_i32 = arith.constant 0 : i32
    %c0_i32_0 = arith.constant 0 : i32
    %c0_i32_1 = arith.constant 0 : i32
    return %c0_i32, %c0_i32_0 : i32, i32
  }
  func.func @transform_2(%arg0: i32) -> (i32, i32, i32) {
    %c0_i32 = arith.constant 0 : i32
    %c0_i32_0 = arith.constant 0 : i32
    %c0_i32_1 = arith.constant 0 : i32
    %c0_i32_2 = arith.constant 0 : i32
    return %c0_i32, %c0_i32_0, %c0_i32_1 : i32, i32, i32
  }
}

module attributes {stable_mosaic.version = 11 : i64} {
  func.func @_matmul_bias_stats_kernel(%arg0: i32, %arg1: i32, %arg2: memref<1x64x64xbf16, #tpu.memory_space<vmem>>, %arg3: memref<1x64x8xbf16, #tpu.memory_space<vmem>>, %arg4: memref<1x8xf32, #tpu.memory_space<vmem>>, %arg5: memref<1x64x8xbf16, #tpu.memory_space<vmem>>, %arg6: memref<1x1x2x8xf32, #tpu.memory_space<vmem>>) attributes {dimension_semantics = [#tpu.dimension_semantics<parallel>, #tpu.dimension_semantics<parallel>], iteration_bounds = array<i64: 4, 2>, scalar_prefetch = 0 : i64, scratch_operands = 0 : i64, tpu.core_type = #tpu.core_type<tc>, window_params = [{transform_indices = @transform_0, window_bounds = array<i64: 1, 64, 64>}, {transform_indices = @transform_1, window_bounds = array<i64: 1, 64, 8>}, {pipeline_mode = #tpu.pipeline_mode<synchronous>, transform_indices = @transform_2, window_bounds = array<i64: 1, 8>}, {transform_indices = @transform_3, window_bounds = array<i64: 1, 64, 8>}, {transform_indices = @transform_4, window_bounds = array<i64: 1, 1, 2, 8>}]} {
    %c0 = arith.constant 0 : index
    %c0_0 = arith.constant 0 : index
    %c0_1 = arith.constant 0 : index
    %0 = vector.load %arg2[%c0, %c0_0, %c0_1] : memref<1x64x64xbf16, #tpu.memory_space<vmem>>, vector<1x64x64xbf16>
    %1 = vector.shape_cast %0 : vector<1x64x64xbf16> to vector<64x64xbf16>
    %c0_2 = arith.constant 0 : index
    %c0_3 = arith.constant 0 : index
    %c0_4 = arith.constant 0 : index
    %2 = vector.load %arg3[%c0_2, %c0_3, %c0_4] : memref<1x64x8xbf16, #tpu.memory_space<vmem>>, vector<1x64x8xbf16>
    %3 = vector.shape_cast %2 : vector<1x64x8xbf16> to vector<64x8xbf16>
    %cst = arith.constant dense<0.000000e+00> : vector<64x8xf32>
    %4 = tpu.matmul %1, %3, %cst {dimension_numbers = #tpu.dot_dimension_numbers<[1], [0], [0], [1], [0, 0, 1, 1], [], []>} : vector<64x64xbf16>, vector<64x8xbf16>, vector<64x8xf32> -> vector<64x8xf32>
    %c0_5 = arith.constant 0 : index
    %c0_6 = arith.constant 0 : index
    %5 = vector.load %arg4[%c0_5, %c0_6] : memref<1x8xf32, #tpu.memory_space<vmem>>, vector<1x8xf32>
    %6 = vector.broadcast %5 : vector<1x8xf32> to vector<64x8xf32>
    %7 = arith.addf %4, %6 : vector<64x8xf32>
    %8 = arith.truncf %7 : vector<64x8xf32> to vector<64x8xbf16>
    %c0_7 = arith.constant 0 : index
    %c0_8 = arith.constant 0 : index
    %c0_9 = arith.constant 0 : index
    %9 = vector.load %arg5[%c0_7, %c0_8, %c0_9] : memref<1x64x8xbf16, #tpu.memory_space<vmem>>, vector<1x64x8xbf16>
    %10 = vector.shape_cast %9 : vector<1x64x8xbf16> to vector<64x8xbf16>
    %11 = vector.shape_cast %8 : vector<64x8xbf16> to vector<1x64x8xbf16>
    tpu.vector_store %arg5[%c0_7, %c0_8, %c0_9], %11 {strides = array<i32>} : memref<1x64x8xbf16, #tpu.memory_space<vmem>>, vector<1x64x8xbf16>,
    %cst_10 = arith.constant dense<0.000000e+00> : vector<8xf32>
    %12 = vector.multi_reduction <add>, %7, %cst_10 [0] : vector<64x8xf32> to vector<8xf32>
    %13 = vector.shape_cast %12 : vector<8xf32> to vector<1x8xf32>
    %14 = arith.mulf %7, %7 : vector<64x8xf32>
    %cst_11 = arith.constant dense<0.000000e+00> : vector<8xf32>
    %15 = vector.multi_reduction <add>, %14, %cst_11 [0] : vector<64x8xf32> to vector<8xf32>
    %16 = vector.shape_cast %15 : vector<8xf32> to vector<1x8xf32>
    %17 = tpu.concatenate %13, %16 in 0 : vector<1x8xf32>, vector<1x8xf32> -> vector<2x8xf32>
    %c0_12 = arith.constant 0 : index
    %c0_13 = arith.constant 0 : index
    %c0_14 = arith.constant 0 : index
    %c0_15 = arith.constant 0 : index
    %18 = vector.load %arg6[%c0_12, %c0_13, %c0_14, %c0_15] : memref<1x1x2x8xf32, #tpu.memory_space<vmem>>, vector<1x1x2x8xf32>
    %19 = vector.shape_cast %18 : vector<1x1x2x8xf32> to vector<2x8xf32>
    %20 = vector.shape_cast %17 : vector<2x8xf32> to vector<1x1x2x8xf32>
    tpu.vector_store %arg6[%c0_12, %c0_13, %c0_14, %c0_15], %20 {strides = array<i32>} : memref<1x1x2x8xf32, #tpu.memory_space<vmem>>, vector<1x1x2x8xf32>,
    return
  }
  func.func @transform_0(%arg0: i32, %arg1: i32) -> (i32, i32, i32) {
    %c0_i32 = arith.constant 0 : i32
    %c0_i32_0 = arith.constant 0 : i32
    return %arg0, %arg1, %c0_i32 : i32, i32, i32
  }
  func.func @transform_1(%arg0: i32, %arg1: i32) -> (i32, i32, i32) {
    %c0_i32 = arith.constant 0 : i32
    %c0_i32_0 = arith.constant 0 : i32
    %c0_i32_1 = arith.constant 0 : i32
    return %arg0, %c0_i32, %c0_i32_0 : i32, i32, i32
  }
  func.func @transform_2(%arg0: i32, %arg1: i32) -> (i32, i32) {
    %c0_i32 = arith.constant 0 : i32
    %c0_i32_0 = arith.constant 0 : i32
    %c0_i32_1 = arith.constant 0 : i32
    return %c0_i32, %c0_i32_0 : i32, i32
  }
  func.func @transform_3(%arg0: i32, %arg1: i32) -> (i32, i32, i32) {
    %c0_i32 = arith.constant 0 : i32
    %c0_i32_0 = arith.constant 0 : i32
    return %arg0, %arg1, %c0_i32 : i32, i32, i32
  }
  func.func @transform_4(%arg0: i32, %arg1: i32) -> (i32, i32, i32, i32) {
    %c0_i32 = arith.constant 0 : i32
    %c0_i32_0 = arith.constant 0 : i32
    %c0_i32_1 = arith.constant 0 : i32
    return %arg0, %arg1, %c0_i32, %c0_i32_0 : i32, i32, i32, i32
  }
}

module attributes {stable_mosaic.version = 11 : i64} {
  func.func @_matmul_bias_stats_kernel(%arg0: i32, %arg1: i32, %arg2: memref<1x256x32xbf16, #tpu.memory_space<vmem>>, %arg3: memref<1x32x4xbf16, #tpu.memory_space<vmem>>, %arg4: memref<1x4xf32, #tpu.memory_space<vmem>>, %arg5: memref<1x256x4xbf16, #tpu.memory_space<vmem>>, %arg6: memref<1x1x2x4xf32, #tpu.memory_space<vmem>>) attributes {dimension_semantics = [#tpu.dimension_semantics<parallel>, #tpu.dimension_semantics<parallel>], iteration_bounds = array<i64: 4, 2>, scalar_prefetch = 0 : i64, scratch_operands = 0 : i64, tpu.core_type = #tpu.core_type<tc>, window_params = [{transform_indices = @transform_0, window_bounds = array<i64: 1, 256, 32>}, {transform_indices = @transform_1, window_bounds = array<i64: 1, 32, 4>}, {pipeline_mode = #tpu.pipeline_mode<synchronous>, transform_indices = @transform_2, window_bounds = array<i64: 1, 4>}, {transform_indices = @transform_3, window_bounds = array<i64: 1, 256, 4>}, {transform_indices = @transform_4, window_bounds = array<i64: 1, 1, 2, 4>}]} {
    %c0 = arith.constant 0 : index
    %c0_0 = arith.constant 0 : index
    %c0_1 = arith.constant 0 : index
    %0 = vector.load %arg2[%c0, %c0_0, %c0_1] : memref<1x256x32xbf16, #tpu.memory_space<vmem>>, vector<1x256x32xbf16>
    %1 = vector.shape_cast %0 : vector<1x256x32xbf16> to vector<256x32xbf16>
    %c0_2 = arith.constant 0 : index
    %c0_3 = arith.constant 0 : index
    %c0_4 = arith.constant 0 : index
    %2 = vector.load %arg3[%c0_2, %c0_3, %c0_4] : memref<1x32x4xbf16, #tpu.memory_space<vmem>>, vector<1x32x4xbf16>
    %3 = vector.shape_cast %2 : vector<1x32x4xbf16> to vector<32x4xbf16>
    %cst = arith.constant dense<0.000000e+00> : vector<256x4xf32>
    %4 = tpu.matmul %1, %3, %cst {dimension_numbers = #tpu.dot_dimension_numbers<[1], [0], [0], [1], [0, 0, 1, 1], [], []>} : vector<256x32xbf16>, vector<32x4xbf16>, vector<256x4xf32> -> vector<256x4xf32>
    %c0_5 = arith.constant 0 : index
    %c0_6 = arith.constant 0 : index
    %5 = vector.load %arg4[%c0_5, %c0_6] : memref<1x4xf32, #tpu.memory_space<vmem>>, vector<1x4xf32>
    %6 = vector.broadcast %5 : vector<1x4xf32> to vector<256x4xf32>
    %7 = arith.addf %4, %6 : vector<256x4xf32>
    %8 = arith.truncf %7 : vector<256x4xf32> to vector<256x4xbf16>
    %c0_7 = arith.constant 0 : index
    %c0_8 = arith.constant 0 : index
    %c0_9 = arith.constant 0 : index
    %9 = vector.load %arg5[%c0_7, %c0_8, %c0_9] : memref<1x256x4xbf16, #tpu.memory_space<vmem>>, vector<1x256x4xbf16>
    %10 = vector.shape_cast %9 : vector<1x256x4xbf16> to vector<256x4xbf16>
    %11 = vector.shape_cast %8 : vector<256x4xbf16> to vector<1x256x4xbf16>
    tpu.vector_store %arg5[%c0_7, %c0_8, %c0_9], %11 {strides = array<i32>} : memref<1x256x4xbf16, #tpu.memory_space<vmem>>, vector<1x256x4xbf16>,
    %cst_10 = arith.constant dense<0.000000e+00> : vector<4xf32>
    %12 = vector.multi_reduction <add>, %7, %cst_10 [0] : vector<256x4xf32> to vector<4xf32>
    %13 = vector.shape_cast %12 : vector<4xf32> to vector<1x4xf32>
    %14 = arith.mulf %7, %7 : vector<256x4xf32>
    %cst_11 = arith.constant dense<0.000000e+00> : vector<4xf32>
    %15 = vector.multi_reduction <add>, %14, %cst_11 [0] : vector<256x4xf32> to vector<4xf32>
    %16 = vector.shape_cast %15 : vector<4xf32> to vector<1x4xf32>
    %17 = tpu.concatenate %13, %16 in 0 : vector<1x4xf32>, vector<1x4xf32> -> vector<2x4xf32>
    %c0_12 = arith.constant 0 : index
    %c0_13 = arith.constant 0 : index
    %c0_14 = arith.constant 0 : index
    %c0_15 = arith.constant 0 : index
    %18 = vector.load %arg6[%c0_12, %c0_13, %c0_14, %c0_15] : memref<1x1x2x4xf32, #tpu.memory_space<vmem>>, vector<1x1x2x4xf32>
    %19 = vector.shape_cast %18 : vector<1x1x2x4xf32> to vector<2x4xf32>
    %20 = vector.shape_cast %17 : vector<2x4xf32> to vector<1x1x2x4xf32>
    tpu.vector_store %arg6[%c0_12, %c0_13, %c0_14, %c0_15], %20 {strides = array<i32>} : memref<1x1x2x4xf32, #tpu.memory_space<vmem>>, vector<1x1x2x4xf32>,
    return
  }
  func.func @transform_0(%arg0: i32, %arg1: i32) -> (i32, i32, i32) {
    %c0_i32 = arith.constant 0 : i32
    %c0_i32_0 = arith.constant 0 : i32
    return %arg0, %arg1, %c0_i32 : i32, i32, i32
  }
  func.func @transform_1(%arg0: i32, %arg1: i32) -> (i32, i32, i32) {
    %c0_i32 = arith.constant 0 : i32
    %c0_i32_0 = arith.constant 0 : i32
    %c0_i32_1 = arith.constant 0 : i32
    return %arg0, %c0_i32, %c0_i32_0 : i32, i32, i32
  }
  func.func @transform_2(%arg0: i32, %arg1: i32) -> (i32, i32) {
    %c0_i32 = arith.constant 0 : i32
    %c0_i32_0 = arith.constant 0 : i32
    %c0_i32_1 = arith.constant 0 : i32
    return %c0_i32, %c0_i32_0 : i32, i32
  }
  func.func @transform_3(%arg0: i32, %arg1: i32) -> (i32, i32, i32) {
    %c0_i32 = arith.constant 0 : i32
    %c0_i32_0 = arith.constant 0 : i32
    return %arg0, %arg1, %c0_i32 : i32, i32, i32
  }
  func.func @transform_4(%arg0: i32, %arg1: i32) -> (i32, i32, i32, i32) {
    %c0_i32 = arith.constant 0 : i32
    %c0_i32_0 = arith.constant 0 : i32
    %c0_i32_1 = arith.constant 0 : i32
    return %arg0, %arg1, %c0_i32, %c0_i32_0 : i32, i32, i32, i32
  }
}

module attributes {stable_mosaic.version = 11 : i64} {
  func.func @_bn_tanh_l2_dense_kernel(%arg0: i32, %arg1: memref<32x128xbf16, #tpu.memory_space<vmem>>, %arg2: memref<1x128xf32, #tpu.memory_space<vmem>>, %arg3: memref<1x128xf32, #tpu.memory_space<vmem>>, %arg4: memref<128x128xf32, #tpu.memory_space<vmem>>, %arg5: memref<32x128xf32, #tpu.memory_space<vmem>>) attributes {dimension_semantics = [#tpu.dimension_semantics<parallel>], iteration_bounds = array<i64: 2>, scalar_prefetch = 0 : i64, scratch_operands = 0 : i64, tpu.core_type = #tpu.core_type<tc>, window_params = [{transform_indices = @transform_0, window_bounds = array<i64: 32, 128>}, {pipeline_mode = #tpu.pipeline_mode<synchronous>, transform_indices = @transform_1, window_bounds = array<i64: 1, 128>}, {pipeline_mode = #tpu.pipeline_mode<synchronous>, transform_indices = @transform_2, window_bounds = array<i64: 1, 128>}, {pipeline_mode = #tpu.pipeline_mode<synchronous>, transform_indices = @transform_3, window_bounds = array<i64: 128, 128>}, {transform_indices = @transform_4, window_bounds = array<i64: 32, 128>}]} {
    %c0 = arith.constant 0 : index
    %c0_0 = arith.constant 0 : index
    %0 = vector.load %arg1[%c0, %c0_0] : memref<32x128xbf16, #tpu.memory_space<vmem>>, vector<32x128xbf16>
    %1 = arith.extf %0 : vector<32x128xbf16> to vector<32x128xf32>
    %c0_1 = arith.constant 0 : index
    %c0_2 = arith.constant 0 : index
    %2 = vector.load %arg2[%c0_1, %c0_2] : memref<1x128xf32, #tpu.memory_space<vmem>>, vector<1x128xf32>
    %3 = vector.broadcast %2 : vector<1x128xf32> to vector<32x128xf32>
    %4 = arith.mulf %1, %3 : vector<32x128xf32>
    %c0_3 = arith.constant 0 : index
    %c0_4 = arith.constant 0 : index
    %5 = vector.load %arg3[%c0_3, %c0_4] : memref<1x128xf32, #tpu.memory_space<vmem>>, vector<1x128xf32>
    %6 = vector.broadcast %5 : vector<1x128xf32> to vector<32x128xf32>
    %7 = arith.addf %4, %6 : vector<32x128xf32>
    %8 = math.tanh %7 : vector<32x128xf32>
    %9 = arith.mulf %8, %8 : vector<32x128xf32>
    %c0_5 = arith.constant 0 : index
    %c0_6 = arith.constant 0 : index
    %10 = vector.load %arg4[%c0_5, %c0_6] : memref<128x128xf32, #tpu.memory_space<vmem>>, vector<128x128xf32>
    %cst = arith.constant dense<0.000000e+00> : vector<32x128xf32>
    %11 = tpu.matmul %9, %10, %cst {dimension_numbers = #tpu.dot_dimension_numbers<[1], [0], [0], [1], [0, 0, 1, 1], [], []>} : vector<32x128xf32>, vector<128x128xf32>, vector<32x128xf32> -> vector<32x128xf32>
    %cst_7 = arith.constant 1.000000e-24 : f32
    %12 = vector.broadcast %cst_7 : f32 to vector<32x128xf32>
    %13 = arith.maximumf %11, %12 : vector<32x128xf32>
    %14 = math.rsqrt %13 : vector<32x128xf32>
    %15 = arith.mulf %8, %14 : vector<32x128xf32>
    %c0_8 = arith.constant 0 : index
    %c0_9 = arith.constant 0 : index
    %16 = vector.load %arg5[%c0_8, %c0_9] : memref<32x128xf32, #tpu.memory_space<vmem>>, vector<32x128xf32>
    tpu.vector_store %arg5[%c0_8, %c0_9], %15 {strides = array<i32>} : memref<32x128xf32, #tpu.memory_space<vmem>>, vector<32x128xf32>,
    return
  }
  func.func @transform_0(%arg0: i32) -> (i32, i32) {
    %c0_i32 = arith.constant 0 : i32
    %c0_i32_0 = arith.constant 0 : i32
    return %arg0, %c0_i32 : i32, i32
  }
  func.func @transform_1(%arg0: i32) -> (i32, i32) {
    %c0_i32 = arith.constant 0 : i32
    %c0_i32_0 = arith.constant 0 : i32
    %c0_i32_1 = arith.constant 0 : i32
    return %c0_i32, %c0_i32_0 : i32, i32
  }
  func.func @transform_2(%arg0: i32) -> (i32, i32) {
    %c0_i32 = arith.constant 0 : i32
    %c0_i32_0 = arith.constant 0 : i32
    %c0_i32_1 = arith.constant 0 : i32
    return %c0_i32, %c0_i32_0 : i32, i32
  }
  func.func @transform_3(%arg0: i32) -> (i32, i32) {
    %c0_i32 = arith.constant 0 : i32
    %c0_i32_0 = arith.constant 0 : i32
    %c0_i32_1 = arith.constant 0 : i32
    return %c0_i32, %c0_i32_0 : i32, i32
  }
  func.func @transform_4(%arg0: i32) -> (i32, i32) {
    %c0_i32 = arith.constant 0 : i32
    %c0_i32_0 = arith.constant 0 : i32
    return %arg0, %c0_i32 : i32, i32
  }
}

</mosaic_0001>

<bundles_post_ra>
// kernel: mul.32
= control target key start
LH: loop header
LB: loop body
LE: loop exit
PB: predicated region body
PF: predicated region fallthrough
CT: control target
= control target key end

     0   :  { %s34_s0 = inlined_call_operand.vmem [shape: f32[8], index: 0, kind: input, shape index: {}]   ;;  %s35_s1 = inlined_call_operand.vmem [shape: f32[8], index: 1, kind: input, shape index: {}]   ;;  %s36_s2 = inlined_call_operand.vmem [shape: f32[8], index: 2, kind: output, shape index: {}]  }
   0x1   :  { %v3_v0 = vld [vmem:[%s34_s0] sm:$0x1] }
   0x2   :  { %v4_v1 = vld [vmem:[%s35_s1] sm:$0x1] }
   0x3   :  { %v7_v2 = vmul.f32 %v4_v1, %v3_v0 }
   0x5   :  { %9 = vst [vmem:[%s36_s2] sm:$0x1] %v7_v2 }

// kernel: tile.43
= control target key start
LH: loop header
LB: loop body
LE: loop exit
PB: predicated region body
PF: predicated region fallthrough
CT: control target
= control target key end

     0   :  { %s28_s0 = inlined_call_operand.vmem [shape: f32[8], index: 0, kind: input, shape index: {}]   ;;  %s29_s1 = inlined_call_operand.vmem [shape: f32[16,8], index: 1, kind: output, shape index: {}]  }
   0x1   :  { %v4_v0 = vld [vmem:[%s28_s0] ss:$0 sm:$0xff] }
   0x2   :  { %5 = vst [vmem:[%s29_s1] sm:$0xff] %v4_v0  ;;  %8 = vst [vmem:[%s29_s1 + $0x8] sm:$0xff] %v4_v0 }

// kernel: tile.44
= control target key start
LH: loop header
LB: loop body
LE: loop exit
PB: predicated region body
PF: predicated region fallthrough
CT: control target
= control target key end

     0   :  { %s131_s10 = smov 120   ;;  %s132_s11 = smov 104   ;;  %vm3_vm0 = vcmask 64512   ;;  %vm9_vm1 = vcmask 1048512   ;;  %vm15_vm2 = vcmask 982912   ;;  %vm21_vm3 = vcmask 917312   ;;  %s207_s0 = inlined_call_operand.vmem [shape: f32[16,8], index: 0, kind: input, shape index: {}]   ;;  %s208_s1 = inlined_call_operand.vmem [shape: f32[1,128], index: 1, kind: output, shape index: {}]  }
   0x1   :  { %v101_v0 = vld [vmem:[%s207_s0 + $0xf] sm:$0x1]   ;;  %v103_v1 = vld [vmem:[%s207_s0 + $0xd] sm:$0x1]   ;;  %v102_v2 = vld [vmem:[%s207_s0 + $0xe] sm:$0x1]  }
   0x2   :  { %7 = vrot.lane.b32.xlu0 %v101_v0, %s131_s10  ;;  %19 = vrot.lane.b32.xlu1 %v103_v1, %s132_s11  ;;  %v104_v3 = vld [vmem:[%s207_s0 + $0xc] sm:$0x1]   ;;  %s133_s16 = smov 112   ;;  %s134_s17 = smov 96   ;;  %v105_v4 = vld [vmem:[%s207_s0 + $0xb] sm:$0x1]  }
   0x3   :  { %v106_v5 = vld [vmem:[%s207_s0 + $0xa] sm:$0x1]   ;;  %v2_v6 = vld [vmem:[%s207_s0] sm:$0x1]   ;;  %s135_s24 = smov 88   ;;  %s136_s25 = smov 80  }
   0x4   :  { %4 = vst.msk [vmem:[#allocation0] sm:$0x1] %vm3_vm0, %v2_v6   ;;  %v107_v7 = vld [vmem:[%s207_s0 + $0x9] sm:$0x1]   ;;  %v108_v8 = vld [vmem:[%s207_s0 + $0x8] sm:$0x1]  }
   0x5   :  { %s137_s30 = smov 72   ;;  %s138_s2 = smov 64   ;;  %v109_v9 = vld [vmem:[%s207_s0 + $0x7] sm:$0x1]   ;;  %v110_v10 = vld [vmem:[%s207_s0 + $0x6] sm:$0x1]  }
   0x6   :  { %13 = vrot.lane.b32.xlu0 %v102_v2, %s133_s16  ;;  %25 = vrot.lane.b32.xlu1 %v104_v3, %s134_s17  ;;  %s139_s7 = smov 56   ;;  %s140_s8 = smov 48   ;;  %v111_v11 = vld [vmem:[%s207_s0 + $0x5] sm:$0x1]   ;;  %v112_v12 = vld [vmem:[%s207_s0 + $0x4] sm:$0x1]  }
   0x7   :  { %s141_s13 = smov 40   ;;  %s142_s14 = smov 32   ;;  %v113_v13 = vld [vmem:[%s207_s0 + $0x3] sm:$0x1]   ;;  %v114_v14 = vld [vmem:[%s207_s0 + $0x2] sm:$0x1]  }
   0x8   :  { %s143_s19 = smov 24   ;;  %s144_s20 = smov 16   ;;  %v115_v15 = vld [vmem:[%s207_s0 + $0x1] sm:$0x1]   ;;  %vm27_vm4 = vcmask 851712   ;;  %vm33_vm5 = vcmask 786112  }
   0x9   :  { %s145_s0 = smov 8   ;;  %vm39_vm6 = vcmask 720512   ;;  %vm45_vm7 = vcmask 654912   ;;  %vm51_vm8 = vcmask 589312   ;;  %vm57_vm9 = vcmask 523712  }
   0xa   :  { %31 = vrot.lane.b32.xlu0 %v105_v4, %s135_s24  ;;  %37 = vrot.lane.b32.xlu1 %v106_v5, %s136_s25  ;;  %vm63_vm10 = vcmask 458112   ;;  %vm69_vm11 = vcmask 392512   ;;  %vm75_vm12 = vcmask 326912   ;;  %vm81_vm13 = vcmask 261312  }
   0xb   :  { %vm87_vm14 = vcmask 195712   ;;  %vm93_vm15 = vcmask 130112  }
   0xe   :  { %43 = vrot.lane.b32.xlu0 %v107_v7, %s137_s30  ;;  %49 = vrot.lane.b32.xlu1 %v108_v8, %s138_s2 }
  0x12   :  { %55 = vrot.lane.b32.xlu0 %v109_v9, %s139_s7  ;;  %61 = vrot.lane.b32.xlu1 %v110_v10, %s140_s8 }
  0x16   :  { %67 = vrot.lane.b32.xlu0 %v111_v11, %s141_s13  ;;  %73 = vrot.lane.b32.xlu1 %v112_v12, %s142_s14 }
  0x1a   :  { %79 = vrot.lane.b32.xlu0 %v113_v13, %s143_s19  ;;  %85 = vrot.lane.b32.xlu1 %v114_v14, %s144_s20 }
  0x1e   :  { %91 = vrot.lane.b32.xlu0 %v115_v15, %s145_s0 }
  0x74   :  { %v8_v16 = vpop.permute.xlu0 %7   ;;  %v20_v17 = vpop.permute.xlu1 %19  }
  0x75   :  { %10 = vst.msk [vmem:[#allocation0] sm:$0x1] %vm9_vm1, %v8_v16  }
  0x78   :  { %v14_v18 = vpop.permute.xlu0 %13   ;;  %v26_v19 = vpop.permute.xlu1 %25  }
  0x79   :  { %16 = vst.msk [vmem:[#allocation0] sm:$0x1] %vm15_vm2, %v14_v18  }
  0x7a   :  { %22 = vst.msk [vmem:[#allocation0] sm:$0x1] %vm21_vm3, %v20_v17  }
  0x7b   :  { %28 = vst.msk [vmem:[#allocation0] sm:$0x1] %vm27_vm4, %v26_v19  }
  0x7c   :  { %v32_v20 = vpop.permute.xlu0 %31   ;;  %v38_v21 = vpop.permute.xlu1 %37  }
  0x7d   :  { %34 = vst.msk [vmem:[#allocation0] sm:$0x1] %vm33_vm5, %v32_v20  }
  0x7e   :  { %40 = vst.msk [vmem:[#allocation0] sm:$0x1] %vm39_vm6, %v38_v21  }
  0x80   :  { %v44_v22 = vpop.permute.xlu0 %43   ;;  %v50_v23 = vpop.permute.xlu1 %49  }
  0x81   :  { %46 = vst.msk [vmem:[#allocation0] sm:$0x1] %vm45_vm7, %v44_v22  }
  0x82   :  { %52 = vst.msk [vmem:[#allocation0] sm:$0x1] %vm51_vm8, %v50_v23  }
  0x84   :  { %v56_v24 = vpop.permute.xlu0 %55   ;;  %v62_v25 = vpop.permute.xlu1 %61  }
  0x85   :  { %58 = vst.msk [vmem:[#allocation0] sm:$0x1] %vm57_vm9, %v56_v24  }
  0x86   :  { %64 = vst.msk [vmem:[#allocation0] sm:$0x1] %vm63_vm10, %v62_v25  }
  0x88   :  { %v68_v26 = vpop.permute.xlu0 %67   ;;  %v74_v27 = vpop.permute.xlu1 %73  }
  0x89   :  { %70 = vst.msk [vmem:[#allocation0] sm:$0x1] %vm69_vm11, %v68_v26  }
  0x8a   :  { %76 = vst.msk [vmem:[#allocation0] sm:$0x1] %vm75_vm12, %v74_v27  }
  0x8c   :  { %v80_v28 = vpop.permute.xlu0 %79   ;;  %v86_v29 = vpop.permute.xlu1 %85  }
  0x8d   :  { %82 = vst.msk [vmem:[#allocation0] sm:$0x1] %vm81_vm13, %v80_v28  }
  0x8e   :  { %88 = vst.msk [vmem:[#allocation0] sm:$0x1] %vm87_vm14, %v86_v29  }
  0x90   :  { %v92_v30 = vpop.permute.xlu0 %91  }
  0x91   :  { %94 = vst.msk [vmem:[#allocation0] sm:$0x1] %vm93_vm15, %v92_v30  }
  0x98   :  { %v98_v31 = vld [vmem:[#allocation0] sm:$0x1] }
  0x99   :  { %100 = vst [vmem:[%s208_s1] sm:$0x1] %v98_v31 }

// kernel: frame_predictor_forward.13
= control target key start
LH: loop header
LB: loop body
LE: loop exit
PB: predicated region body
PF: predicated region fallthrough
CT: control target
= control target key end

     0   :  { %s313_s12 = smov 0   ;;  %s336_s0 = inlined_call_operand.vmem [shape: bf16[32,128], index: 0, kind: input, shape index: {}]   ;;  %s337_s1 = inlined_call_operand.vmem [shape: f32[1,128], index: 1, kind: input, shape index: {}]   ;;  %s338_s2 = inlined_call_operand.vmem [shape: f32[1,128], index: 2, kind: input, shape index: {}]   ;;  %s339_s3 = inlined_call_operand.vmem [shape: f32[32,128], index: 3, kind: output, shape index: {}]  }
   0x1 LB: > { %s256_s13 = sadd.s32 4294967295, %s291_s12   ;;  %p260_p0 = scmp.ge.s32.totalorder %s291_s12, 1  ;;  %s291_s12 = sphi %s313_s12, %s13_s12  }
   0x2   : > { %p138_p1 = scmp.lt.s32.totalorder %s291_s12, 3 }
   0x4   : > { %p139_p2 = pnand %p260_p0, %p138_p1 }
   0x5   : > { %s261_s14 = sshll.u32 (!%p139_p2), %s256_s13, 1  ;;  %v265_v1 = vld [vmem:[%s337_s1] ss:$0 sm:$0xff] (!%p139_p2) }
   0x6   : > { %142 = sbr.rel (%p139_p2) target bundleno = 36 (0x24), region = 32  ;;  %p163_p3 = scmp.lt.s32.totalorder (!%p139_p2), %s261_s14, 3  ;;  %v266_v4 = vld [vmem:[%s338_s2] ss:$0 sm:$0xff] (!%p139_p2) }
   0xd   : > { %s341_s14 = smov (!%p163_p3, %s261_s14), 3 }
   0xe   : > { %s262_s15 = sshll.u32 %s341_s14, 2  ;;  %s264_s23 = sshll.u32 %s341_s14, 3 }
   0xf   : > { %s166_s18 = scalar_lea.vmem %s336_s0, %s262_s15  ;;  %s172_s26 = scalar_lea.vmem %s339_s3, %s264_s23 }
  0x10   : > { %v270_v0 = vld [vmem:[%s166_s18] sm:$0xff]  }
  0x11   : > { %v271_v2 = vunpack.c.l.bf16 %v270_v0  ;;  %v272_v3 = vunpack.c.h.bf16 %v270_v0 }
  0x13   : > { %v185_v5 = vmul.f32 %v271_v2, %v265_v1  ;;  %v186_v6 = vmul.f32 %v272_v3, %v265_v1 }
  0x15   : > { %v194_v7 = vadd.f32 %v266_v4, %v185_v5  ;;  %v195_v8 = vadd.f32 %v266_v4, %v186_v6 }
  0x17   : > { %281 = vtanh.f32 %v194_v7 }
  0x18   : > { %283 = vtanh.f32 %v195_v8 }
  0x21   : > { %v282_v9 = vpop.eup %281 }
  0x22   : > { %v284_v10 = vpop.eup %283  ;;  %198 = vst [vmem:[%s172_s26] sm:$0xff] %v282_v9 }
  0x23   : > { %199 = vst [vmem:[%s172_s26 + $0x8] sm:$0xff] %v284_v10 }
  0x24 PF: > { %s13_s12 = sadd.s32 1, %s291_s12  }
  0x25   : > { %p10_p4 = scmp.ge.s32.totalorder %s13_s12, 4  }
  0x27   :  { %12 = sbr.rel (!%p10_p4) target bundleno = 1 (0x1), region = 62 }

// kernel: frame_predictor_forward.12
= control target key start
LH: loop header
LB: loop body
LE: loop exit
PB: predicated region body
PF: predicated region fallthrough
CT: control target
= control target key end

     0   :  { %s1400_s15 = smov 0   ;;  %s1402_s16 = smov 0   ;;  %s1753_s0 = inlined_call_operand.vmem [shape: bf16[1,512,64], index: 0, kind: input, shape index: {}]   ;;  %s1754_s1 = inlined_call_operand.vmem [shape: bf16[1,64,8], index: 1, kind: input, shape index: {}]   ;;  %s1755_s2 = inlined_call_operand.vmem [shape: f32[1,8], index: 2, kind: input, shape index: {}]   ;;  %s1756_s3 = inlined_call_operand.vmem [shape: bf16[1,512,8], index: 3, kind: output, shape index: {0}]   ;;  %s1757_s4 = inlined_call_operand.vmem [shape: f32[1,2,2,8], index: 4, kind: output, shape index: {1}]  }
   0x1   :  { %s1404_s17 = smov 0  }
   0x2 LB: > { %s24_s18 = sadd.s32 1, %s1369_s16  ;;  %p1130_p0 = scmp.ge.s32.totalorder %s1373_s17, 1  ;;  %s1373_s17 = sphi %s1404_s17, %s15_s17   ;;  %s1369_s16 = sphi %s1402_s16, %s1759_s16   ;;  %s1365_s15 = sphi %s1400_s15, %s1758_s15  }
   0x3   : > { %p25_p1 = scmp.ge.s32.totalorder %s24_s18, 2  ;;  %p198_p2 = scmp.lt.s32.totalorder %s1373_s17, 3 }
   0x5   : > { %s1761_s18 = smov (%p25_p1, %s24_s18), 0  ;;  %p199_p3 = pnand %p1130_p0, %p198_p2 }
   0x6   : > { %v1331_v0 = vld [vmem:[%s1754_s1] sm:$0xff] (!%p199_p3)   ;;  %s1131_s21 = sshll.u32 (!%p199_p3), %s1365_s15, 5  ;;  %v1332_v1 = vld [vmem:[%s1754_s1 + $0x8] sm:$0xff] (!%p199_p3)   ;;  %v1333_v2 = vld [vmem:[%s1754_s1 + $0x10] sm:$0xff] (!%p199_p3)   ;;  %vm430_vm0 = vcmask (!%p199_p3), 523264   ;;  %vm768_vm1 = vcmask (!%p199_p3), 60416  }
   0x7   : > { %202 = sbr.rel (%p199_p3) target bundleno = 319 (0x13f), region = 32  ;;  %p248_p4 = scmp.lt.s32.totalorder (!%p199_p3), %s1131_s21, 63  ;;  %1259 = vmatprep.subr.bf16.mxu0 (!%p199_p3), %v1331_v0  ;;  %1299 = vmatprep.subr.bf16.mxu1 (!%p199_p3), %v1331_v0  ;;  %v1334_v4 = vld [vmem:[%s1754_s1 + $0x18] sm:$0xff] (!%p199_p3)   ;;  %v1478_v20 = vld [vmem:[%s1755_s2] ss:$0 sm:$0xff] (!%p199_p3)  ;;  %vm801_vm2 = vcmask (!%p199_p3), 64512  }
   0x8   : > { %1260 = vmatpush3.bf16.msra.mxu0 (!%p199_p3), %v1331_v0  ;;  %1303 = vmatpush3.bf16.msra.mxu1 (!%p199_p3), %v1331_v0  ;;  %p272_p5 = scmp.lt.s32.totalorder (!%p199_p3), %s1365_s15, 1  ;;  %vm972_vm3 = vcmask (!%p199_p3), 1040384   ;;  %vm974_vm4 = vcmask (!%p199_p3), 58368  }
   0x9   : > { %1261 = vmatprep.subr.bf16.mxu0 (!%p199_p3), %v1332_v1  ;;  %1300 = vmatprep.subr.bf16.mxu1 (!%p199_p3), %v1332_v1 }
   0xc   : > { %1262 = vmatpush3.bf16.msra.mxu0 (!%p199_p3), %v1332_v1  ;;  %1304 = vmatpush3.bf16.msra.mxu1 (!%p199_p3), %v1332_v1 }
   0xd   : > { %1263 = vmatprep.subr.bf16.mxu0 (!%p199_p3), %v1333_v2  ;;  %1301 = vmatprep.subr.bf16.mxu1 (!%p199_p3), %v1333_v2 }
   0xe   : > { %s1763_s21 = smov (!%p248_p4, %s1131_s21), 63  ;;  %s1765_s15 = smov (!%p272_p5, %s1365_s15), 1 }
   0xf   : > { %s1132_s26 = sshll.u32 %s1763_s21, 2  ;;  %s1135_s11 = sshll.u32 %s1765_s15, 1 }
  0x10   : > { %s1438_s29 = scalar_lea.vmem %s1753_s0, %s1132_s26  ;;  %1264 = vmatpush3.bf16.msra.mxu0 %v1333_v2  ;;  %1305 = vmatpush3.bf16.msra.mxu1 %v1333_v2  ;;  %s1486_s10 = scalar_lea.vmem %s1756_s3, %s1132_s26 }
  0x11   : > { %v1335_v3 = vld [vmem:[%s1438_s29] sm:$0xff]   ;;  %1265 = vmatprep.subr.bf16.mxu0 %v1334_v4  ;;  %1302 = vmatprep.subr.bf16.mxu1 %v1334_v4  ;;  %v1336_v5 = vld [vmem:[%s1438_s29 + $0x8] sm:$0xff]   ;;  %v1337_v6 = vld [vmem:[%s1438_s29 + $0x10] sm:$0xff]   ;;  %s277_s14 = scalar_lea.vmem %s1757_s4, %s1135_s11 }
  0x12   : > { %1267 = vmatprep.mubr.msk.bf16.mxu0 %vm430_vm0, %v1335_v3  ;;  %v1343_v7 = vld [vmem:[%s1438_s29 + $0x40] sm:$0xff]   ;;  %v1344_v8 = vld [vmem:[%s1438_s29 + $0x48] sm:$0xff]   ;;  %v1345_v9 = vld [vmem:[%s1438_s29 + $0x50] sm:$0xff]  }
  0x13   : > { %1283 = vmatprep.mubr.msk.bf16.mxu1 %vm430_vm0, %v1343_v7  ;;  %v1338_v10 = vld [vmem:[%s1438_s29 + $0x18] sm:$0xff]   ;;  %v1339_v12 = vld [vmem:[%s1438_s29 + $0x20] sm:$0xff]   ;;  %v1340_v14 = vld [vmem:[%s1438_s29 + $0x28] sm:$0xff]  }
  0x14   : > { %1266 = vmatpush3.bf16.msra.mxu0 %v1334_v4  ;;  %1306 = vmatpush3.bf16.msra.mxu1 %v1334_v4  ;;  %v1346_v11 = vld [vmem:[%s1438_s29 + $0x58] sm:$0xff]   ;;  %v1347_v13 = vld [vmem:[%s1438_s29 + $0x60] sm:$0xff]   ;;  %v1348_v15 = vld [vmem:[%s1438_s29 + $0x68] sm:$0xff]  }
  0x15   : > { %v1341_v16 = vld [vmem:[%s1438_s29 + $0x30] sm:$0xff]   ;;  %v1342_v18 = vld [vmem:[%s1438_s29 + $0x38] sm:$0xff]  }
  0x16   : > { %v1349_v17 = vld [vmem:[%s1438_s29 + $0x70] sm:$0xff]   ;;  %v1350_v19 = vld [vmem:[%s1438_s29 + $0x78] sm:$0xff]  }
  0x17   : > { %1268 = vmatmul.mubr.msk.bf16.vlgmr.msra.gmra.mrb[0].mxu0 %vm430_vm0, %v1336_v5  ;;  %1284 = vmatmul.mubr.msk.bf16.vlgmr.msra.gmra.mrb[0].mxu1 %vm430_vm0, %v1344_v8 }
  0x18   : > { %1271 = vmatprep.mubr.msk.bf16.mxu0 %vm430_vm0, %v1337_v6  ;;  %1287 = vmatprep.mubr.msk.bf16.mxu1 %vm430_vm0, %v1345_v9 }
  0x1f   : > { %1272 = vmatmul.mubr.msk.bf16.gmra.mrb[4].mxu0 %vm430_vm0, %v1338_v10  ;;  %1288 = vmatmul.mubr.msk.bf16.gmra.mrb[4].mxu1 %vm430_vm0, %v1346_v11 }
  0x20   : > { %1275 = vmatprep.mubr.msk.bf16.mxu0 %vm430_vm0, %v1339_v12  ;;  %1291 = vmatprep.mubr.msk.bf16.mxu1 %vm430_vm0, %v1347_v13 }
  0x27   : > { %1276 = vmatmul.mubr.msk.bf16.gmra.mrb[8].mxu0 %vm430_vm0, %v1340_v14  ;;  %1292 = vmatmul.mubr.msk.bf16.gmra.mrb[8].mxu1 %vm430_vm0, %v1348_v15 }
  0x28   : > { %1279 = vmatprep.mubr.msk.bf16.mxu0 %vm430_vm0, %v1341_v16  ;;  %1295 = vmatprep.mubr.msk.bf16.mxu1 %vm430_vm0, %v1349_v17 }
  0x2f   : > { %1280 = vmatmul.mubr.msk.bf16.gmra.mrb[12].mxu0 %vm430_vm0, %v1342_v18  ;;  %1296 = vmatmul.mubr.msk.bf16.gmra.mrb[12].mxu1 %vm430_vm0, %v1350_v19 }
  0xea   : > { %v1269_v21 = vpop.f32.mrb[0].mxu0  ;;  %v1285_v22 = vpop.f32.mrb[0].mxu1 }
  0xeb   : > { %v522_v23 = vadd.f32 %v1269_v21, %v1478_v20  ;;  %v513_v24 = vpop.f32.mrb[1].mxu0  ;;  %v577_v25 = vpop.f32.mrb[1].mxu1  ;;  %v1491_v32 = vadd.f32 %v1285_v22, %v1478_v20 }
  0xec   : > { %v514_v26 = vadd.f32 %v1478_v20, %v513_v24  ;;  %v1270_v27 = vpop.f32.mrb[2].mxu0  ;;  %v1286_v28 = vpop.f32.mrb[2].mxu1  ;;  %v1495_v37 = vadd.f32 %v1478_v20, %v577_v25 }
  0xed   : > { %v1209_v29 = vpack.c.bf16 %v522_v23, %v522_v23  ;;  %v525_v30 = vadd.f32 %v1270_v27, %v1478_v20  ;;  %v516_v31 = vpop.f32.mrb[3].mxu0  ;;  %v580_v33 = vpop.f32.mrb[3].mxu1  ;;  %v873_v38 = vmul.f32 %v522_v23, %v522_v23  ;;  %v1225_v46 = vpack.c.bf16 %v1491_v32, %v1491_v32 }
  0xee   : > { %v1207_v34 = vpack.c.bf16 %v514_v26, %v514_v26  ;;  %v871_v35 = vmul.f32 %v514_v26, %v514_v26  ;;  %v517_v36 = vadd.f32 %v1478_v20, %v516_v31  ;;  %v802_v40 = vsel %vm801_vm2, %v514_v26, 0.0 }
  0xef   : > { %771 = vst.msk [vmem:[%s1486_s10 + $0x8] sm:$0xf] %vm768_vm1, %v1209_v29  ;;  %v1210_v39 = vpack.c.bf16 %v525_v30, %v525_v30  ;;  %v874_v44 = vmul.f32 %v525_v30, %v525_v30  ;;  %v805_v47 = vsel %vm801_vm2, %v522_v23, 0.0  ;;  %v1223_v51 = vpack.c.bf16 %v1495_v37, %v1495_v37  ;;  %787 = vst.msk [vmem:[%s1486_s10 + $0x48] sm:$0xf] %vm768_vm1, %v1225_v46 }
  0xf0   : > { %769 = vst.msk [vmem:[%s1486_s10] sm:$0xf] %vm768_vm1, %v1207_v34  ;;  %v1208_v41 = vpack.c.bf16 %v517_v36, %v517_v36  ;;  %v803_v42 = vsel %vm801_vm2, %v517_v36, 0.0  ;;  %v872_v43 = vmul.f32 %v517_v36, %v517_v36  ;;  %v903_v48 = vsel %vm801_vm2, %v871_v35, 0.0 }
  0xf1   : > { %772 = vst.msk [vmem:[%s1486_s10 + $0xc] sm:$0xf] %vm768_vm1, %v1210_v39  ;;  %v804_v45 = vadd.f32 %v803_v42, %v802_v40  ;;  %v906_v58 = vsel %vm801_vm2, %v873_v38, 0.0  ;;  %785 = vst.msk [vmem:[%s1486_s10 + $0x40] sm:$0xf] %vm768_vm1, %v1223_v51  ;;  %v1526_v61 = vadd.f32 %v1286_v28, %v1478_v20  ;;  %v807_v63 = vsel %vm801_vm2, %v525_v30, 0.0 }
  0xf2   : > { %770 = vst.msk [vmem:[%s1486_s10 + $0x4] sm:$0xf] %vm768_vm1, %v1208_v41  ;;  %v904_v49 = vsel %vm801_vm2, %v872_v43, 0.0  ;;  %v1273_v50 = vpop.f32.mrb[4].mxu0  ;;  %v1514_v52 = vpop.f32.mrb[4].mxu1  ;;  %v908_v0 = vsel %vm801_vm2, %v874_v44, 0.0  ;;  %v1545_v15 = vadd.f32 %v1478_v20, %v580_v33 }
  0xf3   : > { %v806_v53 = vadd.f32 %v805_v47, %v804_v45  ;;  %v905_v54 = vadd.f32 %v904_v49, %v903_v48  ;;  %v538_v55 = vadd.f32 %v1273_v50, %v1478_v20  ;;  %v529_v56 = vpop.f32.mrb[5].mxu0  ;;  %v1519_v57 = vpop.f32.mrb[5].mxu1  ;;  %v1226_v14 = vpack.c.bf16 %v1526_v61, %v1526_v61 }
  0xf4   : > { %v530_v59 = vadd.f32 %v1478_v20, %v529_v56  ;;  %v1274_v60 = vpop.f32.mrb[6].mxu0  ;;  %v1528_v62 = vpop.f32.mrb[6].mxu1  ;;  %v1224_v35 = vpack.c.bf16 %v1545_v15, %v1545_v15 }
  0xf5   : > { %v907_v1 = vadd.f32 %v906_v58, %v905_v54  ;;  %v1213_v2 = vpack.c.bf16 %v538_v55, %v538_v55  ;;  %v532_v3 = vpop.f32.mrb[7].mxu0  ;;  %v1532_v4 = vpop.f32.mrb[7].mxu1  ;;  %v808_v6 = vadd.f32 %v807_v63, %v806_v53  ;;  %v541_v10 = vadd.f32 %v1274_v60, %v1478_v20  ;;  %788 = vst.msk [vmem:[%s1486_s10 + $0x4c] sm:$0xf] %vm768_vm1, %v1226_v14 }
  0xf6   : > { %v1211_v5 = vpack.c.bf16 %v530_v59, %v530_v59  ;;  %v809_v7 = vsel %vm801_vm2, %v530_v59, 0.0  ;;  %v875_v8 = vmul.f32 %v530_v59, %v530_v59  ;;  %v533_v11 = vadd.f32 %v1478_v20, %v532_v3  ;;  %786 = vst.msk [vmem:[%s1486_s10 + $0x44] sm:$0xf] %vm768_vm1, %v1224_v35 }
  0xf7   : > { %775 = vst.msk [vmem:[%s1486_s10 + $0x18] sm:$0xf] %vm768_vm1, %v1213_v2  ;;  %v909_v9 = vadd.f32 %v908_v0, %v907_v1  ;;  %v810_v12 = vadd.f32 %v809_v7, %v808_v6  ;;  %v877_v16 = vmul.f32 %v538_v55, %v538_v55  ;;  %v1214_v18 = vpack.c.bf16 %v541_v10, %v541_v10 }
  0xf8   : > { %773 = vst.msk [vmem:[%s1486_s10 + $0x10] sm:$0xf] %vm768_vm1, %v1211_v5  ;;  %v910_v13 = vsel %vm801_vm2, %v875_v8, 0.0  ;;  %v1212_v19 = vpack.c.bf16 %v533_v11, %v533_v11  ;;  %v811_v21 = vsel %vm801_vm2, %v533_v11, 0.0  ;;  %v876_v22 = vmul.f32 %v533_v11, %v533_v11 }
  0xf9   : > { %v911_v17 = vadd.f32 %v910_v13, %v909_v9  ;;  %v813_v25 = vsel %vm801_vm2, %v538_v55, 0.0  ;;  %776 = vst.msk [vmem:[%s1486_s10 + $0x1c] sm:$0xf] %vm768_vm1, %v1214_v18  ;;  %v812_v26 = vadd.f32 %v811_v21, %v810_v12  ;;  %v878_v30 = vmul.f32 %v541_v10, %v541_v10 }
  0xfa   : > { %v1277_v23 = vpop.f32.mrb[8].mxu0  ;;  %v1550_v24 = vpop.f32.mrb[8].mxu1  ;;  %774 = vst.msk [vmem:[%s1486_s10 + $0x14] sm:$0xf] %vm768_vm1, %v1212_v19  ;;  %v912_v31 = vsel %vm801_vm2, %v876_v22, 0.0  ;;  %v914_v38 = vsel %vm801_vm2, %v877_v16, 0.0  ;;  %v1596_v14 = vadd.f32 %v1514_v52, %v1478_v20 }
  0xfb   : > { %v554_v27 = vadd.f32 %v1277_v23, %v1478_v20  ;;  %v545_v28 = vpop.f32.mrb[9].mxu0  ;;  %v1556_v29 = vpop.f32.mrb[9].mxu1  ;;  %v814_v39 = vadd.f32 %v813_v25, %v812_v26  ;;  %v913_v40 = vadd.f32 %v912_v31, %v911_v17  ;;  %v815_v44 = vsel %vm801_vm2, %v541_v10, 0.0 }
  0xfc   : > { %v546_v33 = vadd.f32 %v1478_v20, %v545_v28  ;;  %v1278_v34 = vpop.f32.mrb[10].mxu0  ;;  %v1564_v36 = vpop.f32.mrb[10].mxu1  ;;  %v916_v53 = vsel %vm801_vm2, %v878_v30, 0.0 }
  0xfd   : > { %v1217_v41 = vpack.c.bf16 %v554_v27, %v554_v27  ;;  %v548_v42 = vpop.f32.mrb[11].mxu0  ;;  %v1567_v43 = vpop.f32.mrb[11].mxu1  ;;  %v915_v48 = vadd.f32 %v914_v38, %v913_v40  ;;  %v816_v49 = vadd.f32 %v815_v44, %v814_v39  ;;  %v557_v50 = vadd.f32 %v1278_v34, %v1478_v20 }
  0xfe   : > { %v1215_v45 = vpack.c.bf16 %v546_v33, %v546_v33  ;;  %v817_v46 = vsel %vm801_vm2, %v546_v33, 0.0  ;;  %v879_v47 = vmul.f32 %v546_v33, %v546_v33  ;;  %v549_v51 = vadd.f32 %v1478_v20, %v548_v42 }
  0xff   : > { %779 = vst.msk [vmem:[%s1486_s10 + $0x28] sm:$0xf] %vm768_vm1, %v1217_v41  ;;  %v881_v55 = vmul.f32 %v554_v27, %v554_v27  ;;  %v818_v56 = vadd.f32 %v817_v46, %v816_v49  ;;  %v917_v58 = vadd.f32 %v916_v53, %v915_v48  ;;  %v1218_v59 = vpack.c.bf16 %v557_v50, %v557_v50 }
 0x100   : > { %777 = vst.msk [vmem:[%s1486_s10 + $0x20] sm:$0xf] %vm768_vm1, %v1215_v45  ;;  %v918_v54 = vsel %vm801_vm2, %v879_v47, 0.0  ;;  %v1216_v60 = vpack.c.bf16 %v549_v51, %v549_v51  ;;  %v819_v63 = vsel %vm801_vm2, %v549_v51, 0.0  ;;  %v880_v0 = vmul.f32 %v549_v51, %v549_v51 }
 0x101   : > { %v821_v3 = vsel %vm801_vm2, %v554_v27, 0.0  ;;  %v919_v5 = vadd.f32 %v918_v54, %v917_v58  ;;  %780 = vst.msk [vmem:[%s1486_s10 + $0x2c] sm:$0xf] %vm768_vm1, %v1218_v59  ;;  %v820_v6 = vadd.f32 %v819_v63, %v818_v56  ;;  %v882_v10 = vmul.f32 %v557_v50, %v557_v50 }
 0x102   : > { %v1281_v1 = vpop.f32.mrb[12].mxu0  ;;  %v1582_v2 = vpop.f32.mrb[12].mxu1  ;;  %778 = vst.msk [vmem:[%s1486_s10 + $0x24] sm:$0xf] %vm768_vm1, %v1216_v60  ;;  %v920_v11 = vsel %vm801_vm2, %v880_v0, 0.0  ;;  %v922_v17 = vsel %vm801_vm2, %v881_v55, 0.0  ;;  %v1229_v38 = vpack.c.bf16 %v1596_v14, %v1596_v14  ;;  %v887_v42 = vmul.f32 %v1495_v37, %v1495_v37 }
 0x103   : > { %v570_v7 = vadd.f32 %v1281_v1, %v1478_v20  ;;  %v561_v8 = vpop.f32.mrb[13].mxu0  ;;  %v1588_v9 = vpop.f32.mrb[13].mxu1  ;;  %v822_v18 = vadd.f32 %v821_v3, %v820_v6  ;;  %v921_v19 = vadd.f32 %v920_v11, %v919_v5  ;;  %v823_v25 = vsel %vm801_vm2, %v557_v50, 0.0 }
 0x104   : > { %v562_v12 = vadd.f32 %v1478_v20, %v561_v8  ;;  %v1282_v13 = vpop.f32.mrb[14].mxu0  ;;  %v1598_v16 = vpop.f32.mrb[14].mxu1  ;;  %v924_v34 = vsel %vm801_vm2, %v882_v10, 0.0  ;;  %791 = vst.msk [vmem:[%s1486_s10 + $0x58] sm:$0xf] %vm768_vm1, %v1229_v38  ;;  %v594_v51 = vadd.f32 %v1478_v20, %v1519_v57  ;;  %v1630_v55 = vadd.f32 %v1528_v62, %v1478_v20 }
 0x105   : > { %v1221_v21 = vpack.c.bf16 %v570_v7, %v570_v7  ;;  %v564_v22 = vpop.f32.mrb[15].mxu0  ;;  %v1601_v23 = vpop.f32.mrb[15].mxu1  ;;  %v923_v30 = vadd.f32 %v922_v17, %v921_v19  ;;  %v824_v52 = vadd.f32 %v823_v25, %v822_v18  ;;  %v573_v31 = vadd.f32 %v1282_v13, %v1478_v20 }
 0x106   : > { %v1219_v26 = vpack.c.bf16 %v562_v12, %v562_v12  ;;  %v825_v27 = vsel %vm801_vm2, %v562_v12, 0.0  ;;  %v883_v28 = vmul.f32 %v562_v12, %v562_v12  ;;  %v565_v33 = vadd.f32 %v1478_v20, %v564_v22 }
 0x107   : > { %783 = vst.msk [vmem:[%s1486_s10 + $0x38] sm:$0xf] %vm768_vm1, %v1221_v21  ;;  %v826_v39 = vadd.f32 %v825_v27, %v824_v52  ;;  %v925_v40 = vadd.f32 %v924_v34, %v923_v30  ;;  %v1222_v41 = vpack.c.bf16 %v573_v31, %v573_v31  ;;  %v885_v44 = vmul.f32 %v570_v7, %v570_v7 }
 0x108   : > { %781 = vst.msk [vmem:[%s1486_s10 + $0x30] sm:$0xf] %vm768_vm1, %v1219_v26  ;;  %v926_v35 = vsel %vm801_vm2, %v883_v28, 0.0  ;;  %v1220_v45 = vpack.c.bf16 %v565_v33, %v565_v33  ;;  %v827_v46 = vsel %vm801_vm2, %v565_v33, 0.0  ;;  %v884_v47 = vmul.f32 %v565_v33, %v565_v33 }
 0x109   : > { %v829_v48 = vsel %vm801_vm2, %v570_v7, 0.0  ;;  %v927_v49 = vadd.f32 %v926_v35, %v925_v40  ;;  %784 = vst.msk [vmem:[%s1486_s10 + $0x3c] sm:$0xf] %vm768_vm1, %v1222_v41  ;;  %v828_v50 = vadd.f32 %v827_v46, %v826_v39  ;;  %v886_v53 = vmul.f32 %v573_v31, %v573_v31 }
 0x10a   : > { %782 = vst.msk [vmem:[%s1486_s10 + $0x34] sm:$0xf] %vm768_vm1, %v1220_v45  ;;  %v928_v54 = vsel %vm801_vm2, %v884_v47, 0.0  ;;  %v597_v56 = vadd.f32 %v1478_v20, %v1532_v4  ;;  %v1227_v60 = vpack.c.bf16 %v594_v51, %v594_v51  ;;  %v930_v63 = vsel %vm801_vm2, %v885_v44, 0.0 }
 0x10b   : > { %v830_v58 = vadd.f32 %v829_v48, %v828_v50  ;;  %v929_v59 = vadd.f32 %v928_v54, %v927_v49  ;;  %v831_v57 = vsel %vm801_vm2, %v573_v31, 0.0  ;;  %v833_v0 = vsel %vm801_vm2, %v1495_v37, 0.0 }
 0x10c   : > { %v1230_v1 = vpack.c.bf16 %v1630_v55, %v1630_v55  ;;  %789 = vst.msk [vmem:[%s1486_s10 + $0x50] sm:$0xf] %vm768_vm1, %v1227_v60  ;;  %v1228_v5 = vpack.c.bf16 %v597_v56, %v597_v56  ;;  %v932_v4 = vsel %vm801_vm2, %v886_v53, 0.0  ;;  %v934_v6 = vsel %vm801_vm2, %v887_v42, 0.0 }
 0x10d   : > { %v931_v62 = vadd.f32 %v930_v63, %v929_v59  ;;  %v832_v3 = vadd.f32 %v831_v57, %v830_v58  ;;  %v888_v7 = vmul.f32 %v1545_v15, %v1545_v15  ;;  %v1650_v37 = vadd.f32 %v1550_v24, %v1478_v20 }
 0x10e   : > { %792 = vst.msk [vmem:[%s1486_s10 + $0x5c] sm:$0xf] %vm768_vm1, %v1230_v1  ;;  %790 = vst.msk [vmem:[%s1486_s10 + $0x54] sm:$0xf] %vm768_vm1, %v1228_v5  ;;  %v610_v11 = vadd.f32 %v1478_v20, %v1556_v29  ;;  %v837_v12 = vsel %vm801_vm2, %v1491_v32, 0.0  ;;  %v889_v13 = vmul.f32 %v1491_v32, %v1491_v32  ;;  %v835_v17 = vsel %vm801_vm2, %v1545_v15, 0.0 }
 0x10f   : > { %v834_v8 = vadd.f32 %v833_v0, %v832_v3  ;;  %v933_v10 = vadd.f32 %v932_v4, %v931_v62  ;;  %v1233_v24 = vpack.c.bf16 %v1650_v37, %v1650_v37  ;;  %v890_v19 = vmul.f32 %v1526_v61, %v1526_v61 }
 0x110   : > { %v1231_v22 = vpack.c.bf16 %v610_v11, %v610_v11  ;;  %v936_v29 = vsel %vm801_vm2, %v888_v7, 0.0  ;;  %v891_v25 = vmul.f32 %v594_v51, %v594_v51  ;;  %v621_v32 = vadd.f32 %v1564_v36, %v1478_v20 }
 0x111   : > { %v935_v18 = vadd.f32 %v934_v6, %v933_v10  ;;  %v836_v21 = vadd.f32 %v835_v17, %v834_v8  ;;  %795 = vst.msk [vmem:[%s1486_s10 + $0x68] sm:$0xf] %vm768_vm1, %v1233_v24  ;;  %v613_v15 = vadd.f32 %v1478_v20, %v1567_v43  ;;  %v1677_v28 = vadd.f32 %v1582_v2, %v1478_v20 }
 0x112   : > { %793 = vst.msk [vmem:[%s1486_s10 + $0x60] sm:$0xf] %vm768_vm1, %v1231_v22  ;;  %v626_v30 = vadd.f32 %v1478_v20, %v1588_v9  ;;  %v938_v52 = vsel %vm801_vm2, %v889_v13, 0.0  ;;  %v839_v36 = vsel %vm801_vm2, %v1526_v61, 0.0  ;;  %v841_v43 = vsel %vm801_vm2, %v594_v51, 0.0 }
 0x113   : > { %v838_v26 = vadd.f32 %v837_v12, %v836_v21  ;;  %v937_v27 = vadd.f32 %v936_v29, %v935_v18  ;;  %v1234_v31 = vpack.c.bf16 %v621_v32, %v621_v32  ;;  %v1232_v35 = vpack.c.bf16 %v613_v15, %v613_v15 }
 0x114   : > { %v940_v38 = vsel %vm801_vm2, %v890_v19, 0.0  ;;  %v942_v2 = vsel %vm801_vm2, %v891_v25, 0.0  ;;  %v892_v39 = vmul.f32 %v597_v56, %v597_v56  ;;  %v1237_v9 = vpack.c.bf16 %v1677_v28, %v1677_v28 }
 0x115   : > { %v939_v33 = vadd.f32 %v938_v52, %v937_v27  ;;  %v840_v34 = vadd.f32 %v839_v36, %v838_v26  ;;  %796 = vst.msk [vmem:[%s1486_s10 + $0x6c] sm:$0xf] %vm768_vm1, %v1234_v31  ;;  %794 = vst.msk [vmem:[%s1486_s10 + $0x64] sm:$0xf] %vm768_vm1, %v1232_v35  ;;  %v1235_v41 = vpack.c.bf16 %v626_v30, %v626_v30  ;;  %v843_v44 = vsel %vm801_vm2, %v597_v56, 0.0 }
 0x116   : > { %v893_v42 = vmul.f32 %v1596_v14, %v1596_v14  ;;  %799 = vst.msk [vmem:[%s1486_s10 + $0x78] sm:$0xf] %vm768_vm1, %v1237_v9  ;;  %v637_v45 = vadd.f32 %v1598_v16, %v1478_v20  ;;  %v845_v46 = vsel %vm801_vm2, %v1596_v14, 0.0  ;;  %v629_v49 = vadd.f32 %v1478_v20, %v1601_v23 }
 0x117   : > { %v842_v40 = vadd.f32 %v841_v43, %v840_v34  ;;  %v941_v61 = vadd.f32 %v940_v38, %v939_v33  ;;  %797 = vst.msk [vmem:[%s1486_s10 + $0x70] sm:$0xf] %vm768_vm1, %v1235_v41  ;;  %v894_v50 = vmul.f32 %v1630_v55, %v1630_v55  ;;  %v944_v51 = vsel %vm801_vm2, %v892_v39, 0.0 }
 0x118   : > { %v895_v53 = vmul.f32 %v610_v11, %v610_v11  ;;  %v1238_v54 = vpack.c.bf16 %v637_v45, %v637_v45  ;;  %v1236_v58 = vpack.c.bf16 %v629_v49, %v629_v49  ;;  %v946_v14 = vsel %vm801_vm2, %v893_v42, 0.0 }
 0x119   : > { %v943_v47 = vadd.f32 %v942_v2, %v941_v61  ;;  %v844_v48 = vadd.f32 %v843_v44, %v842_v40  ;;  %v847_v59 = vsel %vm801_vm2, %v1630_v55, 0.0  ;;  %v849_v60 = vsel %vm801_vm2, %v610_v11, 0.0 }
 0x11a   : > { %800 = vst.msk [vmem:[%s1486_s10 + $0x7c] sm:$0xf] %vm768_vm1, %v1238_v54  ;;  %798 = vst.msk [vmem:[%s1486_s10 + $0x74] sm:$0xf] %vm768_vm1, %v1236_v58  ;;  %v948_v63 = vsel %vm801_vm2, %v894_v50, 0.0  ;;  %v950_v57 = vsel %vm801_vm2, %v895_v53, 0.0  ;;  %v896_v0 = vmul.f32 %v613_v15, %v613_v15  ;;  %v897_v3 = vmul.f32 %v1650_v37, %v1650_v37 }
 0x11b   : > { %v846_v16 = vadd.f32 %v845_v46, %v844_v48  ;;  %v945_v56 = vadd.f32 %v944_v51, %v943_v47  ;;  %v851_v55 = vsel %vm801_vm2, %v613_v15, 0.0  ;;  %v853_v6 = vsel %vm801_vm2, %v1650_v37, 0.0 }
 0x11c   : > { %v898_v7 = vmul.f32 %v621_v32, %v621_v32  ;;  %v952_v8 = vsel %vm801_vm2, %v896_v0, 0.0  ;;  %v899_v10 = vmul.f32 %v626_v30, %v626_v30  ;;  %v954_v13 = vsel %vm801_vm2, %v897_v3, 0.0 }
 0x11d   : > { %v947_v20 = vadd.f32 %v946_v14, %v945_v56  ;;  %v848_v23 = vadd.f32 %v847_v59, %v846_v16  ;;  %v855_v17 = vsel %vm801_vm2, %v621_v32, 0.0  ;;  %v857_v24 = vsel %vm801_vm2, %v626_v30, 0.0 }
 0x11e   : > { %v956_v21 = vsel %vm801_vm2, %v898_v7, 0.0  ;;  %v958_v22 = vsel %vm801_vm2, %v899_v10, 0.0  ;;  %v900_v29 = vmul.f32 %v629_v49, %v629_v49  ;;  %v901_v15 = vmul.f32 %v1677_v28, %v1677_v28 }
 0x11f   : > { %v850_v1 = vadd.f32 %v849_v60, %v848_v23  ;;  %v949_v62 = vadd.f32 %v948_v63, %v947_v20  ;;  %v859_v26 = vsel %vm801_vm2, %v629_v49, 0.0  ;;  %v861_v32 = vsel %vm801_vm2, %v1677_v28, 0.0 }
 0x120   : > { %v902_v30 = vmul.f32 %v637_v45, %v637_v45  ;;  %v960_v36 = vsel %vm801_vm2, %v900_v29, 0.0  ;;  %v962_v33 = vsel %vm801_vm2, %v901_v15, 0.0  ;;  %v863_v34 = vsel %vm801_vm2, %v637_v45, 0.0 }
 0x121   : > { %v951_v5 = vadd.f32 %v950_v57, %v949_v62  ;;  %v852_v4 = vadd.f32 %v851_v55, %v850_v1 }
 0x122   : > { %v964_v2 = vsel %vm801_vm2, %v902_v30, 0.0 }
 0x123   : > { %v854_v11 = vadd.f32 %v853_v6, %v852_v4  ;;  %v953_v12 = vadd.f32 %v952_v8, %v951_v5 }
 0x125   : > { %v955_v18 = vadd.f32 %v954_v13, %v953_v12  ;;  %v856_v19 = vadd.f32 %v855_v17, %v854_v11 }
 0x127   : > { %v858_v37 = vadd.f32 %v857_v24, %v856_v19  ;;  %v957_v25 = vadd.f32 %v956_v21, %v955_v18 }
 0x129   : > { %v959_v27 = vadd.f32 %v958_v22, %v957_v25  ;;  %v860_v52 = vadd.f32 %v859_v26, %v858_v37 }
 0x12b   : > { %v862_v43 = vadd.f32 %v861_v32, %v860_v52  ;;  %v961_v31 = vadd.f32 %v960_v36, %v959_v27 }
 0x12d   : > { %v864_v35 = vadd.f32 %v863_v34, %v862_v43  ;;  %v963_v38 = vadd.f32 %v962_v33, %v961_v31 }
 0x12f   : > { %v865_v39 = vrot.slane %v864_v35, 4  ;;  %v965_v9 = vadd.f32 %v964_v2, %v963_v38 }
 0x131   : > { %v866_v40 = vadd.f32 %v865_v39, %v864_v35  ;;  %v966_v61 = vrot.slane %v965_v9, 4 }
 0x133   : > { %v867_v28 = vrot.slane %v866_v40, 2  ;;  %v967_v41 = vadd.f32 %v966_v61, %v965_v9 }
 0x135   : > { %v868_v42 = vadd.f32 %v867_v28, %v866_v40  ;;  %v968_v44 = vrot.slane %v967_v41, 2 }
 0x137   : > { %v869_v46 = vrot.slane %v868_v42, 1  ;;  %v969_v47 = vadd.f32 %v968_v44, %v967_v41 }
 0x139   : > { %v970_v48 = vrot.slane %v969_v47, 1  ;;  %v870_v45 = vadd.f32 %v869_v46, %v868_v42 }
 0x13b   : > { %v971_v49 = vadd.f32 %v970_v48, %v969_v47 }
 0x13d   : > { %v973_v50 = vsel %vm972_vm3, %v870_v45, %v971_v49 }
 0x13e   : > { %975 = vst.msk [vmem:[%s277_s14] sm:$0x3] %vm974_vm4, %v973_v50 }
 0x13f PF: > { %s15_s17 = sadd.s32 1, %s1373_s17   ;;  %s1758_s15 = smov %s1369_s16 }
 0x140   : > { %p12_p6 = scmp.ge.s32.totalorder %s15_s17, 4   ;;  %s1759_s16 = smov %s1761_s18 }
 0x142   :  { %14 = sbr.rel (!%p12_p6) target bundleno = 2 (0x2), region = 77 }

// kernel: mul.39
= control target key start
LH: loop header
LB: loop body
LE: loop exit
PB: predicated region body
PF: predicated region fallthrough
CT: control target
= control target key end

     0   :  { %s34_s0 = inlined_call_operand.vmem [shape: f32[16], index: 0, kind: input, shape index: {}]   ;;  %s35_s1 = inlined_call_operand.vmem [shape: f32[16], index: 1, kind: input, shape index: {}]   ;;  %s36_s2 = inlined_call_operand.vmem [shape: f32[16], index: 2, kind: output, shape index: {}]  }
   0x1   :  { %v3_v0 = vld [vmem:[%s34_s0] sm:$0x1] }
   0x2   :  { %v4_v1 = vld [vmem:[%s35_s1] sm:$0x1] }
   0x3   :  { %v7_v2 = vmul.f32 %v4_v1, %v3_v0 }
   0x5   :  { %9 = vst [vmem:[%s36_s2] sm:$0x1] %v7_v2 }

// kernel: tile.53
= control target key start
LH: loop header
LB: loop body
LE: loop exit
PB: predicated region body
PF: predicated region fallthrough
CT: control target
= control target key end

     0   :  { %s22_s0 = inlined_call_operand.vmem [shape: f32[16], index: 0, kind: input, shape index: {}]   ;;  %s23_s1 = inlined_call_operand.vmem [shape: f32[8,16], index: 1, kind: output, shape index: {}]  }
   0x1   :  { %v4_v0 = vld [vmem:[%s22_s0] ss:$0 sm:$0xff] }
   0x2   :  { %5 = vst [vmem:[%s23_s1] sm:$0xff] %v4_v0 }

// kernel: tile.54
= control target key start
LH: loop header
LB: loop body
LE: loop exit
PB: predicated region body
PF: predicated region fallthrough
CT: control target
= control target key end

     0   :  { %s67_s10 = smov 112   ;;  %s68_s11 = smov 80   ;;  %vm3_vm0 = vcmask 130048   ;;  %vm9_vm1 = vcmask 1048448   ;;  %vm15_vm2 = vcmask 917248   ;;  %vm21_vm3 = vcmask 786048   ;;  %s111_s0 = inlined_call_operand.vmem [shape: f32[8,16], index: 0, kind: input, shape index: {}]   ;;  %s112_s1 = inlined_call_operand.vmem [shape: f32[1,128], index: 1, kind: output, shape index: {}]  }
   0x1   :  { %v53_v0 = vld [vmem:[%s111_s0 + $0x7] sm:$0x1]   ;;  %v55_v1 = vld [vmem:[%s111_s0 + $0x5] sm:$0x1]   ;;  %v54_v2 = vld [vmem:[%s111_s0 + $0x6] sm:$0x1]  }
   0x2   :  { %7 = vrot.lane.b32.xlu0 %v53_v0, %s67_s10  ;;  %19 = vrot.lane.b32.xlu1 %v55_v1, %s68_s11  ;;  %v56_v3 = vld [vmem:[%s111_s0 + $0x4] sm:$0x1]   ;;  %v2_v4 = vld [vmem:[%s111_s0] sm:$0x1]   ;;  %s69_s18 = smov 96   ;;  %s70_s19 = smov 64  }
   0x3   :  { %4 = vst.msk [vmem:[#allocation0] sm:$0x1] %vm3_vm0, %v2_v4   ;;  %v57_v5 = vld [vmem:[%s111_s0 + $0x3] sm:$0x1]   ;;  %v58_v6 = vld [vmem:[%s111_s0 + $0x2] sm:$0x1]  }
   0x4   :  { %s71_s24 = smov 48   ;;  %s72_s25 = smov 32   ;;  %v59_v7 = vld [vmem:[%s111_s0 + $0x1] sm:$0x1]   ;;  %vm27_vm4 = vcmask 654848   ;;  %vm33_vm5 = vcmask 523648  }
   0x5   :  { %s73_s0 = smov 16   ;;  %vm39_vm6 = vcmask 392448   ;;  %vm45_vm7 = vcmask 261248  }
   0x6   :  { %13 = vrot.lane.b32.xlu0 %v54_v2, %s69_s18  ;;  %25 = vrot.lane.b32.xlu1 %v56_v3, %s70_s19 }
   0xa   :  { %31 = vrot.lane.b32.xlu0 %v57_v5, %s71_s24  ;;  %37 = vrot.lane.b32.xlu1 %v58_v6, %s72_s25 }
   0xe   :  { %43 = vrot.lane.b32.xlu0 %v59_v7, %s73_s0 }
  0x74   :  { %v8_v8 = vpop.permute.xlu0 %7   ;;  %v20_v9 = vpop.permute.xlu1 %19  }
  0x75   :  { %10 = vst.msk [vmem:[#allocation0] sm:$0x1] %vm9_vm1, %v8_v8  }
  0x78   :  { %v14_v10 = vpop.permute.xlu0 %13   ;;  %v26_v11 = vpop.permute.xlu1 %25  }
  0x79   :  { %16 = vst.msk [vmem:[#allocation0] sm:$0x1] %vm15_vm2, %v14_v10  }
  0x7a   :  { %22 = vst.msk [vmem:[#allocation0] sm:$0x1] %vm21_vm3, %v20_v9  }
  0x7b   :  { %28 = vst.msk [vmem:[#allocation0] sm:$0x1] %vm27_vm4, %v26_v11  }
  0x7c   :  { %v32_v12 = vpop.permute.xlu0 %31   ;;  %v38_v13 = vpop.permute.xlu1 %37  }
  0x7d   :  { %34 = vst.msk [vmem:[#allocation0] sm:$0x1] %vm33_vm5, %v32_v12  }
  0x7e   :  { %40 = vst.msk [vmem:[#allocation0] sm:$0x1] %vm39_vm6, %v38_v13  }
  0x80   :  { %v44_v14 = vpop.permute.xlu0 %43  }
  0x81   :  { %46 = vst.msk [vmem:[#allocation0] sm:$0x1] %vm45_vm7, %v44_v14  }
  0x88   :  { %v50_v15 = vld [vmem:[#allocation0] sm:$0x1] }
  0x89   :  { %52 = vst [vmem:[%s112_s1] sm:$0x1] %v50_v15 }

// kernel: frame_predictor_forward.14
= control target key start
LH: loop header
LB: loop body
LE: loop exit
PB: predicated region body
PF: predicated region fallthrough
CT: control target
= control target key end

     0   :  { %s871_s15 = smov 0   ;;  %s873_s16 = smov 0   ;;  %s986_s0 = inlined_call_operand.vmem [shape: bf16[1,128,128], index: 0, kind: input, shape index: {}]   ;;  %s987_s1 = inlined_call_operand.vmem [shape: bf16[1,128,16], index: 1, kind: input, shape index: {}]   ;;  %s988_s2 = inlined_call_operand.vmem [shape: f32[1,16], index: 2, kind: input, shape index: {}]   ;;  %s989_s3 = inlined_call_operand.vmem [shape: bf16[1,128,16], index: 3, kind: output, shape index: {0}]   ;;  %s990_s4 = inlined_call_operand.vmem [shape: f32[1,2,2,16], index: 4, kind: output, shape index: {1}]  }
   0x1   :  { %s875_s17 = smov 0  }
   0x2 LB: > { %s24_s18 = sadd.s32 1, %s840_s16  ;;  %p697_p0 = scmp.ge.s32.totalorder %s844_s17, 1  ;;  %s844_s17 = sphi %s875_s17, %s15_s17   ;;  %s840_s16 = sphi %s873_s16, %s992_s16   ;;  %s836_s15 = sphi %s871_s15, %s991_s15  }
   0x3   : > { %p25_p1 = scmp.ge.s32.totalorder %s24_s18, 2  ;;  %p198_p2 = scmp.lt.s32.totalorder %s844_s17, 3 }
   0x5   : > { %s994_s18 = smov (%p25_p1, %s24_s18), 0  ;;  %p199_p3 = pnand %p697_p0, %p198_p2 }
   0x6   : > { %v810_v0 = vld [vmem:[%s987_s1] sm:$0xff] (!%p199_p3)   ;;  %s698_s21 = sshll.u32 (!%p199_p3), %s836_s15, 3  ;;  %v811_v1 = vld [vmem:[%s987_s1 + $0x8] sm:$0xff] (!%p199_p3)   ;;  %v812_v2 = vld [vmem:[%s987_s1 + $0x10] sm:$0xff] (!%p199_p3)   ;;  %vm479_vm0 = vcmask (!%p199_p3), 125952   ;;  %vm488_vm1 = vcmask (!%p199_p3), 130048  }
   0x7   : > { %202 = sbr.rel (%p199_p3) target bundleno = 287 (0x11f), region = 32  ;;  %p248_p4 = scmp.lt.s32.totalorder (!%p199_p3), %s698_s21, 15  ;;  %746 = vmatprep.subr.bf16.mxu0 (!%p199_p3), %v810_v0  ;;  %770 = vmatprep.subr.bf16.mxu1 (!%p199_p3), %v810_v0  ;;  %v813_v3 = vld [vmem:[%s987_s1 + $0x18] sm:$0xff] (!%p199_p3)   ;;  %v814_v6 = vld [vmem:[%s987_s1 + $0x20] sm:$0xff] (!%p199_p3)   ;;  %v815_v7 = vld [vmem:[%s987_s1 + $0x28] sm:$0xff] (!%p199_p3)   ;;  %vm539_vm2 = vcmask (!%p199_p3), 1040384  }
   0x8   : > { %747 = vmatpush3.bf16.msra.mxu0 (!%p199_p3), %v810_v0  ;;  %778 = vmatpush3.bf16.msra.mxu1 (!%p199_p3), %v810_v0  ;;  %v816_v8 = vld [vmem:[%s987_s1 + $0x30] sm:$0xff] (!%p199_p3)   ;;  %v817_v9 = vld [vmem:[%s987_s1 + $0x38] sm:$0xff] (!%p199_p3)   ;;  %v703_v12 = vld [vmem:[%s988_s2] ss:$0 sm:$0xff] (!%p199_p3)  ;;  %p272_p5 = scmp.lt.s32.totalorder (!%p199_p3), %s836_s15, 1  ;;  %vm541_vm3 = vcmask (!%p199_p3), 123904  }
   0x9   : > { %748 = vmatprep.subr.bf16.mxu0 (!%p199_p3), %v811_v1  ;;  %771 = vmatprep.subr.bf16.mxu1 (!%p199_p3), %v811_v1 }
   0xc   : > { %749 = vmatpush3.bf16.msra.mxu0 (!%p199_p3), %v811_v1  ;;  %779 = vmatpush3.bf16.msra.mxu1 (!%p199_p3), %v811_v1 }
   0xd   : > { %750 = vmatprep.subr.bf16.mxu0 (!%p199_p3), %v812_v2  ;;  %772 = vmatprep.subr.bf16.mxu1 (!%p199_p3), %v812_v2 }
   0xe   : > { %s996_s21 = smov (!%p248_p4, %s698_s21), 15  ;;  %s998_s15 = smov (!%p272_p5, %s836_s15), 1 }
   0xf   : > { %s699_s26 = sshll.u32 %s996_s21, 2  ;;  %s702_s21 = sshll.u32 %s998_s15, 1 }
  0x10   : > { %s909_s29 = scalar_lea.vmem %s986_s0, %s699_s26  ;;  %751 = vmatpush3.bf16.msra.mxu0 %v812_v2  ;;  %780 = vmatpush3.bf16.msra.mxu1 %v812_v2  ;;  %s938_s23 = scalar_lea.vmem %s989_s3, %s699_s26 }
  0x11   : > { %v818_v4 = vld [vmem:[%s909_s29] sm:$0xff]   ;;  %v820_v5 = vld [vmem:[%s909_s29 + $0x10] sm:$0xff]   ;;  %752 = vmatprep.subr.bf16.mxu0 %v813_v3  ;;  %773 = vmatprep.subr.bf16.mxu1 %v813_v3  ;;  %v819_v10 = vld [vmem:[%s909_s29 + $0x8] sm:$0xff]   ;;  %s277_s26 = scalar_lea.vmem %s990_s4, %s702_s21 }
  0x12   : > { %762 = vmatprep.mubr.bf16.mxu0 %v818_v4  ;;  %766 = vmatprep.mubr.bf16.mxu1 %v820_v5  ;;  %v821_v11 = vld [vmem:[%s909_s29 + $0x18] sm:$0xff]  }
  0x14   : > { %753 = vmatpush3.bf16.msra.mxu0 %v813_v3  ;;  %781 = vmatpush3.bf16.msra.mxu1 %v813_v3 }
  0x15   : > { %754 = vmatprep.subr.bf16.mxu0 %v814_v6  ;;  %774 = vmatprep.subr.bf16.mxu1 %v814_v6 }
  0x18   : > { %755 = vmatpush3.bf16.msra.mxu0 %v814_v6  ;;  %782 = vmatpush3.bf16.msra.mxu1 %v814_v6 }
  0x19   : > { %756 = vmatprep.subr.bf16.mxu0 %v815_v7  ;;  %775 = vmatprep.subr.bf16.mxu1 %v815_v7 }
  0x1c   : > { %757 = vmatpush3.bf16.msra.mxu0 %v815_v7  ;;  %783 = vmatpush3.bf16.msra.mxu1 %v815_v7 }
  0x1d   : > { %758 = vmatprep.subr.bf16.mxu0 %v816_v8  ;;  %776 = vmatprep.subr.bf16.mxu1 %v816_v8 }
  0x20   : > { %759 = vmatpush3.bf16.msra.mxu0 %v816_v8  ;;  %784 = vmatpush3.bf16.msra.mxu1 %v816_v8 }
  0x21   : > { %760 = vmatprep.subr.bf16.mxu0 %v817_v9  ;;  %777 = vmatprep.subr.bf16.mxu1 %v817_v9 }
  0x24   : > { %761 = vmatpush3.bf16.msra.mxu0 %v817_v9  ;;  %785 = vmatpush3.bf16.msra.mxu1 %v817_v9 }
  0x27   : > { %763 = vmatmul.mubr.bf16.vlgmr.msra.gmra.mrb[0].mxu0 %v819_v10  ;;  %767 = vmatmul.mubr.bf16.vlgmr.msra.gmra.mrb[0].mxu1 %v821_v11 }
  0xfa   : > { %v764_v13 = vpop.f32.mrb[0].mxu0  ;;  %v768_v14 = vpop.f32.mrb[0].mxu1 }
  0xfb   : > { %v425_v15 = vadd.f32 %v764_v13, %v703_v12  ;;  %v416_v16 = vpop.f32.mrb[1].mxu0  ;;  %v432_v17 = vpop.f32.mrb[1].mxu1  ;;  %v441_v24 = vadd.f32 %v768_v14, %v703_v12 }
  0xfc   : > { %v417_v18 = vadd.f32 %v703_v12, %v416_v16  ;;  %v765_v19 = vpop.f32.mrb[2].mxu0  ;;  %v769_v20 = vpop.f32.mrb[2].mxu1  ;;  %v433_v29 = vadd.f32 %v703_v12, %v432_v17 }
  0xfd   : > { %v728_v21 = vpack.c.bf16 %v425_v15, %v425_v15  ;;  %v428_v22 = vadd.f32 %v765_v19, %v703_v12  ;;  %v419_v23 = vpop.f32.mrb[3].mxu0  ;;  %v435_v25 = vpop.f32.mrb[3].mxu1  ;;  %v512_v30 = vmul.f32 %v425_v15, %v425_v15  ;;  %v492_v36 = vsel %vm488_vm1, %v425_v15, 0.0 }
  0xfe   : > { %v726_v26 = vpack.c.bf16 %v417_v18, %v417_v18  ;;  %v510_v27 = vmul.f32 %v417_v18, %v417_v18  ;;  %v420_v28 = vadd.f32 %v703_v12, %v419_v23  ;;  %v489_v32 = vsel %vm488_vm1, %v417_v18, 0.0 }
  0xff   : > { %482 = vst.msk [vmem:[%s938_s23 + $0x8] sm:$0xf] %vm479_vm0, %v728_v21  ;;  %v729_v31 = vpack.c.bf16 %v428_v22, %v428_v22  ;;  %v732_v38 = vpack.c.bf16 %v441_v24, %v441_v24  ;;  %v513_v40 = vmul.f32 %v428_v22, %v428_v22  ;;  %v730_v42 = vpack.c.bf16 %v433_v29, %v433_v29 }
 0x100   : > { %480 = vst.msk [vmem:[%s938_s23] sm:$0xf] %vm479_vm0, %v726_v26  ;;  %v727_v33 = vpack.c.bf16 %v420_v28, %v420_v28  ;;  %v490_v34 = vsel %vm488_vm1, %v420_v28, 0.0  ;;  %v511_v35 = vmul.f32 %v420_v28, %v420_v28  ;;  %v518_v39 = vsel %vm488_vm1, %v510_v27, 0.0 }
 0x101   : > { %483 = vst.msk [vmem:[%s938_s23 + $0xc] sm:$0xf] %vm479_vm0, %v729_v31  ;;  %v491_v37 = vadd.f32 %v490_v34, %v489_v32  ;;  %486 = vst.msk [vmem:[%s938_s23 + $0x18] sm:$0xf] %vm479_vm0, %v732_v38  ;;  %v514_v45 = vmul.f32 %v433_v29, %v433_v29  ;;  %v444_v46 = vadd.f32 %v769_v20, %v703_v12  ;;  %v521_v47 = vsel %vm488_vm1, %v512_v30, 0.0 }
 0x102   : > { %481 = vst.msk [vmem:[%s938_s23 + $0x4] sm:$0xf] %vm479_vm0, %v727_v33  ;;  %v519_v41 = vsel %vm488_vm1, %v511_v35, 0.0  ;;  %v494_v48 = vsel %vm488_vm1, %v428_v22, 0.0  ;;  %484 = vst.msk [vmem:[%s938_s23 + $0x10] sm:$0xf] %vm479_vm0, %v730_v42  ;;  %v436_v50 = vadd.f32 %v703_v12, %v435_v25  ;;  %v516_v60 = vmul.f32 %v441_v24, %v441_v24 }
 0x103   : > { %v493_v43 = vadd.f32 %v492_v36, %v491_v37  ;;  %v520_v44 = vadd.f32 %v519_v41, %v518_v39  ;;  %v496_v49 = vsel %vm488_vm1, %v433_v29, 0.0  ;;  %v733_v53 = vpack.c.bf16 %v444_v46, %v444_v46 }
 0x104   : > { %v523_v54 = vsel %vm488_vm1, %v513_v40, 0.0  ;;  %v525_v55 = vsel %vm488_vm1, %v514_v45, 0.0  ;;  %v731_v56 = vpack.c.bf16 %v436_v50, %v436_v50  ;;  %v515_v59 = vmul.f32 %v436_v50, %v436_v50 }
 0x105   : > { %v522_v51 = vadd.f32 %v521_v47, %v520_v44  ;;  %v495_v52 = vadd.f32 %v494_v48, %v493_v43  ;;  %487 = vst.msk [vmem:[%s938_s23 + $0x1c] sm:$0xf] %vm479_vm0, %v733_v53  ;;  %v498_v61 = vsel %vm488_vm1, %v436_v50, 0.0  ;;  %v500_v0 = vsel %vm488_vm1, %v441_v24, 0.0 }
 0x106   : > { %485 = vst.msk [vmem:[%s938_s23 + $0x14] sm:$0xf] %vm479_vm0, %v731_v56  ;;  %v517_v1 = vmul.f32 %v444_v46, %v444_v46  ;;  %v527_v2 = vsel %vm488_vm1, %v515_v59, 0.0  ;;  %v529_v5 = vsel %vm488_vm1, %v516_v60, 0.0  ;;  %v502_v6 = vsel %vm488_vm1, %v444_v46, 0.0 }
 0x107   : > { %v497_v57 = vadd.f32 %v496_v49, %v495_v52  ;;  %v524_v58 = vadd.f32 %v523_v54, %v522_v51 }
 0x108   : > { %v531_v9 = vsel %vm488_vm1, %v517_v1, 0.0 }
 0x109   : > { %v526_v62 = vadd.f32 %v525_v55, %v524_v58  ;;  %v499_v63 = vadd.f32 %v498_v61, %v497_v57 }
 0x10b   : > { %v501_v3 = vadd.f32 %v500_v0, %v499_v63  ;;  %v528_v4 = vadd.f32 %v527_v2, %v526_v62 }
 0x10d   : > { %v503_v7 = vadd.f32 %v502_v6, %v501_v3  ;;  %v530_v8 = vadd.f32 %v529_v5, %v528_v4 }
 0x10f   : > { %v504_v10 = vrot.slane %v503_v7, 4  ;;  %v532_v11 = vadd.f32 %v531_v9, %v530_v8 }
 0x111   : > { %v505_v12 = vadd.f32 %v504_v10, %v503_v7  ;;  %v533_v13 = vrot.slane %v532_v11, 4 }
 0x113   : > { %v506_v14 = vrot.slane %v505_v12, 2  ;;  %v534_v15 = vadd.f32 %v533_v13, %v532_v11 }
 0x115   : > { %v507_v16 = vadd.f32 %v506_v14, %v505_v12  ;;  %v535_v17 = vrot.slane %v534_v15, 2 }
 0x117   : > { %v508_v18 = vrot.slane %v507_v16, 1  ;;  %v536_v19 = vadd.f32 %v535_v17, %v534_v15 }
 0x119   : > { %v537_v20 = vrot.slane %v536_v19, 1  ;;  %v509_v21 = vadd.f32 %v508_v18, %v507_v16 }
 0x11b   : > { %v538_v22 = vadd.f32 %v537_v20, %v536_v19 }
 0x11d   : > { %v540_v23 = vsel %vm539_vm2, %v509_v21, %v538_v22 }
 0x11e   : > { %542 = vst.msk [vmem:[%s277_s26] sm:$0x3] %vm541_vm3, %v540_v23 }
 0x11f PF: > { %s15_s17 = sadd.s32 1, %s844_s17   ;;  %s991_s15 = smov %s840_s16 }
 0x120   : > { %p12_p6 = scmp.ge.s32.totalorder %s15_s17, 4   ;;  %s992_s16 = smov %s994_s18 }
 0x122   :  { %14 = sbr.rel (!%p12_p6) target bundleno = 2 (0x2), region = 77 }

// kernel: frame_predictor_forward.15
= control target key start
LH: loop header
LB: loop body
LE: loop exit
PB: predicated region body
PF: predicated region fallthrough
CT: control target
= control target key end

     0   :  { %s89_s0 = inlined_call_operand.vmem [shape: bf16[16,128], index: 0, kind: input, shape index: {}]   ;;  %s90_s1 = inlined_call_operand.vmem [shape: f32[1,128], index: 1, kind: input, shape index: {}]   ;;  %s91_s2 = inlined_call_operand.vmem [shape: f32[1,128], index: 2, kind: input, shape index: {}]   ;;  %s92_s3 = inlined_call_operand.vmem [shape: f32[16,128], index: 3, kind: output, shape index: {}]  }
   0x1   :  { %v47_v0 = vld [vmem:[%s89_s0] sm:$0xff]  }
   0x2   :  { %v44_v1 = vld [vmem:[%s90_s1] ss:$0 sm:$0xff]  ;;  %v48_v2 = vunpack.c.l.bf16 %v47_v0  ;;  %v49_v3 = vunpack.c.h.bf16 %v47_v0 }
   0x3   :  { %v45_v4 = vld [vmem:[%s91_s2] ss:$0 sm:$0xff] }
   0x4   :  { %v25_v5 = vmul.f32 %v48_v2, %v44_v1  ;;  %v26_v6 = vmul.f32 %v49_v3, %v44_v1 }
   0x6   :  { %v34_v7 = vadd.f32 %v45_v4, %v25_v5  ;;  %v35_v8 = vadd.f32 %v45_v4, %v26_v6 }
   0x8   :  { %50 = vtanh.f32 %v34_v7 }
   0x9   :  { %52 = vtanh.f32 %v35_v8 }
  0x12   :  { %v51_v9 = vpop.eup %50 }
  0x13   :  { %v53_v10 = vpop.eup %52  ;;  %38 = vst [vmem:[%s92_s3] sm:$0xff] %v51_v9 }
  0x14   :  { %39 = vst [vmem:[%s92_s3 + $0x8] sm:$0xff] %v53_v10 }

// kernel: frame_predictor_forward.16
= control target key start
LH: loop header
LB: loop body
LE: loop exit
PB: predicated region body
PF: predicated region fallthrough
CT: control target
= control target key end

     0   :  { %s1634_s1 = inlined_call_operand.vmem [shape: bf16[256,1024], index: 1, kind: input, shape index: {}]   ;;  %s1635_s0 = inlined_call_operand.vmem [shape: bf16[16,256], index: 0, kind: input, shape index: {}]   ;;  %s1636_s2 = inlined_call_operand.vmem [shape: f32[1,1024], index: 2, kind: input, shape index: {}]   ;;  %s1637_s3 = inlined_call_operand.vmem [shape: f32[16,1024], index: 3, kind: output, shape index: {}]  }
   0x1   :  { %v16_v0 = vld [vmem:[%s1634_s1] sm:$0xff]  ;;  %v17_v2 = vld [vmem:[%s1634_s1 + $0x8] sm:$0xff] }
   0x2   :  { %v20_v1 = vld [vmem:[%s1634_s1 + $0x20] sm:$0xff]  ;;  %v21_v4 = vld [vmem:[%s1634_s1 + $0x28] sm:$0xff] }
   0x3   :  { %v1031_v3 = vcombine.high %v16_v0, %v20_v1  ;;  %v1030_v5 = vcombine.low %v16_v0, %v20_v1  ;;  %v24_v6 = vld [vmem:[%s1634_s1 + $0x40] sm:$0xff]  ;;  %v1033_v8 = vcombine.high %v17_v2, %v21_v4  ;;  %v1032_v9 = vcombine.low %v17_v2, %v21_v4  ;;  %v25_v11 = vld [vmem:[%s1634_s1 + $0x48] sm:$0xff] }
   0x4   :  { %v28_v7 = vld [vmem:[%s1634_s1 + $0x60] sm:$0xff]  ;;  %v29_v12 = vld [vmem:[%s1634_s1 + $0x68] sm:$0xff] }
   0x5   :  { %v1039_v10 = vcombine.high %v24_v6, %v28_v7  ;;  %v32_v13 = vld [vmem:[%s1634_s1 + $0x80] sm:$0xff]  ;;  %836 = vmatprep.subr.bf16.mxu0 %v1031_v3  ;;  %v1041_v14 = vcombine.high %v25_v11, %v29_v12  ;;  %v33_v16 = vld [vmem:[%s1634_s1 + $0x88] sm:$0xff]  ;;  %879 = vmatprep.subr.bf16.mxu1 %v1033_v8  ;;  %v1038_v18 = vcombine.low %v24_v6, %v28_v7 }
   0x6   :  { %v36_v15 = vld [vmem:[%s1634_s1 + $0xa0] sm:$0xff]  ;;  %v37_v17 = vld [vmem:[%s1634_s1 + $0xa8] sm:$0xff]  ;;  %837 = vmatpush1.bf16.msra.mxu0 %v1030_v5  ;;  %880 = vmatpush1.bf16.msra.mxu1 %v1032_v9  ;;  %v1040_v19 = vcombine.low %v25_v11, %v29_v12 }
   0x7   :  { %838 = vmatprep.subr.bf16.mxu0 %v1039_v10  ;;  %v1047_v20 = vcombine.high %v32_v13, %v36_v15  ;;  %881 = vmatprep.subr.bf16.mxu1 %v1041_v14  ;;  %v1049_v21 = vcombine.high %v33_v16, %v37_v17  ;;  %v40_v22 = vld [vmem:[%s1634_s1 + $0xc0] sm:$0xff]  ;;  %v41_v24 = vld [vmem:[%s1634_s1 + $0xc8] sm:$0xff]  ;;  %v1046_v26 = vcombine.low %v32_v13, %v36_v15 }
   0x8   :  { %v44_v23 = vld [vmem:[%s1634_s1 + $0xe0] sm:$0xff]  ;;  %v45_v25 = vld [vmem:[%s1634_s1 + $0xe8] sm:$0xff]  ;;  %v1048_v27 = vcombine.low %v33_v16, %v37_v17 }
   0x9   :  { %v1055_v28 = vcombine.high %v40_v22, %v44_v23  ;;  %v1057_v29 = vcombine.high %v41_v24, %v45_v25  ;;  %v48_v30 = vld [vmem:[%s1634_s1 + $0x100] sm:$0xff]  ;;  %v49_v32 = vld [vmem:[%s1634_s1 + $0x108] sm:$0xff]  ;;  %v1054_v34 = vcombine.low %v40_v22, %v44_v23  ;;  %v1056_v35 = vcombine.low %v41_v24, %v45_v25 }
   0xa   :  { %839 = vmatpush1.bf16.msra.mxu0 %v1038_v18  ;;  %882 = vmatpush1.bf16.msra.mxu1 %v1040_v19  ;;  %v52_v31 = vld [vmem:[%s1634_s1 + $0x120] sm:$0xff]  ;;  %v53_v33 = vld [vmem:[%s1634_s1 + $0x128] sm:$0xff] }
   0xb   :  { %840 = vmatprep.subr.bf16.mxu0 %v1047_v20  ;;  %883 = vmatprep.subr.bf16.mxu1 %v1049_v21  ;;  %v1063_v36 = vcombine.high %v48_v30, %v52_v31  ;;  %v1065_v37 = vcombine.high %v49_v32, %v53_v33  ;;  %v56_v38 = vld [vmem:[%s1634_s1 + $0x140] sm:$0xff]  ;;  %v57_v40 = vld [vmem:[%s1634_s1 + $0x148] sm:$0xff]  ;;  %v1062_v42 = vcombine.low %v48_v30, %v52_v31 }
   0xc   :  { %v60_v39 = vld [vmem:[%s1634_s1 + $0x160] sm:$0xff]  ;;  %v61_v41 = vld [vmem:[%s1634_s1 + $0x168] sm:$0xff]  ;;  %v1064_v43 = vcombine.low %v49_v32, %v53_v33 }
   0xd   :  { %v1071_v44 = vcombine.high %v56_v38, %v60_v39  ;;  %v1073_v45 = vcombine.high %v57_v40, %v61_v41  ;;  %v64_v46 = vld [vmem:[%s1634_s1 + $0x180] sm:$0xff]  ;;  %v65_v48 = vld [vmem:[%s1634_s1 + $0x188] sm:$0xff]  ;;  %v1070_v50 = vcombine.low %v56_v38, %v60_v39  ;;  %v1072_v51 = vcombine.low %v57_v40, %v61_v41 }
   0xe   :  { %841 = vmatpush1.bf16.msra.mxu0 %v1046_v26  ;;  %884 = vmatpush1.bf16.msra.mxu1 %v1048_v27  ;;  %v68_v47 = vld [vmem:[%s1634_s1 + $0x1a0] sm:$0xff]  ;;  %v69_v49 = vld [vmem:[%s1634_s1 + $0x1a8] sm:$0xff] }
   0xf   :  { %842 = vmatprep.subr.bf16.mxu0 %v1055_v28  ;;  %885 = vmatprep.subr.bf16.mxu1 %v1057_v29  ;;  %v1079_v52 = vcombine.high %v64_v46, %v68_v47  ;;  %v1081_v53 = vcombine.high %v65_v48, %v69_v49  ;;  %v72_v54 = vld [vmem:[%s1634_s1 + $0x1c0] sm:$0xff]  ;;  %v73_v57 = vld [vmem:[%s1634_s1 + $0x1c8] sm:$0xff]  ;;  %v1078_v59 = vcombine.low %v64_v46, %v68_v47 }
  0x10   :  { %v76_v55 = vld [vmem:[%s1634_s1 + $0x1e0] sm:$0xff]  ;;  %v77_v58 = vld [vmem:[%s1634_s1 + $0x1e8] sm:$0xff]  ;;  %v1080_v60 = vcombine.low %v65_v48, %v69_v49 }
  0x11   :  { %v1274_v56 = vld [vmem:[%s1635_s0 + $0x4] ss:$8 sps:$4 sm:$0xff]   ;;  %v1087_v61 = vcombine.high %v72_v54, %v76_v55  ;;  %v1089_v62 = vcombine.high %v73_v57, %v77_v58  ;;  %v1086_v3 = vcombine.low %v72_v54, %v76_v55  ;;  %v1088_v4 = vcombine.low %v73_v57, %v77_v58 }
  0x12   :  { %843 = vmatpush1.bf16.msra.mxu0 %v1054_v34  ;;  %886 = vmatpush1.bf16.msra.mxu1 %v1056_v35  ;;  %v80_v63 = vld [vmem:[%s1634_s1 + $0x200] sm:$0xff]  ;;  %v81_v1 = vld [vmem:[%s1634_s1 + $0x208] sm:$0xff] }
  0x13   :  { %844 = vmatprep.subr.bf16.mxu0 %v1063_v36  ;;  %887 = vmatprep.subr.bf16.mxu1 %v1065_v37  ;;  %v84_v0 = vld [vmem:[%s1634_s1 + $0x220] sm:$0xff]  ;;  %v85_v2 = vld [vmem:[%s1634_s1 + $0x228] sm:$0xff] }
  0x14   :  { %868 = vmatprep.mubr.bf16.mxu0 %v1274_v56  ;;  %911 = vmatprep.mubr.bf16.mxu1 %v1274_v56  ;;  %v1095_v5 = vcombine.high %v80_v63, %v84_v0  ;;  %v1097_v6 = vcombine.high %v81_v1, %v85_v2  ;;  %v88_v7 = vld [vmem:[%s1634_s1 + $0x240] sm:$0xff]  ;;  %v89_v9 = vld [vmem:[%s1634_s1 + $0x248] sm:$0xff]  ;;  %v1094_v11 = vcombine.low %v80_v63, %v84_v0  ;;  %v18_v0 = vld [vmem:[%s1634_s1 + $0x10] sm:$0xff] }
  0x15   :  { %v92_v8 = vld [vmem:[%s1634_s1 + $0x260] sm:$0xff]  ;;  %v93_v10 = vld [vmem:[%s1634_s1 + $0x268] sm:$0xff]  ;;  %v1096_v12 = vcombine.low %v81_v1, %v85_v2  ;;  %v22_v1 = vld [vmem:[%s1634_s1 + $0x30] sm:$0xff] }
  0x16   :  { %845 = vmatpush1.bf16.msra.mxu0 %v1062_v42  ;;  %888 = vmatpush1.bf16.msra.mxu1 %v1064_v43  ;;  %v1103_v13 = vcombine.high %v88_v7, %v92_v8  ;;  %v1105_v14 = vcombine.high %v89_v9, %v93_v10  ;;  %v96_v15 = vld [vmem:[%s1634_s1 + $0x280] sm:$0xff]  ;;  %v97_v17 = vld [vmem:[%s1634_s1 + $0x288] sm:$0xff]  ;;  %v1102_v19 = vcombine.low %v88_v7, %v92_v8  ;;  %v19_v2 = vld [vmem:[%s1634_s1 + $0x18] sm:$0xff] }
  0x17   :  { %846 = vmatprep.subr.bf16.mxu0 %v1071_v44  ;;  %889 = vmatprep.subr.bf16.mxu1 %v1073_v45  ;;  %v100_v16 = vld [vmem:[%s1634_s1 + $0x2a0] sm:$0xff]  ;;  %v101_v18 = vld [vmem:[%s1634_s1 + $0x2a8] sm:$0xff]  ;;  %v1104_v20 = vcombine.low %v89_v9, %v93_v10  ;;  %v26_v8 = vld [vmem:[%s1634_s1 + $0x50] sm:$0xff] }
  0x18   :  { %v1111_v21 = vcombine.high %v96_v15, %v100_v16  ;;  %v1113_v22 = vcombine.high %v97_v17, %v101_v18  ;;  %v104_v23 = vld [vmem:[%s1634_s1 + $0x2c0] sm:$0xff]  ;;  %v105_v25 = vld [vmem:[%s1634_s1 + $0x2c8] sm:$0xff]  ;;  %v1110_v27 = vcombine.low %v96_v15, %v100_v16  ;;  %v1112_v28 = vcombine.low %v97_v17, %v101_v18  ;;  %v30_v9 = vld [vmem:[%s1634_s1 + $0x70] sm:$0xff] }
  0x19   :  { %v108_v24 = vld [vmem:[%s1634_s1 + $0x2e0] sm:$0xff]  ;;  %v109_v26 = vld [vmem:[%s1634_s1 + $0x2e8] sm:$0xff]  ;;  %v1043_v15 = vcombine.high %v26_v8, %v30_v9  ;;  %v34_v17 = vld [vmem:[%s1634_s1 + $0x90] sm:$0xff] }
  0x1a   :  { %847 = vmatpush1.bf16.msra.mxu0 %v1070_v50  ;;  %890 = vmatpush1.bf16.msra.mxu1 %v1072_v51  ;;  %v1119_v29 = vcombine.high %v104_v23, %v108_v24  ;;  %v1121_v30 = vcombine.high %v105_v25, %v109_v26  ;;  %v112_v31 = vld [vmem:[%s1634_s1 + $0x300] sm:$0xff]  ;;  %v113_v33 = vld [vmem:[%s1634_s1 + $0x308] sm:$0xff]  ;;  %v1118_v35 = vcombine.low %v104_v23, %v108_v24  ;;  %v38_v18 = vld [vmem:[%s1634_s1 + $0xb0] sm:$0xff] }
  0x1b   :  { %848 = vmatprep.subr.bf16.mxu0 %v1079_v52  ;;  %891 = vmatprep.subr.bf16.mxu1 %v1081_v53  ;;  %v116_v32 = vld [vmem:[%s1634_s1 + $0x320] sm:$0xff]  ;;  %v117_v34 = vld [vmem:[%s1634_s1 + $0x328] sm:$0xff]  ;;  %v1120_v36 = vcombine.low %v105_v25, %v109_v26  ;;  %v1051_v23 = vcombine.high %v34_v17, %v38_v18  ;;  %v42_v25 = vld [vmem:[%s1634_s1 + $0xd0] sm:$0xff] }
  0x1c   :  { %v1127_v37 = vcombine.high %v112_v31, %v116_v32  ;;  %v1129_v38 = vcombine.high %v113_v33, %v117_v34  ;;  %v120_v39 = vld [vmem:[%s1634_s1 + $0x340] sm:$0xff]  ;;  %v121_v41 = vld [vmem:[%s1634_s1 + $0x348] sm:$0xff]  ;;  %v1126_v43 = vcombine.low %v112_v31, %v116_v32  ;;  %v1128_v44 = vcombine.low %v113_v33, %v117_v34  ;;  %v46_v26 = vld [vmem:[%s1634_s1 + $0xf0] sm:$0xff] }
  0x1d   :  { %v124_v40 = vld [vmem:[%s1634_s1 + $0x360] sm:$0xff]  ;;  %v125_v42 = vld [vmem:[%s1634_s1 + $0x368] sm:$0xff]  ;;  %v1059_v31 = vcombine.high %v42_v25, %v46_v26  ;;  %v50_v33 = vld [vmem:[%s1634_s1 + $0x110] sm:$0xff] }
  0x1e   :  { %849 = vmatpush1.bf16.msra.mxu0 %v1078_v59  ;;  %892 = vmatpush1.bf16.msra.mxu1 %v1080_v60  ;;  %v1135_v45 = vcombine.high %v120_v39, %v124_v40  ;;  %v1137_v46 = vcombine.high %v121_v41, %v125_v42  ;;  %v128_v47 = vld [vmem:[%s1634_s1 + $0x380] sm:$0xff]  ;;  %v129_v49 = vld [vmem:[%s1634_s1 + $0x388] sm:$0xff]  ;;  %v1134_v51 = vcombine.low %v120_v39, %v124_v40  ;;  %v54_v34 = vld [vmem:[%s1634_s1 + $0x130] sm:$0xff] }
  0x1f   :  { %850 = vmatprep.subr.bf16.mxu0 %v1087_v61  ;;  %893 = vmatprep.subr.bf16.mxu1 %v1089_v62  ;;  %v132_v48 = vld [vmem:[%s1634_s1 + $0x3a0] sm:$0xff]  ;;  %v133_v50 = vld [vmem:[%s1634_s1 + $0x3a8] sm:$0xff]  ;;  %v1136_v52 = vcombine.low %v121_v41, %v125_v42  ;;  %v58_v40 = vld [vmem:[%s1634_s1 + $0x150] sm:$0xff] }
  0x20   :  { %v1143_v53 = vcombine.high %v128_v47, %v132_v48  ;;  %v1145_v54 = vcombine.high %v129_v49, %v133_v50  ;;  %v136_v55 = vld [vmem:[%s1634_s1 + $0x3c0] sm:$0xff]  ;;  %v137_v58 = vld [vmem:[%s1634_s1 + $0x3c8] sm:$0xff]  ;;  %v1142_v60 = vcombine.low %v128_v47, %v132_v48  ;;  %v1144_v61 = vcombine.low %v129_v49, %v133_v50  ;;  %v62_v41 = vld [vmem:[%s1634_s1 + $0x170] sm:$0xff] }
  0x21   :  { %v140_v57 = vld [vmem:[%s1634_s1 + $0x3e0] sm:$0xff]  ;;  %v141_v59 = vld [vmem:[%s1634_s1 + $0x3e8] sm:$0xff]  ;;  %v59_v42 = vld [vmem:[%s1634_s1 + $0x158] sm:$0xff] }
  0x22   :  { %851 = vmatpush1.bf16.msra.mxu0 %v1086_v3  ;;  %894 = vmatpush1.bf16.msra.mxu1 %v1088_v4  ;;  %v1151_v62 = vcombine.high %v136_v55, %v140_v57  ;;  %v1153_v63 = vcombine.high %v137_v58, %v141_v59  ;;  %v23_v3 = vld [vmem:[%s1634_s1 + $0x38] sm:$0xff]  ;;  %v1150_v4 = vcombine.low %v136_v55, %v140_v57  ;;  %v1401_v10 = vld [vmem:[%s1635_s0] ss:$8 sps:$4 sm:$0xff]   ;;  %v66_v48 = vld [vmem:[%s1634_s1 + $0x190] sm:$0xff] }
  0x23   :  { %852 = vmatprep.subr.bf16.mxu0 %v1095_v5  ;;  %895 = vmatprep.subr.bf16.mxu1 %v1097_v6  ;;  %v1152_v5 = vcombine.low %v137_v58, %v141_v59  ;;  %v1035_v6 = vcombine.high %v18_v0, %v22_v1  ;;  %v1037_v7 = vcombine.high %v19_v2, %v23_v3  ;;  %v70_v49 = vld [vmem:[%s1634_s1 + $0x1b0] sm:$0xff]  ;;  %v67_v50 = vld [vmem:[%s1634_s1 + $0x198] sm:$0xff] }
  0x24   :  { %v74_v57 = vld [vmem:[%s1634_s1 + $0x1d0] sm:$0xff]  ;;  %v75_v59 = vld [vmem:[%s1634_s1 + $0x1d8] sm:$0xff] }
  0x25   :  { %v78_v58 = vld [vmem:[%s1634_s1 + $0x1f0] sm:$0xff] }
  0x26   :  { %853 = vmatpush1.bf16.msra.mxu0 %v1094_v11  ;;  %896 = vmatpush1.bf16.msra.mxu1 %v1096_v12  ;;  %v27_v11 = vld [vmem:[%s1634_s1 + $0x58] sm:$0xff] }
  0x27   :  { %854 = vmatprep.subr.bf16.mxu0 %v1103_v13  ;;  %897 = vmatprep.subr.bf16.mxu1 %v1105_v14  ;;  %v31_v12 = vld [vmem:[%s1634_s1 + $0x78] sm:$0xff]  ;;  %v1034_v13 = vcombine.low %v18_v0, %v22_v1  ;;  %v1036_v14 = vcombine.low %v19_v2, %v23_v3  ;;  %v82_v1 = vld [vmem:[%s1634_s1 + $0x210] sm:$0xff] }
  0x28   :  { %v1045_v16 = vcombine.high %v27_v11, %v31_v12  ;;  %v86_v2 = vld [vmem:[%s1634_s1 + $0x230] sm:$0xff]  ;;  %v83_v3 = vld [vmem:[%s1634_s1 + $0x218] sm:$0xff] }
  0x2a   :  { %855 = vmatpush1.bf16.msra.mxu0 %v1102_v19  ;;  %898 = vmatpush1.bf16.msra.mxu1 %v1104_v20  ;;  %v35_v19 = vld [vmem:[%s1634_s1 + $0x98] sm:$0xff] }
  0x2b   :  { %856 = vmatprep.subr.bf16.mxu0 %v1111_v21  ;;  %899 = vmatprep.subr.bf16.mxu1 %v1113_v22  ;;  %v39_v20 = vld [vmem:[%s1634_s1 + $0xb8] sm:$0xff]  ;;  %v1042_v21 = vcombine.low %v26_v8, %v30_v9  ;;  %v1044_v22 = vcombine.low %v27_v11, %v31_v12  ;;  %v90_v9 = vld [vmem:[%s1634_s1 + $0x250] sm:$0xff] }
  0x2c   :  { %v1053_v24 = vcombine.high %v35_v19, %v39_v20  ;;  %v94_v11 = vld [vmem:[%s1634_s1 + $0x270] sm:$0xff]  ;;  %v91_v12 = vld [vmem:[%s1634_s1 + $0x258] sm:$0xff] }
  0x2e   :  { %857 = vmatpush1.bf16.msra.mxu0 %v1110_v27  ;;  %900 = vmatpush1.bf16.msra.mxu1 %v1112_v28  ;;  %v43_v27 = vld [vmem:[%s1634_s1 + $0xd8] sm:$0xff] }
  0x2f   :  { %858 = vmatprep.subr.bf16.mxu0 %v1119_v29  ;;  %901 = vmatprep.subr.bf16.mxu1 %v1121_v30  ;;  %v47_v28 = vld [vmem:[%s1634_s1 + $0xf8] sm:$0xff]  ;;  %v1050_v29 = vcombine.low %v34_v17, %v38_v18  ;;  %v1052_v30 = vcombine.low %v35_v19, %v39_v20  ;;  %v98_v18 = vld [vmem:[%s1634_s1 + $0x290] sm:$0xff] }
  0x30   :  { %v1061_v32 = vcombine.high %v43_v27, %v47_v28  ;;  %v102_v19 = vld [vmem:[%s1634_s1 + $0x2b0] sm:$0xff]  ;;  %v99_v20 = vld [vmem:[%s1634_s1 + $0x298] sm:$0xff] }
  0x32   :  { %859 = vmatpush1.bf16.msra.mxu0 %v1118_v35  ;;  %902 = vmatpush1.bf16.msra.mxu1 %v1120_v36  ;;  %v55_v35 = vld [vmem:[%s1634_s1 + $0x138] sm:$0xff]  ;;  %v1058_v36 = vcombine.low %v42_v25, %v46_v26  ;;  %v106_v26 = vld [vmem:[%s1634_s1 + $0x2d0] sm:$0xff] }
  0x33   :  { %860 = vmatprep.subr.bf16.mxu0 %v1127_v37  ;;  %903 = vmatprep.subr.bf16.mxu1 %v1129_v38  ;;  %v1060_v37 = vcombine.low %v43_v27, %v47_v28  ;;  %v1067_v38 = vcombine.high %v50_v33, %v54_v34  ;;  %v110_v27 = vld [vmem:[%s1634_s1 + $0x2f0] sm:$0xff]  ;;  %v107_v28 = vld [vmem:[%s1634_s1 + $0x2d8] sm:$0xff] }
  0x36   :  { %861 = vmatpush1.bf16.msra.mxu0 %v1126_v43  ;;  %904 = vmatpush1.bf16.msra.mxu1 %v1128_v44  ;;  %v63_v43 = vld [vmem:[%s1634_s1 + $0x178] sm:$0xff]  ;;  %v1066_v44 = vcombine.low %v50_v33, %v54_v34  ;;  %v114_v34 = vld [vmem:[%s1634_s1 + $0x310] sm:$0xff] }
  0x37   :  { %862 = vmatprep.subr.bf16.mxu0 %v1135_v45  ;;  %905 = vmatprep.subr.bf16.mxu1 %v1137_v46  ;;  %v1075_v46 = vcombine.high %v58_v40, %v62_v41  ;;  %v1077_v47 = vcombine.high %v59_v42, %v63_v43 }
  0x3a   :  { %863 = vmatpush1.bf16.msra.mxu0 %v1134_v51  ;;  %906 = vmatpush1.bf16.msra.mxu1 %v1136_v52  ;;  %v71_v51 = vld [vmem:[%s1634_s1 + $0x1b8] sm:$0xff]  ;;  %v1074_v52 = vcombine.low %v58_v40, %v62_v41  ;;  %v122_v41 = vld [vmem:[%s1634_s1 + $0x350] sm:$0xff] }
  0x3b   :  { %864 = vmatprep.subr.bf16.mxu0 %v1143_v53  ;;  %907 = vmatprep.subr.bf16.mxu1 %v1145_v54  ;;  %v1076_v53 = vcombine.low %v59_v42, %v63_v43  ;;  %v1083_v54 = vcombine.high %v66_v48, %v70_v49  ;;  %v1085_v55 = vcombine.high %v67_v50, %v71_v51  ;;  %v126_v42 = vld [vmem:[%s1634_s1 + $0x370] sm:$0xff]  ;;  %v123_v43 = vld [vmem:[%s1634_s1 + $0x358] sm:$0xff] }
  0x3e   :  { %865 = vmatpush1.bf16.msra.mxu0 %v1142_v60  ;;  %908 = vmatpush1.bf16.msra.mxu1 %v1144_v61  ;;  %v79_v60 = vld [vmem:[%s1634_s1 + $0x1f8] sm:$0xff]  ;;  %v1082_v61 = vcombine.low %v66_v48, %v70_v49  ;;  %v130_v49 = vld [vmem:[%s1634_s1 + $0x390] sm:$0xff] }
  0x3f   :  { %866 = vmatprep.subr.bf16.mxu0 %v1151_v62  ;;  %909 = vmatprep.subr.bf16.mxu1 %v1153_v63  ;;  %v1084_v62 = vcombine.low %v67_v50, %v71_v51  ;;  %v1091_v63 = vcombine.high %v74_v57, %v78_v58  ;;  %v1093_v0 = vcombine.high %v75_v59, %v79_v60  ;;  %v134_v50 = vld [vmem:[%s1634_s1 + $0x3b0] sm:$0xff]  ;;  %v131_v51 = vld [vmem:[%s1634_s1 + $0x398] sm:$0xff] }
  0x42   :  { %867 = vmatpush1.bf16.msra.mxu0 %v1150_v4  ;;  %910 = vmatpush1.bf16.msra.mxu1 %v1152_v5  ;;  %v87_v4 = vld [vmem:[%s1634_s1 + $0x238] sm:$0xff]  ;;  %v1090_v5 = vcombine.low %v74_v57, %v78_v58  ;;  %v138_v58 = vld [vmem:[%s1634_s1 + $0x3d0] sm:$0xff] }
  0x43   :  { %922 = vmatprep.subr.bf16.mxu0 %v1035_v6  ;;  %965 = vmatprep.subr.bf16.mxu1 %v1037_v7  ;;  %v1092_v6 = vcombine.low %v75_v59, %v79_v60  ;;  %v1099_v7 = vcombine.high %v82_v1, %v86_v2  ;;  %v1101_v8 = vcombine.high %v83_v3, %v87_v4  ;;  %v142_v59 = vld [vmem:[%s1634_s1 + $0x3f0] sm:$0xff]  ;;  %v139_v60 = vld [vmem:[%s1634_s1 + $0x3d8] sm:$0xff] }
  0x45   :  { %869 = vmatmul.mubr.bf16.vlgmr.msra.gmra.mrb[0].mxu0 %v1401_v10  ;;  %912 = vmatmul.mubr.bf16.vlgmr.msra.gmra.mrb[0].mxu1 %v1401_v10 }
  0x46   :  { %923 = vmatpush1.bf16.msra.mxu0 %v1034_v13  ;;  %966 = vmatpush1.bf16.msra.mxu1 %v1036_v14  ;;  %v95_v13 = vld [vmem:[%s1634_s1 + $0x278] sm:$0xff]  ;;  %v1098_v14 = vcombine.low %v82_v1, %v86_v2  ;;  %v1154_v2 = vcombine.low %v138_v58, %v142_v59 }
  0x47   :  { %924 = vmatprep.subr.bf16.mxu0 %v1043_v15  ;;  %967 = vmatprep.subr.bf16.mxu1 %v1045_v16  ;;  %v1100_v15 = vcombine.low %v83_v3, %v87_v4  ;;  %v1107_v16 = vcombine.high %v90_v9, %v94_v11  ;;  %v1109_v17 = vcombine.high %v91_v12, %v95_v13  ;;  %v146_v4 = vlaneseq }
  0x48   :  { %954 = vmatprep.mubr.bf16.mxu0 %v1274_v56  ;;  %997 = vmatprep.mubr.bf16.mxu1 %v1274_v56  ;;  %v51_v56 = vld [vmem:[%s1634_s1 + $0x118] sm:$0xff] }
  0x49   :  { %v1069_v39 = vcombine.high %v51_v56, %v55_v35  ;;  %v1068_v45 = vcombine.low %v51_v56, %v55_v35  ;;  %v118_v56 = vld [vmem:[%s1634_s1 + $0x330] sm:$0xff]  ;;  %v115_v35 = vld [vmem:[%s1634_s1 + $0x318] sm:$0xff] }
  0x4a   :  { %925 = vmatpush1.bf16.msra.mxu0 %v1042_v21  ;;  %968 = vmatpush1.bf16.msra.mxu1 %v1044_v22  ;;  %v103_v21 = vld [vmem:[%s1634_s1 + $0x2b8] sm:$0xff]  ;;  %v1106_v22 = vcombine.low %v90_v9, %v94_v11 }
  0x4b   :  { %926 = vmatprep.subr.bf16.mxu0 %v1051_v23  ;;  %969 = vmatprep.subr.bf16.mxu1 %v1053_v24  ;;  %v1108_v23 = vcombine.low %v91_v12, %v95_v13  ;;  %v1115_v24 = vcombine.high %v98_v18, %v102_v19  ;;  %v1117_v25 = vcombine.high %v99_v20, %v103_v21 }
  0x4e   :  { %927 = vmatpush1.bf16.msra.mxu0 %v1050_v29  ;;  %970 = vmatpush1.bf16.msra.mxu1 %v1052_v30  ;;  %v111_v29 = vld [vmem:[%s1634_s1 + $0x2f8] sm:$0xff]  ;;  %v1114_v30 = vcombine.low %v98_v18, %v102_v19 }
  0x4f   :  { %928 = vmatprep.subr.bf16.mxu0 %v1059_v31  ;;  %971 = vmatprep.subr.bf16.mxu1 %v1061_v32  ;;  %v1116_v31 = vcombine.low %v99_v20, %v103_v21  ;;  %v1123_v32 = vcombine.high %v106_v26, %v110_v27  ;;  %v1125_v33 = vcombine.high %v107_v28, %v111_v29 }
  0x52   :  { %929 = vmatpush1.bf16.msra.mxu0 %v1058_v36  ;;  %972 = vmatpush1.bf16.msra.mxu1 %v1060_v37  ;;  %v119_v36 = vld [vmem:[%s1634_s1 + $0x338] sm:$0xff]  ;;  %v1122_v37 = vcombine.low %v106_v26, %v110_v27 }
  0x53   :  { %930 = vmatprep.subr.bf16.mxu0 %v1067_v38  ;;  %973 = vmatprep.subr.bf16.mxu1 %v1069_v39  ;;  %v1124_v38 = vcombine.low %v107_v28, %v111_v29  ;;  %v1131_v39 = vcombine.high %v114_v34, %v118_v56  ;;  %v1133_v40 = vcombine.high %v115_v35, %v119_v36 }
  0x56   :  { %931 = vmatpush1.bf16.msra.mxu0 %v1066_v44  ;;  %974 = vmatpush1.bf16.msra.mxu1 %v1068_v45  ;;  %v127_v44 = vld [vmem:[%s1634_s1 + $0x378] sm:$0xff]  ;;  %v1130_v45 = vcombine.low %v114_v34, %v118_v56 }
  0x57   :  { %932 = vmatprep.subr.bf16.mxu0 %v1075_v46  ;;  %975 = vmatprep.subr.bf16.mxu1 %v1077_v47  ;;  %v1132_v46 = vcombine.low %v115_v35, %v119_v36  ;;  %v1139_v47 = vcombine.high %v122_v41, %v126_v42  ;;  %v1141_v48 = vcombine.high %v123_v43, %v127_v44 }
  0x5a   :  { %933 = vmatpush1.bf16.msra.mxu0 %v1074_v52  ;;  %976 = vmatpush1.bf16.msra.mxu1 %v1076_v53  ;;  %v135_v52 = vld [vmem:[%s1634_s1 + $0x3b8] sm:$0xff]  ;;  %v1138_v53 = vcombine.low %v122_v41, %v126_v42 }
  0x5b   :  { %934 = vmatprep.subr.bf16.mxu0 %v1083_v54  ;;  %977 = vmatprep.subr.bf16.mxu1 %v1085_v55  ;;  %v1140_v54 = vcombine.low %v123_v43, %v127_v44  ;;  %v1147_v55 = vcombine.high %v130_v49, %v134_v50  ;;  %v1149_v57 = vcombine.high %v131_v51, %v135_v52 }
  0x5e   :  { %935 = vmatpush1.bf16.msra.mxu0 %v1082_v61  ;;  %978 = vmatpush1.bf16.msra.mxu1 %v1084_v62  ;;  %v143_v61 = vld [vmem:[%s1634_s1 + $0x3f8] sm:$0xff]  ;;  %v1146_v62 = vcombine.low %v130_v49, %v134_v50 }
  0x5f   :  { %936 = vmatprep.subr.bf16.mxu0 %v1091_v63  ;;  %979 = vmatprep.subr.bf16.mxu1 %v1093_v0  ;;  %v1148_v63 = vcombine.low %v131_v51, %v135_v52  ;;  %v1155_v0 = vcombine.high %v138_v58, %v142_v59  ;;  %v1157_v1 = vcombine.high %v139_v60, %v143_v61 }
  0x60   :  { %v1156_v3 = vcombine.low %v139_v60, %v143_v61 }
  0x62   :  { %937 = vmatpush1.bf16.msra.mxu0 %v1090_v5  ;;  %980 = vmatpush1.bf16.msra.mxu1 %v1092_v6  ;;  %v147_v5 = vshrl.u32 %v146_v4, 7 }
  0x63   :  { %938 = vmatprep.subr.bf16.mxu0 %v1099_v7  ;;  %981 = vmatprep.subr.bf16.mxu1 %v1101_v8  ;;  %v144_v7 = vld [vmem:[%s1636_s2] sm:$0xff] }
  0x64   :  { %v148_v6 = vsub.s32 0, %v147_v5  ;;  %v156_v8 = vsub.s32 2, %v147_v5  ;;  %v152_v9 = vsub.s32 1, %v147_v5  ;;  %v160_v11 = vsub.s32 3, %v147_v5 }
  0x65   :  { %v176_v34 = vsub.s32 7, %v147_v5 }
  0x66   :  { %939 = vmatpush1.bf16.msra.mxu0 %v1098_v14  ;;  %982 = vmatpush1.bf16.msra.mxu1 %v1100_v15  ;;  %v149_v12 = vrot.slane %v144_v7, %v148_v6  ;;  %v157_v13 = vrot.slane %v144_v7, %v156_v8  ;;  %v153_v14 = vrot.slane %v144_v7, %v152_v9 }
  0x67   :  { %940 = vmatprep.subr.bf16.mxu0 %v1107_v16  ;;  %983 = vmatprep.subr.bf16.mxu1 %v1109_v17  ;;  %v161_v15 = vrot.slane %v144_v7, %v160_v11 }
  0x6a   :  { %941 = vmatpush1.bf16.msra.mxu0 %v1106_v22  ;;  %984 = vmatpush1.bf16.msra.mxu1 %v1108_v23 }
  0x6b   :  { %942 = vmatprep.subr.bf16.mxu0 %v1115_v24  ;;  %985 = vmatprep.subr.bf16.mxu1 %v1117_v25 }
  0x6e   :  { %943 = vmatpush1.bf16.msra.mxu0 %v1114_v30  ;;  %986 = vmatpush1.bf16.msra.mxu1 %v1116_v31  ;;  %v164_v31 = vsub.s32 4, %v147_v5 }
  0x6f   :  { %944 = vmatprep.subr.bf16.mxu0 %v1123_v32  ;;  %987 = vmatprep.subr.bf16.mxu1 %v1125_v33  ;;  %v172_v32 = vsub.s32 6, %v147_v5  ;;  %v168_v33 = vsub.s32 5, %v147_v5 }
  0x70   :  { %v165_v56 = vrot.slane %v144_v7, %v164_v31 }
  0x71   :  { %v173_v35 = vrot.slane %v144_v7, %v172_v32  ;;  %v169_v36 = vrot.slane %v144_v7, %v168_v33 }
  0x72   :  { %945 = vmatpush1.bf16.msra.mxu0 %v1122_v37  ;;  %988 = vmatpush1.bf16.msra.mxu1 %v1124_v38  ;;  %v177_v37 = vrot.slane %v144_v7, %v176_v34 }
  0x73   :  { %946 = vmatprep.subr.bf16.mxu0 %v1131_v39  ;;  %989 = vmatprep.subr.bf16.mxu1 %v1133_v40 }
  0x76   :  { %947 = vmatpush1.bf16.msra.mxu0 %v1130_v45  ;;  %990 = vmatpush1.bf16.msra.mxu1 %v1132_v46 }
  0x77   :  { %948 = vmatprep.subr.bf16.mxu0 %v1139_v47  ;;  %991 = vmatprep.subr.bf16.mxu1 %v1141_v48 }
  0x7a   :  { %949 = vmatpush1.bf16.msra.mxu0 %v1138_v53  ;;  %992 = vmatpush1.bf16.msra.mxu1 %v1140_v54 }
  0x7b   :  { %950 = vmatprep.subr.bf16.mxu0 %v1147_v55  ;;  %993 = vmatprep.subr.bf16.mxu1 %v1149_v57 }
  0x7e   :  { %951 = vmatpush1.bf16.msra.mxu0 %v1146_v62  ;;  %994 = vmatpush1.bf16.msra.mxu1 %v1148_v63 }
  0x7f   :  { %952 = vmatprep.subr.bf16.mxu0 %v1155_v0  ;;  %995 = vmatprep.subr.bf16.mxu1 %v1157_v1 }
  0x82   :  { %953 = vmatpush1.bf16.msra.mxu0 %v1154_v2  ;;  %996 = vmatpush1.bf16.msra.mxu1 %v1156_v3 }
  0x85   :  { %955 = vmatmul.mubr.bf16.vlgmr.msra.gmra.mrb[4].mxu0 %v1401_v10  ;;  %998 = vmatmul.mubr.bf16.vlgmr.msra.gmra.mrb[4].mxu1 %v1401_v10 }
 0x118   :  { %v870_v16 = vpop.f32.mrb[0].mxu0  ;;  %v913_v18 = vpop.f32.mrb[0].mxu1 }
 0x119   :  { %v871_v17 = vadd.f32 %v870_v16, %v149_v12  ;;  %v872_v19 = vpop.f32.mrb[1].mxu0  ;;  %v914_v20 = vadd.f32 %v913_v18, %v157_v13  ;;  %v915_v21 = vpop.f32.mrb[1].mxu1 }
 0x11a   :  { %v873_v10 = vadd.f32 %v872_v19, %v153_v14  ;;  %v874_v22 = vpop.f32.mrb[2].mxu0  ;;  %v916_v23 = vadd.f32 %v915_v21, %v161_v15  ;;  %v917_v25 = vpop.f32.mrb[2].mxu1 }
 0x11b   :  { %1008 = vst [vmem:[%s1637_s3] sm:$0xff] %v871_v17  ;;  %v875_v24 = vadd.f32 %v874_v22, %v149_v12  ;;  %v876_v26 = vpop.f32.mrb[3].mxu0  ;;  %1010 = vst [vmem:[%s1637_s3 + $0x10] sm:$0xff] %v914_v20  ;;  %v918_v27 = vadd.f32 %v917_v25, %v157_v13  ;;  %v919_v29 = vpop.f32.mrb[3].mxu1 }
 0x11c   :  { %1009 = vst [vmem:[%s1637_s3 + $0x8] sm:$0xff] %v873_v10  ;;  %v877_v28 = vadd.f32 %v876_v26, %v153_v14  ;;  %1011 = vst [vmem:[%s1637_s3 + $0x18] sm:$0xff] %v916_v23  ;;  %v920_v30 = vadd.f32 %v919_v29, %v161_v15 }
 0x11d   :  { %1016 = vst [vmem:[%s1637_s3 + $0x40] sm:$0xff] %v875_v24  ;;  %1018 = vst [vmem:[%s1637_s3 + $0x50] sm:$0xff] %v918_v27 }
 0x11e   :  { %1017 = vst [vmem:[%s1637_s3 + $0x48] sm:$0xff] %v877_v28  ;;  %1019 = vst [vmem:[%s1637_s3 + $0x58] sm:$0xff] %v920_v30 }
 0x158   :  { %v956_v38 = vpop.f32.mrb[4].mxu0  ;;  %v999_v40 = vpop.f32.mrb[4].mxu1 }
 0x159   :  { %v957_v39 = vadd.f32 %v956_v38, %v165_v56  ;;  %v958_v41 = vpop.f32.mrb[5].mxu0  ;;  %v1000_v42 = vadd.f32 %v999_v40, %v173_v35  ;;  %v1001_v44 = vpop.f32.mrb[5].mxu1 }
 0x15a   :  { %v959_v43 = vadd.f32 %v958_v41, %v169_v36  ;;  %v960_v45 = vpop.f32.mrb[6].mxu0  ;;  %v1002_v46 = vadd.f32 %v1001_v44, %v177_v37  ;;  %v1003_v48 = vpop.f32.mrb[6].mxu1 }
 0x15b   :  { %1012 = vst [vmem:[%s1637_s3 + $0x20] sm:$0xff] %v957_v39  ;;  %v961_v47 = vadd.f32 %v960_v45, %v165_v56  ;;  %v962_v49 = vpop.f32.mrb[7].mxu0  ;;  %1014 = vst [vmem:[%s1637_s3 + $0x30] sm:$0xff] %v1000_v42  ;;  %v1004_v50 = vadd.f32 %v1003_v48, %v173_v35  ;;  %v1005_v52 = vpop.f32.mrb[7].mxu1 }
 0x15c   :  { %1013 = vst [vmem:[%s1637_s3 + $0x28] sm:$0xff] %v959_v43  ;;  %v963_v51 = vadd.f32 %v962_v49, %v169_v36  ;;  %1015 = vst [vmem:[%s1637_s3 + $0x38] sm:$0xff] %v1002_v46  ;;  %v1006_v53 = vadd.f32 %v1005_v52, %v177_v37 }
 0x15d   :  { %1020 = vst [vmem:[%s1637_s3 + $0x60] sm:$0xff] %v961_v47  ;;  %1022 = vst [vmem:[%s1637_s3 + $0x70] sm:$0xff] %v1004_v50 }
 0x15e   :  { %1021 = vst [vmem:[%s1637_s3 + $0x68] sm:$0xff] %v963_v51  ;;  %1023 = vst [vmem:[%s1637_s3 + $0x78] sm:$0xff] %v1006_v53 }

// kernel: frame_predictor_forward.17
= control target key start
LH: loop header
LB: loop body
LE: loop exit
PB: predicated region body
PF: predicated region fallthrough
CT: control target
= control target key end

     0   :  { %v1319_v0 = vmov 0.0   ;;  %v1321_v1 = vmov 0.0   ;;  %v1323_v2 = vmov 0.0   ;;  %v1325_v3 = vmov 0.0   ;;  %s1327_s9 = smov 0   ;;  %s1771_s0 = inlined_call_operand.vmem [shape: f32[4,8,1024], index: 0, kind: input, shape index: {}]   ;;  %s1772_s1 = inlined_call_operand.vmem [shape: bf16[256,1024], index: 1, kind: input, shape index: {}]   ;;  %s1773_s2 = inlined_call_operand.vmem [shape: f32[4,8,256], index: 2, kind: output, shape index: {}]  }
   0x1 LB: > { %v34_v4 = vld [vmem:[%s1772_s1] sm:$0xff]  ;;  %v35_v6 = vld [vmem:[%s1772_s1 + $0x8] sm:$0xff]  ;;  %v1378_v22 = vpack.c.bf16 %v1294_v2, %v1294_v2  ;;  %s1190_s23 = sshll.u32 %s1302_s9, 6  ;;  %s1191_s27 = sshll.u32 %s1302_s9, 4  ;;  %s1302_s9 = sphi %s1327_s9, %s16_s9   ;;  %v1298_v3 = vphi %v1325_v3, %v1020_v3   ;;  %v1294_v2 = vphi %v1323_v2, %v1021_v2   ;;  %v1290_v1 = vphi %v1321_v1, %v1016_v1   ;;  %v1286_v0 = vphi %v1319_v0, %v1017_v0  }
   0x2   : > { %v38_v5 = vld [vmem:[%s1772_s1 + $0x20] sm:$0xff]  ;;  %v39_v8 = vld [vmem:[%s1772_s1 + $0x28] sm:$0xff]  ;;  %s1744_s26 = scalar_lea.vmem %s1771_s0, %s1190_s23  ;;  %s1024_s30 = scalar_lea.vmem %s1773_s2, %s1191_s27 }
   0x3   : > { %v1055_v7 = vcombine.high %v34_v4, %v38_v5  ;;  %v1054_v9 = vcombine.low %v34_v4, %v38_v5  ;;  %v42_v10 = vld [vmem:[%s1772_s1 + $0x40] sm:$0xff]  ;;  %v1057_v12 = vcombine.high %v35_v6, %v39_v8  ;;  %v1056_v13 = vcombine.low %v35_v6, %v39_v8  ;;  %v43_v15 = vld [vmem:[%s1772_s1 + $0x48] sm:$0xff]  ;;  %834 = vmatprep.mubr.bf16.mxu0 %v1378_v22  ;;  %s16_s9 = sadd.s32 1, %s1302_s9  }
   0x4   : > { %v46_v11 = vld [vmem:[%s1772_s1 + $0x60] sm:$0xff]  ;;  %v47_v16 = vld [vmem:[%s1772_s1 + $0x68] sm:$0xff]  ;;  %875 = vmatprep.mubr.bf16.mxu1 %v1378_v22  ;;  %p13_p0 = scmp.ge.s32.totalorder %s16_s9, 4  }
   0x5   : > { %v1063_v14 = vcombine.high %v42_v10, %v46_v11  ;;  %v50_v17 = vld [vmem:[%s1772_s1 + $0x80] sm:$0xff]  ;;  %802 = vmatprep.subr.bf16.mxu0 %v1055_v7  ;;  %v1065_v18 = vcombine.high %v43_v15, %v47_v16  ;;  %v51_v20 = vld [vmem:[%s1772_s1 + $0x88] sm:$0xff]  ;;  %843 = vmatprep.subr.bf16.mxu1 %v1057_v12  ;;  %v1062_v23 = vcombine.low %v42_v10, %v46_v11 }
   0x6   : > { %v54_v19 = vld [vmem:[%s1772_s1 + $0xa0] sm:$0xff]  ;;  %v55_v21 = vld [vmem:[%s1772_s1 + $0xa8] sm:$0xff]  ;;  %803 = vmatpush1.bf16.msra.mxu0 %v1054_v9  ;;  %844 = vmatpush1.bf16.msra.mxu1 %v1056_v13  ;;  %v1064_v24 = vcombine.low %v43_v15, %v47_v16 }
   0x7   : > { %804 = vmatprep.subr.bf16.mxu0 %v1063_v14  ;;  %v1071_v25 = vcombine.high %v50_v17, %v54_v19  ;;  %845 = vmatprep.subr.bf16.mxu1 %v1065_v18  ;;  %v1073_v26 = vcombine.high %v51_v20, %v55_v21  ;;  %v58_v27 = vld [vmem:[%s1772_s1 + $0xc0] sm:$0xff]  ;;  %v59_v29 = vld [vmem:[%s1772_s1 + $0xc8] sm:$0xff]  ;;  %v1070_v31 = vcombine.low %v50_v17, %v54_v19 }
   0x8   : > { %v62_v28 = vld [vmem:[%s1772_s1 + $0xe0] sm:$0xff]  ;;  %v63_v30 = vld [vmem:[%s1772_s1 + $0xe8] sm:$0xff]  ;;  %v1072_v32 = vcombine.low %v51_v20, %v55_v21 }
   0x9   : > { %v1079_v33 = vcombine.high %v58_v27, %v62_v28  ;;  %v1081_v34 = vcombine.high %v59_v29, %v63_v30  ;;  %v66_v35 = vld [vmem:[%s1772_s1 + $0x100] sm:$0xff]  ;;  %v67_v37 = vld [vmem:[%s1772_s1 + $0x108] sm:$0xff]  ;;  %v1078_v39 = vcombine.low %v58_v27, %v62_v28  ;;  %v1080_v40 = vcombine.low %v59_v29, %v63_v30 }
   0xa   : > { %805 = vmatpush1.bf16.msra.mxu0 %v1062_v23  ;;  %846 = vmatpush1.bf16.msra.mxu1 %v1064_v24  ;;  %v70_v36 = vld [vmem:[%s1772_s1 + $0x120] sm:$0xff]  ;;  %v71_v38 = vld [vmem:[%s1772_s1 + $0x128] sm:$0xff] }
   0xb   : > { %806 = vmatprep.subr.bf16.mxu0 %v1071_v25  ;;  %847 = vmatprep.subr.bf16.mxu1 %v1073_v26  ;;  %v1087_v41 = vcombine.high %v66_v35, %v70_v36  ;;  %v1089_v42 = vcombine.high %v67_v37, %v71_v38  ;;  %v74_v43 = vld [vmem:[%s1772_s1 + $0x140] sm:$0xff]  ;;  %v75_v45 = vld [vmem:[%s1772_s1 + $0x148] sm:$0xff]  ;;  %v1086_v47 = vcombine.low %v66_v35, %v70_v36 }
   0xc   : > { %v78_v44 = vld [vmem:[%s1772_s1 + $0x160] sm:$0xff]  ;;  %v79_v46 = vld [vmem:[%s1772_s1 + $0x168] sm:$0xff]  ;;  %v1088_v48 = vcombine.low %v67_v37, %v71_v38 }
   0xd   : > { %v1095_v49 = vcombine.high %v74_v43, %v78_v44  ;;  %v1097_v50 = vcombine.high %v75_v45, %v79_v46  ;;  %v82_v51 = vld [vmem:[%s1772_s1 + $0x180] sm:$0xff]  ;;  %v83_v53 = vld [vmem:[%s1772_s1 + $0x188] sm:$0xff]  ;;  %v1094_v55 = vcombine.low %v74_v43, %v78_v44  ;;  %v1096_v56 = vcombine.low %v75_v45, %v79_v46 }
   0xe   : > { %807 = vmatpush1.bf16.msra.mxu0 %v1070_v31  ;;  %848 = vmatpush1.bf16.msra.mxu1 %v1072_v32  ;;  %v86_v52 = vld [vmem:[%s1772_s1 + $0x1a0] sm:$0xff]  ;;  %v87_v54 = vld [vmem:[%s1772_s1 + $0x1a8] sm:$0xff] }
   0xf   : > { %808 = vmatprep.subr.bf16.mxu0 %v1079_v33  ;;  %849 = vmatprep.subr.bf16.mxu1 %v1081_v34  ;;  %v1103_v57 = vcombine.high %v82_v51, %v86_v52  ;;  %v1105_v58 = vcombine.high %v83_v53, %v87_v54  ;;  %v90_v59 = vld [vmem:[%s1772_s1 + $0x1c0] sm:$0xff]  ;;  %v91_v61 = vld [vmem:[%s1772_s1 + $0x1c8] sm:$0xff]  ;;  %v1102_v63 = vcombine.low %v82_v51, %v86_v52 }
  0x10   : > { %v94_v60 = vld [vmem:[%s1772_s1 + $0x1e0] sm:$0xff]  ;;  %v95_v62 = vld [vmem:[%s1772_s1 + $0x1e8] sm:$0xff]  ;;  %v1104_v2 = vcombine.low %v83_v53, %v87_v54 }
  0x11   : > { %v1111_v4 = vcombine.high %v90_v59, %v94_v60  ;;  %v1113_v5 = vcombine.high %v91_v61, %v95_v62  ;;  %v98_v6 = vld [vmem:[%s1772_s1 + $0x200] sm:$0xff]  ;;  %v99_v8 = vld [vmem:[%s1772_s1 + $0x208] sm:$0xff]  ;;  %v1110_v10 = vcombine.low %v90_v59, %v94_v60  ;;  %v1112_v11 = vcombine.low %v91_v61, %v95_v62 }
  0x12   : > { %809 = vmatpush1.bf16.msra.mxu0 %v1078_v39  ;;  %850 = vmatpush1.bf16.msra.mxu1 %v1080_v40  ;;  %v102_v7 = vld [vmem:[%s1772_s1 + $0x220] sm:$0xff]  ;;  %v103_v9 = vld [vmem:[%s1772_s1 + $0x228] sm:$0xff] }
  0x13   : > { %810 = vmatprep.subr.bf16.mxu0 %v1087_v41  ;;  %851 = vmatprep.subr.bf16.mxu1 %v1089_v42  ;;  %v1119_v12 = vcombine.high %v98_v6, %v102_v7  ;;  %v1121_v13 = vcombine.high %v99_v8, %v103_v9  ;;  %v106_v14 = vld [vmem:[%s1772_s1 + $0x240] sm:$0xff]  ;;  %v107_v16 = vld [vmem:[%s1772_s1 + $0x248] sm:$0xff]  ;;  %v1118_v18 = vcombine.low %v98_v6, %v102_v7 }
  0x14   : > { %v110_v15 = vld [vmem:[%s1772_s1 + $0x260] sm:$0xff]  ;;  %v111_v17 = vld [vmem:[%s1772_s1 + $0x268] sm:$0xff]  ;;  %v1120_v19 = vcombine.low %v99_v8, %v103_v9 }
  0x15   : > { %v1127_v20 = vcombine.high %v106_v14, %v110_v15  ;;  %v1129_v21 = vcombine.high %v107_v16, %v111_v17  ;;  %v114_v23 = vld [vmem:[%s1772_s1 + $0x280] sm:$0xff]  ;;  %v115_v25 = vld [vmem:[%s1772_s1 + $0x288] sm:$0xff]  ;;  %v1126_v27 = vcombine.low %v106_v14, %v110_v15  ;;  %v1128_v28 = vcombine.low %v107_v16, %v111_v17 }
  0x16   : > { %811 = vmatpush1.bf16.msra.mxu0 %v1086_v47  ;;  %852 = vmatpush1.bf16.msra.mxu1 %v1088_v48  ;;  %v118_v24 = vld [vmem:[%s1772_s1 + $0x2a0] sm:$0xff]  ;;  %v119_v26 = vld [vmem:[%s1772_s1 + $0x2a8] sm:$0xff] }
  0x17   : > { %812 = vmatprep.subr.bf16.mxu0 %v1095_v49  ;;  %853 = vmatprep.subr.bf16.mxu1 %v1097_v50  ;;  %v1135_v29 = vcombine.high %v114_v23, %v118_v24  ;;  %v1137_v30 = vcombine.high %v115_v25, %v119_v26  ;;  %v122_v31 = vld [vmem:[%s1772_s1 + $0x2c0] sm:$0xff]  ;;  %v123_v33 = vld [vmem:[%s1772_s1 + $0x2c8] sm:$0xff]  ;;  %v1134_v35 = vcombine.low %v114_v23, %v118_v24  ;;  %v49_v23 = vld [vmem:[%s1772_s1 + $0x78] sm:$0xff] }
  0x18   : > { %v126_v32 = vld [vmem:[%s1772_s1 + $0x2e0] sm:$0xff]  ;;  %v127_v34 = vld [vmem:[%s1772_s1 + $0x2e8] sm:$0xff]  ;;  %v1136_v36 = vcombine.low %v115_v25, %v119_v26 }
  0x19   : > { %v1143_v37 = vcombine.high %v122_v31, %v126_v32  ;;  %v1145_v38 = vcombine.high %v123_v33, %v127_v34  ;;  %v130_v39 = vld [vmem:[%s1772_s1 + $0x300] sm:$0xff]  ;;  %v131_v41 = vld [vmem:[%s1772_s1 + $0x308] sm:$0xff]  ;;  %v1142_v43 = vcombine.low %v122_v31, %v126_v32  ;;  %v1144_v44 = vcombine.low %v123_v33, %v127_v34 }
  0x1a   : > { %813 = vmatpush1.bf16.msra.mxu0 %v1094_v55  ;;  %854 = vmatpush1.bf16.msra.mxu1 %v1096_v56  ;;  %v134_v40 = vld [vmem:[%s1772_s1 + $0x320] sm:$0xff]  ;;  %v135_v42 = vld [vmem:[%s1772_s1 + $0x328] sm:$0xff] }
  0x1b   : > { %814 = vmatprep.subr.bf16.mxu0 %v1103_v57  ;;  %855 = vmatprep.subr.bf16.mxu1 %v1105_v58  ;;  %v1151_v45 = vcombine.high %v130_v39, %v134_v40  ;;  %v1153_v46 = vcombine.high %v131_v41, %v135_v42  ;;  %v138_v47 = vld [vmem:[%s1772_s1 + $0x340] sm:$0xff]  ;;  %v139_v49 = vld [vmem:[%s1772_s1 + $0x348] sm:$0xff]  ;;  %v1150_v51 = vcombine.low %v130_v39, %v134_v40 }
  0x1c   : > { %v142_v48 = vld [vmem:[%s1772_s1 + $0x360] sm:$0xff]  ;;  %v143_v50 = vld [vmem:[%s1772_s1 + $0x368] sm:$0xff]  ;;  %v1152_v52 = vcombine.low %v131_v41, %v135_v42 }
  0x1d   : > { %v1159_v53 = vcombine.high %v138_v47, %v142_v48  ;;  %v1161_v54 = vcombine.high %v139_v49, %v143_v50  ;;  %v146_v55 = vld [vmem:[%s1772_s1 + $0x380] sm:$0xff]  ;;  %v147_v57 = vld [vmem:[%s1772_s1 + $0x388] sm:$0xff]  ;;  %v1158_v59 = vcombine.low %v138_v47, %v142_v48  ;;  %v1160_v60 = vcombine.low %v139_v49, %v143_v50  ;;  %v76_v50 = vld [vmem:[%s1772_s1 + $0x150] sm:$0xff] }
  0x1e   : > { %815 = vmatpush1.bf16.msra.mxu0 %v1102_v63  ;;  %856 = vmatpush1.bf16.msra.mxu1 %v1104_v2  ;;  %v150_v56 = vld [vmem:[%s1772_s1 + $0x3a0] sm:$0xff]  ;;  %v151_v58 = vld [vmem:[%s1772_s1 + $0x3a8] sm:$0xff] }
  0x1f   : > { %816 = vmatprep.subr.bf16.mxu0 %v1111_v4  ;;  %857 = vmatprep.subr.bf16.mxu1 %v1113_v5  ;;  %v1167_v61 = vcombine.high %v146_v55, %v150_v56  ;;  %v1169_v62 = vcombine.high %v147_v57, %v151_v58  ;;  %v154_v63 = vld [vmem:[%s1772_s1 + $0x3c0] sm:$0xff]  ;;  %v155_v4 = vld [vmem:[%s1772_s1 + $0x3c8] sm:$0xff]  ;;  %v1166_v6 = vcombine.low %v146_v55, %v150_v56 }
  0x20   : > { %v158_v2 = vld [vmem:[%s1772_s1 + $0x3e0] sm:$0xff]  ;;  %v159_v5 = vld [vmem:[%s1772_s1 + $0x3e8] sm:$0xff]  ;;  %v1168_v7 = vcombine.low %v147_v57, %v151_v58  ;;  %v84_v58 = vld [vmem:[%s1772_s1 + $0x190] sm:$0xff] }
  0x21   : > { %v1175_v8 = vcombine.high %v154_v63, %v158_v2  ;;  %v1177_v9 = vcombine.high %v155_v4, %v159_v5  ;;  %v1174_v14 = vcombine.low %v154_v63, %v158_v2  ;;  %v1176_v15 = vcombine.low %v155_v4, %v159_v5  ;;  %v92_v5 = vld [vmem:[%s1772_s1 + $0x1d0] sm:$0xff] }
  0x22   : > { %817 = vmatpush1.bf16.msra.mxu0 %v1110_v10  ;;  %858 = vmatpush1.bf16.msra.mxu1 %v1112_v11  ;;  %v36_v10 = vld [vmem:[%s1772_s1 + $0x10] sm:$0xff] }
  0x23   : > { %818 = vmatprep.subr.bf16.mxu0 %v1119_v12  ;;  %859 = vmatprep.subr.bf16.mxu1 %v1121_v13  ;;  %v40_v11 = vld [vmem:[%s1772_s1 + $0x30] sm:$0xff]  ;;  %v37_v12 = vld [vmem:[%s1772_s1 + $0x18] sm:$0xff] }
  0x24   : > { %v41_v13 = vld [vmem:[%s1772_s1 + $0x38] sm:$0xff]  ;;  %v1059_v16 = vcombine.high %v36_v10, %v40_v11  ;;  %v1058_v24 = vcombine.low %v36_v10, %v40_v11 }
  0x25   : > { %v1061_v17 = vcombine.high %v37_v12, %v41_v13  ;;  %v1060_v25 = vcombine.low %v37_v12, %v41_v13  ;;  %v100_v13 = vld [vmem:[%s1772_s1 + $0x210] sm:$0xff] }
  0x26   : > { %819 = vmatpush1.bf16.msra.mxu0 %v1118_v18  ;;  %860 = vmatpush1.bf16.msra.mxu1 %v1120_v19  ;;  %v44_v18 = vld [vmem:[%s1772_s1 + $0x50] sm:$0xff] }
  0x27   : > { %820 = vmatprep.subr.bf16.mxu0 %v1127_v20  ;;  %861 = vmatprep.subr.bf16.mxu1 %v1129_v21  ;;  %v48_v19 = vld [vmem:[%s1772_s1 + $0x70] sm:$0xff]  ;;  %v1558_v20 = vpack.c.bf16 %v1298_v3, %v1298_v3  ;;  %v45_v21 = vld [vmem:[%s1772_s1 + $0x58] sm:$0xff] }
  0x28   : > { %v1067_v26 = vcombine.high %v44_v18, %v48_v19  ;;  %v52_v3 = vld [vmem:[%s1772_s1 + $0x90] sm:$0xff]  ;;  %v1066_v31 = vcombine.low %v44_v18, %v48_v19  ;;  %v1068_v32 = vcombine.low %v45_v21, %v49_v23 }
  0x2a   : > { %821 = vmatpush1.bf16.msra.mxu0 %v1126_v27  ;;  %862 = vmatpush1.bf16.msra.mxu1 %v1128_v28  ;;  %v1069_v27 = vcombine.high %v45_v21, %v49_v23  ;;  %v56_v28 = vld [vmem:[%s1772_s1 + $0xb0] sm:$0xff] }
  0x2b   : > { %822 = vmatprep.subr.bf16.mxu0 %v1135_v29  ;;  %863 = vmatprep.subr.bf16.mxu1 %v1137_v30  ;;  %v53_v29 = vld [vmem:[%s1772_s1 + $0x98] sm:$0xff]  ;;  %v1075_v33 = vcombine.high %v52_v3, %v56_v28  ;;  %v1074_v39 = vcombine.low %v52_v3, %v56_v28  ;;  %v108_v23 = vld [vmem:[%s1772_s1 + $0x250] sm:$0xff] }
  0x2c   : > { %v57_v30 = vld [vmem:[%s1772_s1 + $0xb8] sm:$0xff] }
  0x2d   : > { %v1077_v34 = vcombine.high %v53_v29, %v57_v30  ;;  %v1076_v40 = vcombine.low %v53_v29, %v57_v30  ;;  %v116_v30 = vld [vmem:[%s1772_s1 + $0x290] sm:$0xff] }
  0x2e   : > { %823 = vmatpush1.bf16.msra.mxu0 %v1134_v35  ;;  %864 = vmatpush1.bf16.msra.mxu1 %v1136_v36  ;;  %v60_v35 = vld [vmem:[%s1772_s1 + $0xd0] sm:$0xff] }
  0x2f   : > { %824 = vmatprep.subr.bf16.mxu0 %v1143_v37  ;;  %865 = vmatprep.subr.bf16.mxu1 %v1145_v38  ;;  %v64_v36 = vld [vmem:[%s1772_s1 + $0xf0] sm:$0xff]  ;;  %v61_v37 = vld [vmem:[%s1772_s1 + $0xd8] sm:$0xff] }
  0x30   : > { %v65_v38 = vld [vmem:[%s1772_s1 + $0xf8] sm:$0xff]  ;;  %v1083_v41 = vcombine.high %v60_v35, %v64_v36 }
  0x31   : > { %v1085_v42 = vcombine.high %v61_v37, %v65_v38  ;;  %v1084_v47 = vcombine.low %v61_v37, %v65_v38  ;;  %v124_v38 = vld [vmem:[%s1772_s1 + $0x2d0] sm:$0xff] }
  0x32   : > { %825 = vmatpush1.bf16.msra.mxu0 %v1142_v43  ;;  %866 = vmatpush1.bf16.msra.mxu1 %v1144_v44  ;;  %v68_v43 = vld [vmem:[%s1772_s1 + $0x110] sm:$0xff] }
  0x33   : > { %826 = vmatprep.subr.bf16.mxu0 %v1151_v45  ;;  %867 = vmatprep.subr.bf16.mxu1 %v1153_v46  ;;  %v72_v44 = vld [vmem:[%s1772_s1 + $0x130] sm:$0xff]  ;;  %v73_v45 = vld [vmem:[%s1772_s1 + $0x138] sm:$0xff]  ;;  %v1082_v46 = vcombine.low %v60_v35, %v64_v36 }
  0x34   : > { %v1091_v48 = vcombine.high %v68_v43, %v72_v44 }
  0x36   : > { %827 = vmatpush1.bf16.msra.mxu0 %v1150_v51  ;;  %868 = vmatpush1.bf16.msra.mxu1 %v1152_v52  ;;  %v80_v51 = vld [vmem:[%s1772_s1 + $0x170] sm:$0xff]  ;;  %v77_v52 = vld [vmem:[%s1772_s1 + $0x158] sm:$0xff] }
  0x37   : > { %828 = vmatprep.subr.bf16.mxu0 %v1159_v53  ;;  %869 = vmatprep.subr.bf16.mxu1 %v1161_v54  ;;  %v81_v53 = vld [vmem:[%s1772_s1 + $0x178] sm:$0xff]  ;;  %v1090_v54 = vcombine.low %v68_v43, %v72_v44  ;;  %v1099_v56 = vcombine.high %v76_v50, %v80_v51 }
  0x38   : > { %v1101_v57 = vcombine.high %v77_v52, %v81_v53  ;;  %v1100_v63 = vcombine.low %v77_v52, %v81_v53  ;;  %v140_v53 = vld [vmem:[%s1772_s1 + $0x350] sm:$0xff] }
  0x3a   : > { %829 = vmatpush1.bf16.msra.mxu0 %v1158_v59  ;;  %870 = vmatpush1.bf16.msra.mxu1 %v1160_v60  ;;  %v88_v59 = vld [vmem:[%s1772_s1 + $0x1b0] sm:$0xff]  ;;  %v85_v60 = vld [vmem:[%s1772_s1 + $0x198] sm:$0xff] }
  0x3b   : > { %830 = vmatprep.subr.bf16.mxu0 %v1167_v61  ;;  %871 = vmatprep.subr.bf16.mxu1 %v1169_v62  ;;  %v89_v61 = vld [vmem:[%s1772_s1 + $0x1b8] sm:$0xff]  ;;  %v1098_v62 = vcombine.low %v76_v50, %v80_v51  ;;  %v1107_v2 = vcombine.high %v84_v58, %v88_v59 }
  0x3c   : > { %v1109_v4 = vcombine.high %v85_v60, %v89_v61  ;;  %v1108_v10 = vcombine.low %v85_v60, %v89_v61  ;;  %v148_v61 = vld [vmem:[%s1772_s1 + $0x390] sm:$0xff] }
  0x3e   : > { %831 = vmatpush1.bf16.msra.mxu0 %v1166_v6  ;;  %872 = vmatpush1.bf16.msra.mxu1 %v1168_v7  ;;  %v96_v6 = vld [vmem:[%s1772_s1 + $0x1f0] sm:$0xff]  ;;  %v93_v7 = vld [vmem:[%s1772_s1 + $0x1d8] sm:$0xff] }
  0x3f   : > { %832 = vmatprep.subr.bf16.mxu0 %v1175_v8  ;;  %873 = vmatprep.subr.bf16.mxu1 %v1177_v9  ;;  %v97_v8 = vld [vmem:[%s1772_s1 + $0x1f8] sm:$0xff]  ;;  %v1106_v9 = vcombine.low %v84_v58, %v88_v59  ;;  %v1115_v11 = vcombine.high %v92_v5, %v96_v6 }
  0x40   : > { %v1117_v12 = vcombine.high %v93_v7, %v97_v8  ;;  %v1116_v18 = vcombine.low %v93_v7, %v97_v8  ;;  %v156_v8 = vld [vmem:[%s1772_s1 + $0x3d0] sm:$0xff] }
  0x42   : > { %833 = vmatpush1.bf16.msra.mxu0 %v1174_v14  ;;  %874 = vmatpush1.bf16.msra.mxu1 %v1176_v15  ;;  %v104_v14 = vld [vmem:[%s1772_s1 + $0x230] sm:$0xff]  ;;  %v101_v15 = vld [vmem:[%s1772_s1 + $0x218] sm:$0xff] }
  0x43   : > { %884 = vmatprep.subr.bf16.mxu0 %v1059_v16  ;;  %925 = vmatprep.subr.bf16.mxu1 %v1061_v17  ;;  %v105_v16 = vld [vmem:[%s1772_s1 + $0x238] sm:$0xff]  ;;  %v1114_v17 = vcombine.low %v92_v5, %v96_v6  ;;  %v1123_v19 = vcombine.high %v100_v13, %v104_v14 }
  0x44   : > { %v1125_v21 = vcombine.high %v101_v15, %v105_v16  ;;  %v1124_v3 = vcombine.low %v101_v15, %v105_v16 }
  0x45   : > { %835 = vmatmul.mubr.bf16.vlgmr.msra.gmra.mrb[0].mxu0 %v1558_v20  ;;  %876 = vmatmul.mubr.bf16.vlgmr.msra.gmra.mrb[0].mxu1 %v1558_v20 }
  0x46   : > { %885 = vmatpush1.bf16.msra.mxu0 %v1058_v24  ;;  %926 = vmatpush1.bf16.msra.mxu1 %v1060_v25  ;;  %v112_v24 = vld [vmem:[%s1772_s1 + $0x270] sm:$0xff]  ;;  %v109_v25 = vld [vmem:[%s1772_s1 + $0x258] sm:$0xff] }
  0x47   : > { %886 = vmatprep.subr.bf16.mxu0 %v1067_v26  ;;  %927 = vmatprep.subr.bf16.mxu1 %v1069_v27  ;;  %v113_v26 = vld [vmem:[%s1772_s1 + $0x278] sm:$0xff]  ;;  %v1122_v27 = vcombine.low %v100_v13, %v104_v14  ;;  %v1131_v28 = vcombine.high %v108_v23, %v112_v24 }
  0x48   : > { %916 = vmatprep.mubr.bf16.mxu0 %v1378_v22  ;;  %957 = vmatprep.mubr.bf16.mxu1 %v1378_v22  ;;  %v69_v22 = vld [vmem:[%s1772_s1 + $0x118] sm:$0xff]  ;;  %v1133_v29 = vcombine.high %v109_v25, %v113_v26  ;;  %v1132_v35 = vcombine.low %v109_v25, %v113_v26 }
  0x49   : > { %v1093_v49 = vcombine.high %v69_v22, %v73_v45  ;;  %v1092_v55 = vcombine.low %v69_v22, %v73_v45  ;;  %v132_v45 = vld [vmem:[%s1772_s1 + $0x310] sm:$0xff] }
  0x4a   : > { %887 = vmatpush1.bf16.msra.mxu0 %v1066_v31  ;;  %928 = vmatpush1.bf16.msra.mxu1 %v1068_v32  ;;  %v120_v31 = vld [vmem:[%s1772_s1 + $0x2b0] sm:$0xff]  ;;  %v117_v32 = vld [vmem:[%s1772_s1 + $0x298] sm:$0xff] }
  0x4b   : > { %888 = vmatprep.subr.bf16.mxu0 %v1075_v33  ;;  %929 = vmatprep.subr.bf16.mxu1 %v1077_v34  ;;  %v121_v33 = vld [vmem:[%s1772_s1 + $0x2b8] sm:$0xff]  ;;  %v1130_v34 = vcombine.low %v108_v23, %v112_v24  ;;  %v1139_v36 = vcombine.high %v116_v30, %v120_v31 }
  0x4c   : > { %v1141_v37 = vcombine.high %v117_v32, %v121_v33  ;;  %v1140_v43 = vcombine.low %v117_v32, %v121_v33 }
  0x4e   : > { %889 = vmatpush1.bf16.msra.mxu0 %v1074_v39  ;;  %930 = vmatpush1.bf16.msra.mxu1 %v1076_v40  ;;  %v128_v39 = vld [vmem:[%s1772_s1 + $0x2f0] sm:$0xff]  ;;  %v125_v40 = vld [vmem:[%s1772_s1 + $0x2d8] sm:$0xff] }
  0x4f   : > { %890 = vmatprep.subr.bf16.mxu0 %v1083_v41  ;;  %931 = vmatprep.subr.bf16.mxu1 %v1085_v42  ;;  %v129_v41 = vld [vmem:[%s1772_s1 + $0x2f8] sm:$0xff]  ;;  %v1138_v42 = vcombine.low %v116_v30, %v120_v31  ;;  %v1147_v44 = vcombine.high %v124_v38, %v128_v39 }
  0x50   : > { %v1149_v22 = vcombine.high %v125_v40, %v129_v41  ;;  %v1148_v50 = vcombine.low %v125_v40, %v129_v41  ;;  %v27_v30 = vld [vmem:[%s1744_s26 + $0x18] sm:$0xff] }
  0x52   : > { %891 = vmatpush1.bf16.msra.mxu0 %v1082_v46  ;;  %932 = vmatpush1.bf16.msra.mxu1 %v1084_v47  ;;  %v136_v46 = vld [vmem:[%s1772_s1 + $0x330] sm:$0xff]  ;;  %v133_v47 = vld [vmem:[%s1772_s1 + $0x318] sm:$0xff] }
  0x53   : > { %892 = vmatprep.subr.bf16.mxu0 %v1091_v48  ;;  %933 = vmatprep.subr.bf16.mxu1 %v1093_v49  ;;  %v137_v48 = vld [vmem:[%s1772_s1 + $0x338] sm:$0xff]  ;;  %v1146_v49 = vcombine.low %v124_v38, %v128_v39  ;;  %v1155_v51 = vcombine.high %v132_v45, %v136_v46 }
  0x54   : > { %v1157_v52 = vcombine.high %v133_v47, %v137_v48  ;;  %v1156_v58 = vcombine.low %v133_v47, %v137_v48  ;;  %v29_v47 = vld [vmem:[%s1744_s26 + $0x28] sm:$0xff] }
  0x56   : > { %893 = vmatpush1.bf16.msra.mxu0 %v1090_v54  ;;  %934 = vmatpush1.bf16.msra.mxu1 %v1092_v55  ;;  %v144_v54 = vld [vmem:[%s1772_s1 + $0x370] sm:$0xff]  ;;  %v141_v55 = vld [vmem:[%s1772_s1 + $0x358] sm:$0xff] }
  0x57   : > { %894 = vmatprep.subr.bf16.mxu0 %v1099_v56  ;;  %935 = vmatprep.subr.bf16.mxu1 %v1101_v57  ;;  %v145_v56 = vld [vmem:[%s1772_s1 + $0x378] sm:$0xff]  ;;  %v1154_v57 = vcombine.low %v132_v45, %v136_v46  ;;  %v1163_v59 = vcombine.high %v140_v53, %v144_v54  ;;  %v28_v45 = vld [vmem:[%s1744_s26 + $0x20] sm:$0xff]  ;;  %v30_v46 = vld [vmem:[%s1744_s26 + $0x30] sm:$0xff] }
  0x58   : > { %v1165_v60 = vcombine.high %v141_v55, %v145_v56  ;;  %v1164_v5 = vcombine.low %v141_v55, %v145_v56 }
  0x5a   : > { %895 = vmatpush1.bf16.msra.mxu0 %v1098_v62  ;;  %936 = vmatpush1.bf16.msra.mxu1 %v1100_v63  ;;  %v152_v62 = vld [vmem:[%s1772_s1 + $0x3b0] sm:$0xff]  ;;  %v149_v63 = vld [vmem:[%s1772_s1 + $0x398] sm:$0xff] }
  0x5b   : > { %896 = vmatprep.subr.bf16.mxu0 %v1107_v2  ;;  %937 = vmatprep.subr.bf16.mxu1 %v1109_v4  ;;  %v153_v2 = vld [vmem:[%s1772_s1 + $0x3b8] sm:$0xff]  ;;  %v1162_v4 = vcombine.low %v140_v53, %v144_v54  ;;  %v1171_v6 = vcombine.high %v148_v61, %v152_v62 }
  0x5c   : > { %v1173_v7 = vcombine.high %v149_v63, %v153_v2  ;;  %v1172_v13 = vcombine.low %v149_v63, %v153_v2 }
  0x5e   : > { %897 = vmatpush1.bf16.msra.mxu0 %v1106_v9  ;;  %938 = vmatpush1.bf16.msra.mxu1 %v1108_v10  ;;  %v160_v9 = vld [vmem:[%s1772_s1 + $0x3f0] sm:$0xff]  ;;  %v157_v10 = vld [vmem:[%s1772_s1 + $0x3d8] sm:$0xff] }
  0x5f   : > { %898 = vmatprep.subr.bf16.mxu0 %v1115_v11  ;;  %939 = vmatprep.subr.bf16.mxu1 %v1117_v12  ;;  %v161_v11 = vld [vmem:[%s1772_s1 + $0x3f8] sm:$0xff]  ;;  %v1170_v12 = vcombine.low %v148_v61, %v152_v62  ;;  %v1179_v14 = vcombine.high %v156_v8, %v160_v9  ;;  %v1178_v16 = vcombine.low %v156_v8, %v160_v9 }
  0x60   : > { %v1181_v15 = vcombine.high %v157_v10, %v161_v11 }
  0x62   : > { %899 = vmatpush1.bf16.msra.mxu0 %v1114_v17  ;;  %940 = vmatpush1.bf16.msra.mxu1 %v1116_v18  ;;  %v1180_v17 = vcombine.low %v157_v10, %v161_v11 }
  0x63   : > { %900 = vmatprep.subr.bf16.mxu0 %v1123_v19  ;;  %941 = vmatprep.subr.bf16.mxu1 %v1125_v21 }
  0x66   : > { %901 = vmatpush1.bf16.msra.mxu0 %v1122_v27  ;;  %942 = vmatpush1.bf16.msra.mxu1 %v1124_v3  ;;  %v24_v3 = vld [vmem:[%s1744_s26] sm:$0xff] }
  0x67   : > { %902 = vmatprep.subr.bf16.mxu0 %v1131_v28  ;;  %943 = vmatprep.subr.bf16.mxu1 %v1133_v29  ;;  %v25_v28 = vld [vmem:[%s1744_s26 + $0x8] sm:$0xff] }
  0x6a   : > { %903 = vmatpush1.bf16.msra.mxu0 %v1130_v34  ;;  %944 = vmatpush1.bf16.msra.mxu1 %v1132_v35 }
  0x6b   : > { %904 = vmatprep.subr.bf16.mxu0 %v1139_v36  ;;  %945 = vmatprep.subr.bf16.mxu1 %v1141_v37 }
  0x6e   : > { %905 = vmatpush1.bf16.msra.mxu0 %v1138_v42  ;;  %946 = vmatpush1.bf16.msra.mxu1 %v1140_v43 }
  0x6f   : > { %906 = vmatprep.subr.bf16.mxu0 %v1147_v44  ;;  %947 = vmatprep.subr.bf16.mxu1 %v1149_v22 }
  0x72   : > { %907 = vmatpush1.bf16.msra.mxu0 %v1146_v49  ;;  %948 = vmatpush1.bf16.msra.mxu1 %v1148_v50  ;;  %v31_v49 = vld [vmem:[%s1744_s26 + $0x38] sm:$0xff] }
  0x73   : > { %908 = vmatprep.subr.bf16.mxu0 %v1155_v51  ;;  %949 = vmatprep.subr.bf16.mxu1 %v1157_v52 }
  0x76   : > { %909 = vmatpush1.bf16.msra.mxu0 %v1154_v57  ;;  %950 = vmatpush1.bf16.msra.mxu1 %v1156_v58 }
  0x77   : > { %910 = vmatprep.subr.bf16.mxu0 %v1163_v59  ;;  %951 = vmatprep.subr.bf16.mxu1 %v1165_v60 }
  0x7a   : > { %911 = vmatpush1.bf16.msra.mxu0 %v1162_v4  ;;  %952 = vmatpush1.bf16.msra.mxu1 %v1164_v5 }
  0x7b   : > { %912 = vmatprep.subr.bf16.mxu0 %v1171_v6  ;;  %953 = vmatprep.subr.bf16.mxu1 %v1173_v7 }
  0x7e   : > { %913 = vmatpush1.bf16.msra.mxu0 %v1170_v12  ;;  %954 = vmatpush1.bf16.msra.mxu1 %v1172_v13 }
  0x7f   : > { %914 = vmatprep.subr.bf16.mxu0 %v1179_v14  ;;  %955 = vmatprep.subr.bf16.mxu1 %v1181_v15 }
  0x82   : > { %915 = vmatpush1.bf16.msra.mxu0 %v1178_v16  ;;  %956 = vmatpush1.bf16.msra.mxu1 %v1180_v17 }
  0x85   : > { %917 = vmatmul.mubr.bf16.vlgmr.msra.gmra.mrb[4].mxu0 %v1558_v20  ;;  %958 = vmatmul.mubr.bf16.vlgmr.msra.gmra.mrb[4].mxu1 %v1558_v20  ;;  %v26_v20 = vld [vmem:[%s1744_s26 + $0x10] sm:$0xff] }
 0x118   : > { %v836_v18 = vpop.f32.mrb[0].mxu0  ;;  %v877_v19 = vpop.f32.mrb[0].mxu1 }
 0x119   : > { %v838_v21 = vpop.f32.mrb[1].mxu0  ;;  %v879_v23 = vpop.f32.mrb[1].mxu1  ;;  %v966_v29 = vadd.f32 %v836_v18, %v24_v3  ;;  %v968_v31 = vadd.f32 %v877_v19, %v26_v20 }
 0x11a   : > { %v840_v24 = vpop.f32.mrb[2].mxu0  ;;  %v881_v25 = vpop.f32.mrb[2].mxu1  ;;  %v967_v32 = vadd.f32 %v838_v21, %v25_v28  ;;  %v969_v33 = vadd.f32 %v879_v23, %v27_v30 }
 0x11b   : > { %v841_v26 = vpop.f32.mrb[3].mxu0  ;;  %v882_v27 = vpop.f32.mrb[3].mxu1  ;;  %v1182_v34 = vmul.f32 -1.442695, %v966_v29  ;;  %v1184_v35 = vmul.f32 -1.442695, %v968_v31 }
 0x11c   : > { %v1183_v36 = vmul.f32 -1.442695, %v967_v32  ;;  %v1185_v37 = vmul.f32 -1.442695, %v969_v33 }
 0x11d   : > { %1232 = vpow2.f32 %v1182_v34 }
 0x11e   : > { %1234 = vpow2.f32 %v1184_v35 }
 0x11f   : > { %1236 = vpow2.f32 %v1183_v36 }
 0x120   : > { %1238 = vpow2.f32 %v1185_v37 }
 0x127   : > { %v1233_v38 = vpop.eup %1232 }
 0x128   : > { %v1235_v39 = vpop.eup %1234  ;;  %v980_v42 = vadd.f32 1.0, %v1233_v38 }
 0x129   : > { %v1237_v40 = vpop.eup %1236  ;;  %v992_v43 = vadd.f32 1.0, %v1235_v39 }
 0x12a   : > { %v1239_v41 = vpop.eup %1238  ;;  %v981_v44 = vadd.f32 1.0, %v1237_v40  ;;  %1240 = vrcp.f32 %v980_v42 }
 0x12b   : > { %v993_v22 = vadd.f32 1.0, %v1239_v41  ;;  %1242 = vrcp.f32 %v992_v43 }
 0x12c   : > { %1244 = vrcp.f32 %v981_v44 }
 0x12d   : > { %1246 = vrcp.f32 %v993_v22 }
 0x134   : > { %v1241_v63 = vpop.eup %1240 }
 0x135   : > { %v1243_v2 = vpop.eup %1242 }
 0x136   : > { %v1245_v4 = vpop.eup %1244  ;;  %v1012_v8 = vmul.f32 %v1290_v1, %v1243_v2 }
 0x137   : > { %v1247_v5 = vpop.eup %1246 }
 0x138   : > { %v1013_v10 = vmul.f32 %v1286_v0, %v1247_v5 }
 0x158   : > { %v918_v48 = vpop.f32.mrb[4].mxu0  ;;  %v959_v51 = vpop.f32.mrb[4].mxu1 }
 0x159   : > { %v970_v50 = vadd.f32 %v918_v48, %v28_v45  ;;  %v920_v52 = vpop.f32.mrb[5].mxu0  ;;  %v972_v53 = vadd.f32 %v959_v51, %v30_v46  ;;  %v961_v55 = vpop.f32.mrb[5].mxu1 }
 0x15a   : > { %v971_v54 = vadd.f32 %v920_v52, %v29_v47  ;;  %v922_v56 = vpop.f32.mrb[6].mxu0  ;;  %v973_v57 = vadd.f32 %v961_v55, %v31_v49  ;;  %v963_v58 = vpop.f32.mrb[6].mxu1 }
 0x15b   : > { %1248 = vtanh.f32 %v970_v50  ;;  %v923_v59 = vpop.f32.mrb[7].mxu0  ;;  %v1186_v60 = vmul.f32 -1.442695, %v972_v53  ;;  %v964_v61 = vpop.f32.mrb[7].mxu1 }
 0x15c   : > { %1250 = vtanh.f32 %v971_v54  ;;  %v1187_v62 = vmul.f32 -1.442695, %v973_v57 }
 0x15d   : > { %1252 = vpow2.f32 %v1186_v60 }
 0x15e   : > { %1254 = vpow2.f32 %v1187_v62 }
 0x165   : > { %v1249_v6 = vpop.eup %1248 }
 0x166   : > { %v1251_v7 = vpop.eup %1250  ;;  %v1014_v9 = vmul.f32 %v1249_v6, %v1241_v63 }
 0x167   : > { %v1015_v11 = vmul.f32 %v1251_v7, %v1245_v4  ;;  %v1253_v12 = vpop.eup %1252 }
 0x168   : > { %v1016_v1 = vadd.f32 %v1014_v9, %v1012_v8   ;;  %v1255_v13 = vpop.eup %1254  ;;  %v1006_v14 = vadd.f32 1.0, %v1253_v12 }
 0x169   : > { %v1017_v0 = vadd.f32 %v1015_v11, %v1013_v10   ;;  %v1007_v15 = vadd.f32 1.0, %v1255_v13 }
 0x16a   : > { %1256 = vtanh.f32 %v1016_v1 }
 0x16b   : > { %1258 = vrcp.f32 %v1006_v14 }
 0x16c   : > { %1260 = vtanh.f32 %v1017_v0 }
 0x16d   : > { %1262 = vrcp.f32 %v1007_v15 }
 0x174   : > { %v1257_v16 = vpop.eup %1256  ;;  %15 = sbr.rel (!%p13_p0) target bundleno = 1 (0x1), region = 37 }
 0x175   : > { %v1259_v17 = vpop.eup %1258 }
 0x176   : > { %v1261_v18 = vpop.eup %1260  ;;  %v1020_v3 = vmul.f32 %v1259_v17, %v1257_v16  }
 0x177   : > { %v1263_v19 = vpop.eup %1262 }
 0x178   : > { %1025 = vst [vmem:[%s1024_s30] sm:$0xff] %v1020_v3  ;;  %v1021_v2 = vmul.f32 %v1263_v19, %v1261_v18  }
 0x17a   : > { %1026 = vst [vmem:[%s1024_s30 + $0x8] sm:$0xff] %v1021_v2 }

// kernel: frame_predictor_forward.20
= control target key start
LH: loop header
LB: loop body
LE: loop exit
PB: predicated region body
PF: predicated region fallthrough
CT: control target
= control target key end

     0   :  { %s861_s15 = smov 0   ;;  %s863_s16 = smov 0   ;;  %s976_s0 = inlined_call_operand.vmem [shape: bf16[4,128,64], index: 0, kind: input, shape index: {}]   ;;  %s977_s1 = inlined_call_operand.vmem [shape: bf16[4,64,8], index: 1, kind: input, shape index: {}]   ;;  %s978_s2 = inlined_call_operand.vmem [shape: f32[1,8], index: 2, kind: input, shape index: {}]   ;;  %s979_s3 = inlined_call_operand.vmem [shape: bf16[4,128,8], index: 3, kind: output, shape index: {0}]   ;;  %s980_s4 = inlined_call_operand.vmem [shape: f32[4,2,2,8], index: 4, kind: output, shape index: {1}]  }
   0x1   :  { %s865_s17 = smov 0   ;;  %s867_s18 = smov 0  }
   0x2   :  { %s869_s19 = smov 0  }
   0x3 LB: > { %s24_s20 = sadd.s32 1, %s826_s17  ;;  %s27_s21 = sadd.s32 1, %s830_s18  ;;  %s834_s19 = sphi %s869_s19, %s15_s19   ;;  %s830_s18 = sphi %s867_s18, %s984_s18   ;;  %s826_s17 = sphi %s865_s17, %s983_s17   ;;  %s822_s16 = sphi %s863_s16, %s982_s16   ;;  %s818_s15 = sphi %s861_s15, %s981_s15  }
   0x4   : > { %p25_p0 = scmp.ge.s32.totalorder %s24_s20, 2  ;;  %p673_p1 = scmp.ge.s32.totalorder %s834_s19, 1 }
   0x5   : > { %p198_p2 = scmp.lt.s32.totalorder %s834_s19, 9 }
   0x6   : > { %s986_s20 = smov (%p25_p0, %s24_s20), 0  ;;  %s988_s21 = smov (!%p25_p0, %s27_s21), %s830_s18 }
   0x7   : > { %p199_p3 = pnand %p673_p1, %p198_p2  ;;  %p29_p4 = scmp.ge.s32.totalorder %s988_s21, 4 }
   0x8   : > { %p246_p5 = scmp.lt.s32.totalorder (!%p199_p3), %s822_s16, 3  ;;  %s674_s22 = sshll.u32 (!%p199_p3), %s818_s15, 3  ;;  %vm346_vm0 = vcmask (!%p199_p3), 523264   ;;  %v684_v8 = vld [vmem:[%s978_s2] ss:$0 sm:$0xff] (!%p199_p3)  ;;  %vm456_vm1 = vcmask (!%p199_p3), 60416  }
   0x9   : > { %s990_s21 = smov (%p29_p4, %s988_s21), 0  ;;  %202 = sbr.rel (%p199_p3) target bundleno = 284 (0x11c), region = 32 }
   0xa   : > { %p248_p6 = scmp.lt.s32.totalorder (!%p199_p3), %s674_s22, 15  ;;  %vm465_vm2 = vcmask (!%p199_p3), 64512   ;;  %p272_p7 = scmp.lt.s32.totalorder (!%p199_p3), %s818_s15, 1  ;;  %vm516_vm3 = vcmask (!%p199_p3), 1040384   ;;  %vm518_vm4 = vcmask (!%p199_p3), 58368  }
  0x10   : > { %s992_s16 = smov (!%p246_p5, %s822_s16), 3  ;;  %s994_s22 = smov (!%p248_p6, %s674_s22), 15 }
  0x11   : > { %s707_s23 = sshll.u32 %s992_s16, 5  ;;  %s675_s24 = sshll.u32 %s992_s16, 4 }
  0x12   : > { %s259_s27 = scalar_lea.vmem %s977_s1, %s707_s23  ;;  %s901_s28 = sadd.s32 %s675_s24, %s994_s22 }
  0x13   : > { %v788_v0 = vld [vmem:[%s259_s27] sm:$0xff]   ;;  %s676_s29 = sshll.u32 %s901_s28, 2  ;;  %v789_v1 = vld [vmem:[%s259_s27 + $0x8] sm:$0xff]   ;;  %v790_v2 = vld [vmem:[%s259_s27 + $0x10] sm:$0xff]   ;;  %s996_s15 = smov (!%p272_p7, %s818_s15), 1 }
  0x14   : > { %s253_s6 = scalar_lea.vmem %s976_s0, %s676_s29  ;;  %724 = vmatprep.subr.bf16.mxu0 %v788_v0  ;;  %740 = vmatprep.subr.bf16.mxu1 %v788_v0  ;;  %v791_v5 = vld [vmem:[%s259_s27 + $0x18] sm:$0xff]   ;;  %s921_s11 = scalar_lea.vmem %s979_s3, %s676_s29 }
  0x15   : > { %725 = vmatpush3.bf16.msra.mxu0 %v788_v0  ;;  %744 = vmatpush3.bf16.msra.mxu1 %v788_v0  ;;  %v792_v3 = vld [vmem:[%s253_s6] sm:$0xff]   ;;  %v794_v4 = vld [vmem:[%s253_s6 + $0x10] sm:$0xff]   ;;  %v793_v6 = vld [vmem:[%s253_s6 + $0x8] sm:$0xff]   ;;  %s682_s12 = sshll.u32 %s992_s16, 1 }
  0x16   : > { %726 = vmatprep.subr.bf16.mxu0 %v789_v1  ;;  %741 = vmatprep.subr.bf16.mxu1 %v789_v1  ;;  %v795_v7 = vld [vmem:[%s253_s6 + $0x18] sm:$0xff]   ;;  %s275_s13 = sadd.s32 %s682_s12, %s996_s15 }
  0x17   : > { %732 = vmatprep.mubr.msk.bf16.mxu0 %vm346_vm0, %v792_v3  ;;  %736 = vmatprep.mubr.msk.bf16.mxu1 %vm346_vm0, %v794_v4  ;;  %s683_s14 = sshll.u32 %s275_s13, 1 }
  0x18   : > { %s277_s24 = scalar_lea.vmem %s980_s4, %s683_s14 }
  0x19   : > { %727 = vmatpush3.bf16.msra.mxu0 %v789_v1  ;;  %745 = vmatpush3.bf16.msra.mxu1 %v789_v1 }
  0x1a   : > { %728 = vmatprep.subr.bf16.mxu0 %v790_v2  ;;  %742 = vmatprep.subr.bf16.mxu1 %v790_v2 }
  0x1d   : > { %729 = vmatpush3.bf16.msra.mxu0 %v790_v2  ;;  %746 = vmatpush3.bf16.msra.mxu1 %v790_v2 }
  0x1e   : > { %730 = vmatprep.subr.bf16.mxu0 %v791_v5  ;;  %743 = vmatprep.subr.bf16.mxu1 %v791_v5 }
  0x21   : > { %731 = vmatpush3.bf16.msra.mxu0 %v791_v5  ;;  %747 = vmatpush3.bf16.msra.mxu1 %v791_v5 }
  0x24   : > { %733 = vmatmul.mubr.msk.bf16.vlgmr.msra.gmra.mrb[0].mxu0 %vm346_vm0, %v793_v6  ;;  %737 = vmatmul.mubr.msk.bf16.vlgmr.msra.gmra.mrb[0].mxu1 %vm346_vm0, %v795_v7 }
  0xf7   : > { %v734_v9 = vpop.f32.mrb[0].mxu0  ;;  %v738_v10 = vpop.f32.mrb[0].mxu1 }
  0xf8   : > { %v402_v11 = vadd.f32 %v734_v9, %v684_v8  ;;  %v393_v12 = vpop.f32.mrb[1].mxu0  ;;  %v409_v13 = vpop.f32.mrb[1].mxu1  ;;  %v418_v20 = vadd.f32 %v738_v10, %v684_v8 }
  0xf9   : > { %v394_v14 = vadd.f32 %v684_v8, %v393_v12  ;;  %v735_v15 = vpop.f32.mrb[2].mxu0  ;;  %v739_v16 = vpop.f32.mrb[2].mxu1  ;;  %v410_v25 = vadd.f32 %v684_v8, %v409_v13 }
  0xfa   : > { %v710_v17 = vpack.c.bf16 %v402_v11, %v402_v11  ;;  %v405_v18 = vadd.f32 %v735_v15, %v684_v8  ;;  %v396_v19 = vpop.f32.mrb[3].mxu0  ;;  %v412_v21 = vpop.f32.mrb[3].mxu1  ;;  %v489_v26 = vmul.f32 %v402_v11, %v402_v11  ;;  %v469_v32 = vsel %vm465_vm2, %v402_v11, 0.0 }
  0xfb   : > { %v708_v22 = vpack.c.bf16 %v394_v14, %v394_v14  ;;  %v487_v23 = vmul.f32 %v394_v14, %v394_v14  ;;  %v397_v24 = vadd.f32 %v684_v8, %v396_v19  ;;  %v466_v28 = vsel %vm465_vm2, %v394_v14, 0.0 }
  0xfc   : > { %459 = vst.msk [vmem:[%s921_s11 + $0x8] sm:$0xf] %vm456_vm1, %v710_v17  ;;  %v711_v27 = vpack.c.bf16 %v405_v18, %v405_v18  ;;  %v714_v34 = vpack.c.bf16 %v418_v20, %v418_v20  ;;  %v490_v36 = vmul.f32 %v405_v18, %v405_v18  ;;  %v712_v38 = vpack.c.bf16 %v410_v25, %v410_v25 }
  0xfd   : > { %457 = vst.msk [vmem:[%s921_s11] sm:$0xf] %vm456_vm1, %v708_v22  ;;  %v709_v29 = vpack.c.bf16 %v397_v24, %v397_v24  ;;  %v467_v30 = vsel %vm465_vm2, %v397_v24, 0.0  ;;  %v488_v31 = vmul.f32 %v397_v24, %v397_v24  ;;  %v495_v35 = vsel %vm465_vm2, %v487_v23, 0.0 }
  0xfe   : > { %460 = vst.msk [vmem:[%s921_s11 + $0xc] sm:$0xf] %vm456_vm1, %v711_v27  ;;  %v468_v33 = vadd.f32 %v467_v30, %v466_v28  ;;  %463 = vst.msk [vmem:[%s921_s11 + $0x18] sm:$0xf] %vm456_vm1, %v714_v34  ;;  %v491_v41 = vmul.f32 %v410_v25, %v410_v25  ;;  %v421_v42 = vadd.f32 %v739_v16, %v684_v8  ;;  %v498_v43 = vsel %vm465_vm2, %v489_v26, 0.0 }
  0xff   : > { %458 = vst.msk [vmem:[%s921_s11 + $0x4] sm:$0xf] %vm456_vm1, %v709_v29  ;;  %v496_v37 = vsel %vm465_vm2, %v488_v31, 0.0  ;;  %v471_v44 = vsel %vm465_vm2, %v405_v18, 0.0  ;;  %461 = vst.msk [vmem:[%s921_s11 + $0x10] sm:$0xf] %vm456_vm1, %v712_v38  ;;  %v413_v46 = vadd.f32 %v684_v8, %v412_v21  ;;  %v493_v56 = vmul.f32 %v418_v20, %v418_v20 }
 0x100   : > { %v470_v39 = vadd.f32 %v469_v32, %v468_v33  ;;  %v497_v40 = vadd.f32 %v496_v37, %v495_v35  ;;  %v473_v45 = vsel %vm465_vm2, %v410_v25, 0.0  ;;  %v715_v49 = vpack.c.bf16 %v421_v42, %v421_v42 }
 0x101   : > { %v500_v50 = vsel %vm465_vm2, %v490_v36, 0.0  ;;  %v502_v51 = vsel %vm465_vm2, %v491_v41, 0.0  ;;  %v713_v52 = vpack.c.bf16 %v413_v46, %v413_v46  ;;  %v492_v55 = vmul.f32 %v413_v46, %v413_v46 }
 0x102   : > { %v499_v47 = vadd.f32 %v498_v43, %v497_v40  ;;  %v472_v48 = vadd.f32 %v471_v44, %v470_v39  ;;  %464 = vst.msk [vmem:[%s921_s11 + $0x1c] sm:$0xf] %vm456_vm1, %v715_v49  ;;  %v475_v57 = vsel %vm465_vm2, %v413_v46, 0.0  ;;  %v477_v60 = vsel %vm465_vm2, %v418_v20, 0.0 }
 0x103   : > { %462 = vst.msk [vmem:[%s921_s11 + $0x14] sm:$0xf] %vm456_vm1, %v713_v52  ;;  %v494_v61 = vmul.f32 %v421_v42, %v421_v42  ;;  %v504_v62 = vsel %vm465_vm2, %v492_v55, 0.0  ;;  %v506_v1 = vsel %vm465_vm2, %v493_v56, 0.0  ;;  %v479_v2 = vsel %vm465_vm2, %v421_v42, 0.0 }
 0x104   : > { %v474_v53 = vadd.f32 %v473_v45, %v472_v48  ;;  %v501_v54 = vadd.f32 %v500_v50, %v499_v47 }
 0x105   : > { %v508_v5 = vsel %vm465_vm2, %v494_v61, 0.0 }
 0x106   : > { %v503_v58 = vadd.f32 %v502_v51, %v501_v54  ;;  %v476_v59 = vadd.f32 %v475_v57, %v474_v53 }
 0x108   : > { %v478_v63 = vadd.f32 %v477_v60, %v476_v59  ;;  %v505_v0 = vadd.f32 %v504_v62, %v503_v58 }
 0x10a   : > { %v480_v3 = vadd.f32 %v479_v2, %v478_v63  ;;  %v507_v4 = vadd.f32 %v506_v1, %v505_v0 }
 0x10c   : > { %v481_v6 = vrot.slane %v480_v3, 4  ;;  %v509_v7 = vadd.f32 %v508_v5, %v507_v4 }
 0x10e   : > { %v482_v8 = vadd.f32 %v481_v6, %v480_v3  ;;  %v510_v9 = vrot.slane %v509_v7, 4 }
 0x110   : > { %v483_v10 = vrot.slane %v482_v8, 2  ;;  %v511_v11 = vadd.f32 %v510_v9, %v509_v7 }
 0x112   : > { %v484_v12 = vadd.f32 %v483_v10, %v482_v8  ;;  %v512_v13 = vrot.slane %v511_v11, 2 }
 0x114   : > { %v485_v14 = vrot.slane %v484_v12, 1  ;;  %v513_v15 = vadd.f32 %v512_v13, %v511_v11 }
 0x116   : > { %v514_v16 = vrot.slane %v513_v15, 1  ;;  %v486_v17 = vadd.f32 %v485_v14, %v484_v12 }
 0x118   : > { %v515_v18 = vadd.f32 %v514_v16, %v513_v15 }
 0x11a   : > { %v517_v19 = vsel %vm516_vm3, %v486_v17, %v515_v18 }
 0x11b   : > { %519 = vst.msk [vmem:[%s277_s24] sm:$0x3] %vm518_vm4, %v517_v19 }
 0x11c PF: > { %s15_s19 = sadd.s32 1, %s834_s19   ;;  %s981_s15 = smov %s826_s17 }
 0x11d   : > { %p12_p8 = scmp.ge.s32.totalorder %s15_s19, 10   ;;  %s982_s16 = smov %s830_s18 }
 0x11e   : > { %s983_s17 = smov %s986_s20  ;;  %s984_s18 = smov %s990_s21 }
 0x11f   :  { %14 = sbr.rel (!%p12_p8) target bundleno = 3 (0x3), region = 77 }

// kernel: frame_predictor_forward.22
= control target key start
LH: loop header
LB: loop body
LE: loop exit
PB: predicated region body
PF: predicated region fallthrough
CT: control target
= control target key end

     0   :  { %s1407_s15 = smov 0   ;;  %s1409_s16 = smov 0   ;;  %s1774_s0 = inlined_call_operand.vmem [shape: bf16[4,512,32], index: 0, kind: input, shape index: {}]   ;;  %s1775_s1 = inlined_call_operand.vmem [shape: bf16[4,32,4], index: 1, kind: input, shape index: {}]   ;;  %s1776_s2 = inlined_call_operand.vmem [shape: f32[1,4], index: 2, kind: input, shape index: {}]   ;;  %s1777_s3 = inlined_call_operand.vmem [shape: bf16[4,512,4], index: 3, kind: output, shape index: {0}]   ;;  %s1778_s4 = inlined_call_operand.vmem [shape: f32[4,2,2,4], index: 4, kind: output, shape index: {1}]  }
   0x1   :  { %s1411_s17 = smov 0   ;;  %s1413_s18 = smov 0  }
   0x2   :  { %s1415_s19 = smov 0  }
   0x3 LB: > { %s24_s20 = sadd.s32 1, %s1372_s17  ;;  %s27_s21 = sadd.s32 1, %s1376_s18  ;;  %s1380_s19 = sphi %s1415_s19, %s15_s19   ;;  %s1376_s18 = sphi %s1413_s18, %s1782_s18   ;;  %s1372_s17 = sphi %s1411_s17, %s1781_s17   ;;  %s1368_s16 = sphi %s1409_s16, %s1780_s16   ;;  %s1364_s15 = sphi %s1407_s15, %s1779_s15  }
   0x4   : > { %p25_p0 = scmp.ge.s32.totalorder %s24_s20, 2  ;;  %p1113_p1 = scmp.ge.s32.totalorder %s1380_s19, 1 }
   0x5   : > { %p198_p2 = scmp.lt.s32.totalorder %s1380_s19, 9 }
   0x6   : > { %s1784_s20 = smov (%p25_p0, %s24_s20), 0  ;;  %s1786_s21 = smov (!%p25_p0, %s27_s21), %s1376_s18 }
   0x7   : > { %p199_p3 = pnand %p1113_p1, %p198_p2  ;;  %p29_p4 = scmp.ge.s32.totalorder %s1786_s21, 4 }
   0x8   : > { %s1114_s22 = sshll.u32 (!%p199_p3), %s1364_s15, 5  ;;  %p246_p5 = scmp.lt.s32.totalorder (!%p199_p3), %s1368_s16, 3  ;;  %vm414_vm0 = vcmask (!%p199_p3), 261120   ;;  %v1492_v18 = vld [vmem:[%s1776_s2] ss:$0 sm:$0xff] (!%p199_p3)  ;;  %vm752_vm1 = vcmask (!%p199_p3), 27648  }
   0x9   : > { %s1788_s21 = smov (%p29_p4, %s1786_s21), 0  ;;  %202 = sbr.rel (%p199_p3) target bundleno = 324 (0x144), region = 32 }
   0xa   : > { %p248_p6 = scmp.lt.s32.totalorder (!%p199_p3), %s1114_s22, 63  ;;  %vm785_vm2 = vcmask (!%p199_p3), 31744   ;;  %p272_p7 = scmp.lt.s32.totalorder (!%p199_p3), %s1364_s15, 1  ;;  %vm956_vm3 = vcmask (!%p199_p3), 1040384   ;;  %vm958_vm4 = vcmask (!%p199_p3), 25600  }
  0x10   : > { %s1790_s16 = smov (!%p246_p5, %s1368_s16), 3  ;;  %s1792_s22 = smov (!%p248_p6, %s1114_s22), 63 }
  0x11   : > { %s1115_s23 = sshll.u32 %s1790_s16, 6  ;;  %s1193_s24 = sshll.u32 %s1790_s16, 4 }
  0x12   : > { %s1444_s25 = sadd.s32 %s1115_s23, %s1792_s22  ;;  %s259_s28 = scalar_lea.vmem %s1775_s1, %s1193_s24 }
  0x13   : > { %s1116_s29 = sshll.u32 %s1444_s25, 2  ;;  %v1324_v0 = vld [vmem:[%s259_s28] sm:$0xff]   ;;  %v1325_v1 = vld [vmem:[%s259_s28 + $0x8] sm:$0xff]   ;;  %s1794_s15 = smov (!%p272_p7, %s1364_s15), 1 }
  0x14   : > { %s1455_s6 = scalar_lea.vmem %s1774_s0, %s1116_s29  ;;  %1244 = vmatprep.subr.bf16.mxu0 %v1324_v0  ;;  %1280 = vmatprep.subr.bf16.mxu1 %v1324_v0  ;;  %s1500_s11 = scalar_lea.vmem %s1777_s3, %s1116_s29 }
  0x15   : > { %v1326_v2 = vld [vmem:[%s1455_s6] sm:$0xff]   ;;  %1245 = vmatpush3.bf16.msra.mxu0 %v1324_v0  ;;  %1282 = vmatpush3.bf16.msra.mxu1 %v1324_v0  ;;  %v1327_v3 = vld [vmem:[%s1455_s6 + $0x8] sm:$0xff]   ;;  %v1328_v4 = vld [vmem:[%s1455_s6 + $0x10] sm:$0xff]   ;;  %s1122_s12 = sshll.u32 %s1790_s16, 1 }
  0x16   : > { %1246 = vmatprep.subr.bf16.mxu0 %v1325_v1  ;;  %1248 = vmatprep.mubr.msk.bf16.mxu0 %vm414_vm0, %v1326_v2  ;;  %v1334_v5 = vld [vmem:[%s1455_s6 + $0x40] sm:$0xff]   ;;  %v1335_v6 = vld [vmem:[%s1455_s6 + $0x48] sm:$0xff]   ;;  %v1336_v7 = vld [vmem:[%s1455_s6 + $0x50] sm:$0xff]   ;;  %s275_s13 = sadd.s32 %s1122_s12, %s1794_s15 }
  0x17   : > { %1281 = vmatprep.subr.bf16.mxu1 %v1325_v1  ;;  %1264 = vmatprep.mubr.msk.bf16.mxu1 %vm414_vm0, %v1334_v5  ;;  %v1329_v8 = vld [vmem:[%s1455_s6 + $0x18] sm:$0xff]   ;;  %v1330_v9 = vld [vmem:[%s1455_s6 + $0x20] sm:$0xff]   ;;  %v1331_v12 = vld [vmem:[%s1455_s6 + $0x28] sm:$0xff]   ;;  %s1123_s14 = sshll.u32 %s275_s13, 1 }
  0x18   : > { %v1337_v10 = vld [vmem:[%s1455_s6 + $0x58] sm:$0xff]   ;;  %v1338_v11 = vld [vmem:[%s1455_s6 + $0x60] sm:$0xff]   ;;  %v1332_v13 = vld [vmem:[%s1455_s6 + $0x30] sm:$0xff]   ;;  %s277_s24 = scalar_lea.vmem %s1778_s4, %s1123_s14 }
  0x19   : > { %1247 = vmatpush3.bf16.msra.mxu0 %v1325_v1  ;;  %1283 = vmatpush3.bf16.msra.mxu1 %v1325_v1  ;;  %v1339_v14 = vld [vmem:[%s1455_s6 + $0x68] sm:$0xff]   ;;  %v1340_v15 = vld [vmem:[%s1455_s6 + $0x70] sm:$0xff]   ;;  %v1333_v16 = vld [vmem:[%s1455_s6 + $0x38] sm:$0xff]  }
  0x1a   : > { %v1341_v17 = vld [vmem:[%s1455_s6 + $0x78] sm:$0xff]  }
  0x1c   : > { %1249 = vmatmul.mubr.msk.bf16.vlgmr.msra.gmra.mrb[0].mxu0 %vm414_vm0, %v1327_v3  ;;  %1265 = vmatmul.mubr.msk.bf16.vlgmr.msra.gmra.mrb[0].mxu1 %vm414_vm0, %v1335_v6 }
  0x1d   : > { %1252 = vmatprep.mubr.msk.bf16.mxu0 %vm414_vm0, %v1328_v4  ;;  %1268 = vmatprep.mubr.msk.bf16.mxu1 %vm414_vm0, %v1336_v7 }
  0x24   : > { %1253 = vmatmul.mubr.msk.bf16.gmra.mrb[4].mxu0 %vm414_vm0, %v1329_v8  ;;  %1269 = vmatmul.mubr.msk.bf16.gmra.mrb[4].mxu1 %vm414_vm0, %v1337_v10 }
  0x25   : > { %1256 = vmatprep.mubr.msk.bf16.mxu0 %vm414_vm0, %v1330_v9  ;;  %1272 = vmatprep.mubr.msk.bf16.mxu1 %vm414_vm0, %v1338_v11 }
  0x2c   : > { %1257 = vmatmul.mubr.msk.bf16.gmra.mrb[8].mxu0 %vm414_vm0, %v1331_v12  ;;  %1273 = vmatmul.mubr.msk.bf16.gmra.mrb[8].mxu1 %vm414_vm0, %v1339_v14 }
  0x2d   : > { %1260 = vmatprep.mubr.msk.bf16.mxu0 %vm414_vm0, %v1332_v13  ;;  %1276 = vmatprep.mubr.msk.bf16.mxu1 %vm414_vm0, %v1340_v15 }
  0x34   : > { %1261 = vmatmul.mubr.msk.bf16.gmra.mrb[12].mxu0 %vm414_vm0, %v1333_v16  ;;  %1277 = vmatmul.mubr.msk.bf16.gmra.mrb[12].mxu1 %vm414_vm0, %v1341_v17 }
  0xef   : > { %v1250_v19 = vpop.f32.mrb[0].mxu0  ;;  %v1266_v27 = vpop.f32.mrb[0].mxu1 }
  0xf0   : > { %v506_v20 = vadd.f32 %v1250_v19, %v1492_v18  ;;  %v497_v21 = vpop.f32.mrb[1].mxu0  ;;  %v561_v31 = vpop.f32.mrb[1].mxu1  ;;  %v1514_v42 = vadd.f32 %v1266_v27, %v1492_v18 }
  0xf1   : > { %v498_v22 = vadd.f32 %v1492_v18, %v497_v21  ;;  %v1251_v23 = vpop.f32.mrb[2].mxu0  ;;  %v1267_v34 = vpop.f32.mrb[2].mxu1  ;;  %v1517_v43 = vadd.f32 %v1492_v18, %v561_v31 }
  0xf2   : > { %v1196_v24 = vpack.c.bf16 %v506_v20, %v506_v20  ;;  %v509_v25 = vadd.f32 %v1251_v23, %v1492_v18  ;;  %v500_v26 = vpop.f32.mrb[3].mxu0  ;;  %v857_v32 = vmul.f32 %v506_v20, %v506_v20  ;;  %v564_v39 = vpop.f32.mrb[3].mxu1  ;;  %v789_v44 = vsel %vm785_vm2, %v506_v20, 0.0 }
  0xf3   : > { %v1194_v28 = vpack.c.bf16 %v498_v22, %v498_v22  ;;  %v855_v29 = vmul.f32 %v498_v22, %v498_v22  ;;  %v501_v30 = vadd.f32 %v1492_v18, %v500_v26  ;;  %v786_v35 = vsel %vm785_vm2, %v498_v22, 0.0 }
  0xf4   : > { %755 = vst.msk [vmem:[%s1500_s11 + $0x8] sm:$0xf] %vm752_vm1, %v1196_v24  ;;  %v1197_v33 = vpack.c.bf16 %v509_v25, %v509_v25  ;;  %v858_v40 = vmul.f32 %v509_v25, %v509_v25  ;;  %v1212_v52 = vpack.c.bf16 %v1514_v42, %v1514_v42  ;;  %v890_v53 = vsel %vm785_vm2, %v857_v32, 0.0 }
  0xf5   : > { %753 = vst.msk [vmem:[%s1500_s11] sm:$0xf] %vm752_vm1, %v1194_v28  ;;  %v1195_v36 = vpack.c.bf16 %v501_v30, %v501_v30  ;;  %v787_v37 = vsel %vm785_vm2, %v501_v30, 0.0  ;;  %v856_v38 = vmul.f32 %v501_v30, %v501_v30  ;;  %v887_v45 = vsel %vm785_vm2, %v855_v29, 0.0 }
  0xf6   : > { %756 = vst.msk [vmem:[%s1500_s11 + $0xc] sm:$0xf] %vm752_vm1, %v1197_v33  ;;  %v788_v41 = vadd.f32 %v787_v37, %v786_v35  ;;  %v1210_v56 = vpack.c.bf16 %v1517_v43, %v1517_v43  ;;  %v791_v57 = vsel %vm785_vm2, %v509_v25, 0.0  ;;  %v892_v58 = vsel %vm785_vm2, %v858_v40, 0.0  ;;  %771 = vst.msk [vmem:[%s1500_s11 + $0x48] sm:$0xf] %vm752_vm1, %v1212_v52 }
  0xf7   : > { %754 = vst.msk [vmem:[%s1500_s11 + $0x4] sm:$0xf] %vm752_vm1, %v1195_v36  ;;  %v888_v46 = vsel %vm785_vm2, %v856_v38, 0.0  ;;  %v1254_v47 = vpop.f32.mrb[4].mxu0  ;;  %v1535_v62 = vpop.f32.mrb[4].mxu1  ;;  %v1547_v7 = vadd.f32 %v1267_v34, %v1492_v18  ;;  %v1563_v24 = vadd.f32 %v1492_v18, %v564_v39 }
  0xf8   : > { %v790_v48 = vadd.f32 %v789_v44, %v788_v41  ;;  %v889_v49 = vadd.f32 %v888_v46, %v887_v45  ;;  %v522_v50 = vadd.f32 %v1254_v47, %v1492_v18  ;;  %v513_v51 = vpop.f32.mrb[5].mxu0  ;;  %769 = vst.msk [vmem:[%s1500_s11 + $0x40] sm:$0xf] %vm752_vm1, %v1210_v56  ;;  %v1540_v3 = vpop.f32.mrb[5].mxu1 }
  0xf9   : > { %v514_v54 = vadd.f32 %v1492_v18, %v513_v51  ;;  %v1255_v55 = vpop.f32.mrb[6].mxu0  ;;  %v1549_v8 = vpop.f32.mrb[6].mxu1  ;;  %v1213_v23 = vpack.c.bf16 %v1547_v7, %v1547_v7 }
  0xfa   : > { %v891_v59 = vadd.f32 %v890_v53, %v889_v49  ;;  %v1200_v60 = vpack.c.bf16 %v522_v50, %v522_v50  ;;  %v516_v61 = vpop.f32.mrb[7].mxu0  ;;  %v792_v0 = vadd.f32 %v791_v57, %v790_v48  ;;  %v525_v5 = vadd.f32 %v1255_v55, %v1492_v18  ;;  %v1554_v11 = vpop.f32.mrb[7].mxu1 }
  0xfb   : > { %v1198_v63 = vpack.c.bf16 %v514_v54, %v514_v54  ;;  %v793_v1 = vsel %vm785_vm2, %v514_v54, 0.0  ;;  %v859_v2 = vmul.f32 %v514_v54, %v514_v54  ;;  %v517_v6 = vadd.f32 %v1492_v18, %v516_v61  ;;  %772 = vst.msk [vmem:[%s1500_s11 + $0x4c] sm:$0xf] %vm752_vm1, %v1213_v23 }
  0xfc   : > { %759 = vst.msk [vmem:[%s1500_s11 + $0x18] sm:$0xf] %vm752_vm1, %v1200_v60  ;;  %v893_v4 = vadd.f32 %v892_v58, %v891_v59  ;;  %v794_v9 = vadd.f32 %v793_v1, %v792_v0  ;;  %v861_v12 = vmul.f32 %v522_v50, %v522_v50  ;;  %v1201_v14 = vpack.c.bf16 %v525_v5, %v525_v5 }
  0xfd   : > { %757 = vst.msk [vmem:[%s1500_s11 + $0x10] sm:$0xf] %vm752_vm1, %v1198_v63  ;;  %v894_v10 = vsel %vm785_vm2, %v859_v2, 0.0  ;;  %v1199_v15 = vpack.c.bf16 %v517_v6, %v517_v6  ;;  %v795_v16 = vsel %vm785_vm2, %v517_v6, 0.0  ;;  %v860_v17 = vmul.f32 %v517_v6, %v517_v6 }
  0xfe   : > { %v895_v13 = vadd.f32 %v894_v10, %v893_v4  ;;  %760 = vst.msk [vmem:[%s1500_s11 + $0x1c] sm:$0xf] %vm752_vm1, %v1201_v14  ;;  %v796_v20 = vadd.f32 %v795_v16, %v794_v9  ;;  %v797_v25 = vsel %vm785_vm2, %v522_v50, 0.0  ;;  %v862_v26 = vmul.f32 %v525_v5, %v525_v5 }
  0xff   : > { %v1258_v19 = vpop.f32.mrb[8].mxu0  ;;  %758 = vst.msk [vmem:[%s1500_s11 + $0x14] sm:$0xf] %vm752_vm1, %v1199_v15  ;;  %v896_v27 = vsel %vm785_vm2, %v860_v17, 0.0  ;;  %v898_v30 = vsel %vm785_vm2, %v861_v12, 0.0  ;;  %v1573_v35 = vpop.f32.mrb[8].mxu1  ;;  %v1211_v50 = vpack.c.bf16 %v1563_v24, %v1563_v24 }
 0x100   : > { %v538_v21 = vadd.f32 %v1258_v19, %v1492_v18  ;;  %v529_v22 = vpop.f32.mrb[9].mxu0  ;;  %v798_v31 = vadd.f32 %v797_v25, %v796_v20  ;;  %v897_v32 = vadd.f32 %v896_v27, %v895_v13  ;;  %v799_v36 = vsel %vm785_vm2, %v525_v5, 0.0  ;;  %v1577_v40 = vpop.f32.mrb[9].mxu1 }
 0x101   : > { %v530_v28 = vadd.f32 %v1492_v18, %v529_v22  ;;  %v1259_v29 = vpop.f32.mrb[10].mxu0  ;;  %v1583_v47 = vpop.f32.mrb[10].mxu1  ;;  %v900_v48 = vsel %vm785_vm2, %v862_v26, 0.0  ;;  %770 = vst.msk [vmem:[%s1500_s11 + $0x44] sm:$0xf] %vm752_vm1, %v1211_v50 }
 0x102   : > { %v1204_v33 = vpack.c.bf16 %v538_v21, %v538_v21  ;;  %v532_v34 = vpop.f32.mrb[11].mxu0  ;;  %v899_v41 = vadd.f32 %v898_v30, %v897_v32  ;;  %v800_v44 = vadd.f32 %v799_v36, %v798_v31  ;;  %v541_v45 = vadd.f32 %v1259_v29, %v1492_v18  ;;  %v1591_v51 = vpop.f32.mrb[11].mxu1 }
 0x103   : > { %v1202_v37 = vpack.c.bf16 %v530_v28, %v530_v28  ;;  %v801_v38 = vsel %vm785_vm2, %v530_v28, 0.0  ;;  %v863_v39 = vmul.f32 %v530_v28, %v530_v28  ;;  %v533_v46 = vadd.f32 %v1492_v18, %v532_v34 }
 0x104   : > { %763 = vst.msk [vmem:[%s1500_s11 + $0x28] sm:$0xf] %vm752_vm1, %v1204_v33  ;;  %v865_v52 = vmul.f32 %v538_v21, %v538_v21  ;;  %v802_v53 = vadd.f32 %v801_v38, %v800_v44  ;;  %v901_v54 = vadd.f32 %v900_v48, %v899_v41  ;;  %v1205_v55 = vpack.c.bf16 %v541_v45, %v541_v45 }
 0x105   : > { %761 = vst.msk [vmem:[%s1500_s11 + $0x20] sm:$0xf] %vm752_vm1, %v1202_v37  ;;  %v902_v49 = vsel %vm785_vm2, %v863_v39, 0.0  ;;  %v1203_v56 = vpack.c.bf16 %v533_v46, %v533_v46  ;;  %v803_v57 = vsel %vm785_vm2, %v533_v46, 0.0  ;;  %v864_v58 = vmul.f32 %v533_v46, %v533_v46 }
 0x106   : > { %v903_v60 = vadd.f32 %v902_v49, %v901_v54  ;;  %764 = vst.msk [vmem:[%s1500_s11 + $0x2c] sm:$0xf] %vm752_vm1, %v1205_v55  ;;  %v804_v61 = vadd.f32 %v803_v57, %v802_v53  ;;  %v805_v1 = vsel %vm785_vm2, %v538_v21, 0.0  ;;  %v866_v2 = vmul.f32 %v541_v45, %v541_v45 }
 0x107   : > { %v1262_v59 = vpop.f32.mrb[12].mxu0  ;;  %762 = vst.msk [vmem:[%s1500_s11 + $0x24] sm:$0xf] %vm752_vm1, %v1203_v56  ;;  %v904_v4 = vsel %vm785_vm2, %v864_v58, 0.0  ;;  %v906_v9 = vsel %vm785_vm2, %v865_v52, 0.0  ;;  %v1605_v15 = vpop.f32.mrb[12].mxu1  ;;  %v1623_v30 = vadd.f32 %v1535_v62, %v1492_v18  ;;  %v873_v36 = vmul.f32 %v1514_v42, %v1514_v42 }
 0x108   : > { %v554_v63 = vadd.f32 %v1262_v59, %v1492_v18  ;;  %v545_v0 = vpop.f32.mrb[13].mxu0  ;;  %v806_v10 = vadd.f32 %v805_v1, %v804_v61  ;;  %v905_v12 = vadd.f32 %v904_v4, %v903_v60  ;;  %v807_v16 = vsel %vm785_vm2, %v541_v45, 0.0  ;;  %v1609_v21 = vpop.f32.mrb[13].mxu1 }
 0x109   : > { %v546_v5 = vadd.f32 %v1492_v18, %v545_v0  ;;  %v1263_v6 = vpop.f32.mrb[14].mxu0  ;;  %v1615_v27 = vpop.f32.mrb[14].mxu1  ;;  %v908_v28 = vsel %vm785_vm2, %v866_v2, 0.0  ;;  %v871_v45 = vmul.f32 %v1517_v43, %v1517_v43  ;;  %v1216_v46 = vpack.c.bf16 %v1623_v30, %v1623_v30 }
 0x10a   : > { %v1208_v13 = vpack.c.bf16 %v554_v63, %v554_v63  ;;  %v548_v14 = vpop.f32.mrb[15].mxu0  ;;  %v907_v22 = vadd.f32 %v906_v9, %v905_v12  ;;  %v808_v23 = vadd.f32 %v807_v16, %v806_v10  ;;  %v557_v25 = vadd.f32 %v1263_v6, %v1492_v18  ;;  %v1625_v31 = vpop.f32.mrb[15].mxu1 }
 0x10b   : > { %v1206_v17 = vpack.c.bf16 %v546_v5, %v546_v5  ;;  %v809_v19 = vsel %vm785_vm2, %v546_v5, 0.0  ;;  %v867_v20 = vmul.f32 %v546_v5, %v546_v5  ;;  %v549_v26 = vadd.f32 %v1492_v18, %v548_v14  ;;  %775 = vst.msk [vmem:[%s1500_s11 + $0x58] sm:$0xf] %vm752_vm1, %v1216_v46 }
 0x10c   : > { %767 = vst.msk [vmem:[%s1500_s11 + $0x38] sm:$0xf] %vm752_vm1, %v1208_v13  ;;  %v810_v32 = vadd.f32 %v809_v19, %v808_v23  ;;  %v909_v33 = vadd.f32 %v908_v28, %v907_v22  ;;  %v1209_v34 = vpack.c.bf16 %v557_v25, %v557_v25  ;;  %v869_v37 = vmul.f32 %v554_v63, %v554_v63 }
 0x10d   : > { %765 = vst.msk [vmem:[%s1500_s11 + $0x30] sm:$0xf] %vm752_vm1, %v1206_v17  ;;  %v910_v29 = vsel %vm785_vm2, %v867_v20, 0.0  ;;  %v1207_v38 = vpack.c.bf16 %v549_v26, %v549_v26  ;;  %v811_v39 = vsel %vm785_vm2, %v549_v26, 0.0  ;;  %v868_v41 = vmul.f32 %v549_v26, %v549_v26 }
 0x10e   : > { %v911_v44 = vadd.f32 %v910_v29, %v909_v33  ;;  %768 = vst.msk [vmem:[%s1500_s11 + $0x3c] sm:$0xf] %vm752_vm1, %v1209_v34  ;;  %v812_v62 = vadd.f32 %v811_v39, %v810_v32  ;;  %v813_v48 = vsel %vm785_vm2, %v554_v63, 0.0  ;;  %v870_v49 = vmul.f32 %v557_v25, %v557_v25 }
 0x10f   : > { %766 = vst.msk [vmem:[%s1500_s11 + $0x34] sm:$0xf] %vm752_vm1, %v1207_v38  ;;  %v912_v50 = vsel %vm785_vm2, %v868_v41, 0.0  ;;  %v817_v52 = vsel %vm785_vm2, %v1517_v43, 0.0  ;;  %v578_v55 = vadd.f32 %v1492_v18, %v1540_v3  ;;  %v1648_v56 = vadd.f32 %v1549_v8, %v1492_v18 }
 0x110   : > { %v814_v53 = vadd.f32 %v813_v48, %v812_v62  ;;  %v913_v54 = vadd.f32 %v912_v50, %v911_v44  ;;  %v914_v57 = vsel %vm785_vm2, %v869_v37, 0.0  ;;  %v815_v58 = vsel %vm785_vm2, %v557_v25, 0.0 }
 0x111   : > { %v581_v43 = vadd.f32 %v1492_v18, %v1554_v11  ;;  %v1656_v59 = vadd.f32 %v1573_v35, %v1492_v18  ;;  %v918_v3 = vsel %vm785_vm2, %v871_v45, 0.0  ;;  %v1214_v63 = vpack.c.bf16 %v578_v55, %v578_v55 }
 0x112   : > { %v915_v60 = vadd.f32 %v914_v57, %v913_v54  ;;  %v816_v61 = vadd.f32 %v815_v58, %v814_v53  ;;  %v916_v8 = vsel %vm785_vm2, %v870_v49, 0.0  ;;  %v872_v0 = vmul.f32 %v1563_v24, %v1563_v24 }
 0x113   : > { %v1217_v1 = vpack.c.bf16 %v1648_v56, %v1648_v56  ;;  %v594_v11 = vadd.f32 %v1492_v18, %v1577_v40  ;;  %773 = vst.msk [vmem:[%s1500_s11 + $0x50] sm:$0xf] %vm752_vm1, %v1214_v63  ;;  %v1215_v4 = vpack.c.bf16 %v581_v43, %v581_v43  ;;  %v819_v5 = vsel %vm785_vm2, %v1563_v24, 0.0 }
 0x114   : > { %v818_v35 = vadd.f32 %v817_v52, %v816_v61  ;;  %v917_v2 = vadd.f32 %v916_v8, %v915_v60  ;;  %v1220_v6 = vpack.c.bf16 %v1656_v59, %v1656_v59  ;;  %v821_v9 = vsel %vm785_vm2, %v1514_v42, 0.0 }
 0x115   : > { %776 = vst.msk [vmem:[%s1500_s11 + $0x5c] sm:$0xf] %vm752_vm1, %v1217_v1  ;;  %v922_v40 = vsel %vm785_vm2, %v873_v36, 0.0  ;;  %774 = vst.msk [vmem:[%s1500_s11 + $0x54] sm:$0xf] %vm752_vm1, %v1215_v4  ;;  %v874_v13 = vmul.f32 %v1547_v7, %v1547_v7  ;;  %v920_v24 = vsel %vm785_vm2, %v872_v0, 0.0  ;;  %v875_v14 = vmul.f32 %v578_v55, %v578_v55 }
 0x116   : > { %v919_v10 = vadd.f32 %v918_v3, %v917_v2  ;;  %v820_v12 = vadd.f32 %v819_v5, %v818_v35  ;;  %779 = vst.msk [vmem:[%s1500_s11 + $0x68] sm:$0xf] %vm752_vm1, %v1220_v6  ;;  %v1218_v16 = vpack.c.bf16 %v594_v11, %v594_v11  ;;  %v823_v17 = vsel %vm785_vm2, %v1547_v7, 0.0 }
 0x117   : > { %v605_v20 = vadd.f32 %v1583_v47, %v1492_v18  ;;  %v825_v22 = vsel %vm785_vm2, %v578_v55, 0.0  ;;  %v597_v23 = vadd.f32 %v1492_v18, %v1591_v51  ;;  %v1695_v25 = vadd.f32 %v1605_v15, %v1492_v18 }
 0x118   : > { %v822_v19 = vadd.f32 %v821_v9, %v820_v12  ;;  %v921_v42 = vadd.f32 %v920_v24, %v919_v10  ;;  %777 = vst.msk [vmem:[%s1500_s11 + $0x60] sm:$0xf] %vm752_vm1, %v1218_v16  ;;  %v610_v7 = vadd.f32 %v1492_v18, %v1609_v21  ;;  %v924_v47 = vsel %vm785_vm2, %v874_v13, 0.0 }
 0x119   : > { %v1221_v29 = vpack.c.bf16 %v605_v20, %v605_v20  ;;  %v926_v32 = vsel %vm785_vm2, %v875_v14, 0.0  ;;  %v876_v33 = vmul.f32 %v581_v43, %v581_v43  ;;  %v1219_v34 = vpack.c.bf16 %v597_v23, %v597_v23 }
 0x11a   : > { %v923_v26 = vadd.f32 %v922_v40, %v921_v42  ;;  %v824_v28 = vadd.f32 %v823_v17, %v822_v19  ;;  %v877_v51 = vmul.f32 %v1623_v30, %v1623_v30  ;;  %v1224_v21 = vpack.c.bf16 %v1695_v25, %v1695_v25 }
 0x11b   : > { %780 = vst.msk [vmem:[%s1500_s11 + $0x6c] sm:$0xf] %vm752_vm1, %v1221_v29  ;;  %v827_v37 = vsel %vm785_vm2, %v581_v43, 0.0  ;;  %778 = vst.msk [vmem:[%s1500_s11 + $0x64] sm:$0xf] %vm752_vm1, %v1219_v34  ;;  %v1222_v38 = vpack.c.bf16 %v610_v7, %v610_v7  ;;  %v829_v39 = vsel %vm785_vm2, %v1623_v30, 0.0  ;;  %v878_v44 = vmul.f32 %v1648_v56, %v1648_v56 }
 0x11c   : > { %v826_v36 = vadd.f32 %v825_v22, %v824_v28  ;;  %v925_v15 = vadd.f32 %v924_v47, %v923_v26  ;;  %783 = vst.msk [vmem:[%s1500_s11 + $0x78] sm:$0xf] %vm752_vm1, %v1224_v21  ;;  %v928_v45 = vsel %vm785_vm2, %v876_v33, 0.0  ;;  %v879_v46 = vmul.f32 %v594_v11, %v594_v11 }
 0x11d   : > { %781 = vst.msk [vmem:[%s1500_s11 + $0x70] sm:$0xf] %vm752_vm1, %v1222_v38  ;;  %v621_v48 = vadd.f32 %v1615_v27, %v1492_v18  ;;  %v613_v30 = vadd.f32 %v1492_v18, %v1625_v31  ;;  %v930_v49 = vsel %vm785_vm2, %v877_v51, 0.0  ;;  %v831_v53 = vsel %vm785_vm2, %v1648_v56, 0.0 }
 0x11e   : > { %v927_v41 = vadd.f32 %v926_v32, %v925_v15  ;;  %v828_v62 = vadd.f32 %v827_v37, %v826_v36  ;;  %v833_v54 = vsel %vm785_vm2, %v594_v11, 0.0  ;;  %v932_v60 = vsel %vm785_vm2, %v878_v44, 0.0 }
 0x11f   : > { %v1225_v55 = vpack.c.bf16 %v621_v48, %v621_v48  ;;  %v1223_v57 = vpack.c.bf16 %v613_v30, %v613_v30  ;;  %v934_v27 = vsel %vm785_vm2, %v879_v46, 0.0  ;;  %v880_v61 = vmul.f32 %v597_v23, %v597_v23 }
 0x120   : > { %v830_v50 = vadd.f32 %v829_v39, %v828_v62  ;;  %v929_v52 = vadd.f32 %v928_v45, %v927_v41  ;;  %v881_v56 = vmul.f32 %v1656_v59, %v1656_v59  ;;  %v835_v3 = vsel %vm785_vm2, %v597_v23, 0.0 }
 0x121   : > { %784 = vst.msk [vmem:[%s1500_s11 + $0x7c] sm:$0xf] %vm752_vm1, %v1225_v55  ;;  %782 = vst.msk [vmem:[%s1500_s11 + $0x74] sm:$0xf] %vm752_vm1, %v1223_v57  ;;  %v837_v0 = vsel %vm785_vm2, %v1656_v59, 0.0  ;;  %v882_v1 = vmul.f32 %v605_v20, %v605_v20  ;;  %v936_v11 = vsel %vm785_vm2, %v880_v61, 0.0  ;;  %v883_v35 = vmul.f32 %v610_v7, %v610_v7 }
 0x122   : > { %v931_v58 = vadd.f32 %v930_v49, %v929_v52  ;;  %v832_v43 = vadd.f32 %v831_v53, %v830_v50  ;;  %v938_v5 = vsel %vm785_vm2, %v881_v56, 0.0  ;;  %v839_v6 = vsel %vm785_vm2, %v605_v20, 0.0 }
 0x123   : > { %v841_v9 = vsel %vm785_vm2, %v610_v7, 0.0  ;;  %v940_v12 = vsel %vm785_vm2, %v882_v1, 0.0  ;;  %v942_v13 = vsel %vm785_vm2, %v883_v35, 0.0  ;;  %v884_v59 = vmul.f32 %v613_v30, %v613_v30 }
 0x124   : > { %v834_v18 = vadd.f32 %v833_v54, %v832_v43  ;;  %v933_v31 = vadd.f32 %v932_v60, %v931_v58  ;;  %v885_v16 = vmul.f32 %v1695_v25, %v1695_v25  ;;  %v843_v17 = vsel %vm785_vm2, %v613_v30, 0.0 }
 0x125   : > { %v845_v20 = vsel %vm785_vm2, %v1695_v25, 0.0  ;;  %v886_v22 = vmul.f32 %v621_v48, %v621_v48  ;;  %v944_v23 = vsel %vm785_vm2, %v884_v59, 0.0  ;;  %v847_v29 = vsel %vm785_vm2, %v621_v48, 0.0 }
 0x126   : > { %v935_v63 = vadd.f32 %v934_v27, %v933_v31  ;;  %v836_v8 = vadd.f32 %v835_v3, %v834_v18  ;;  %v946_v28 = vsel %vm785_vm2, %v885_v16, 0.0 }
 0x127   : > { %v948_v33 = vsel %vm785_vm2, %v886_v22, 0.0 }
 0x128   : > { %v838_v2 = vadd.f32 %v837_v0, %v836_v8  ;;  %v937_v4 = vadd.f32 %v936_v11, %v935_v63 }
 0x12a   : > { %v939_v40 = vadd.f32 %v938_v5, %v937_v4  ;;  %v840_v10 = vadd.f32 %v839_v6, %v838_v2 }
 0x12c   : > { %v842_v24 = vadd.f32 %v841_v9, %v840_v10  ;;  %v941_v14 = vadd.f32 %v940_v12, %v939_v40 }
 0x12e   : > { %v943_v19 = vadd.f32 %v942_v13, %v941_v14  ;;  %v844_v42 = vadd.f32 %v843_v17, %v842_v24 }
 0x130   : > { %v846_v7 = vadd.f32 %v845_v20, %v844_v42  ;;  %v945_v26 = vadd.f32 %v944_v23, %v943_v19 }
 0x132   : > { %v848_v47 = vadd.f32 %v847_v29, %v846_v7  ;;  %v947_v32 = vadd.f32 %v946_v28, %v945_v26 }
 0x134   : > { %v849_v34 = vrot.slane %v848_v47, 4  ;;  %v949_v51 = vadd.f32 %v948_v33, %v947_v32 }
 0x136   : > { %v850_v36 = vadd.f32 %v849_v34, %v848_v47  ;;  %v950_v25 = vrot.slane %v949_v51, 4 }
 0x138   : > { %v851_v15 = vrot.slane %v850_v36, 2  ;;  %v951_v21 = vadd.f32 %v950_v25, %v949_v51 }
 0x13a   : > { %v852_v37 = vadd.f32 %v851_v15, %v850_v36  ;;  %v952_v38 = vrot.slane %v951_v21, 2 }
 0x13c   : > { %v853_v39 = vrot.slane %v852_v37, 1  ;;  %v953_v41 = vadd.f32 %v952_v38, %v951_v21 }
 0x13e   : > { %v954_v44 = vrot.slane %v953_v41, 1  ;;  %v854_v62 = vadd.f32 %v853_v39, %v852_v37 }
 0x140   : > { %v955_v45 = vadd.f32 %v954_v44, %v953_v41 }
 0x142   : > { %v957_v46 = vsel %vm956_vm3, %v854_v62, %v955_v45 }
 0x143   : > { %959 = vst.msk [vmem:[%s277_s24] sm:$0x3] %vm958_vm4, %v957_v46 }
 0x144 PF: > { %s15_s19 = sadd.s32 1, %s1380_s19   ;;  %s1779_s15 = smov %s1372_s17 }
 0x145   : > { %p12_p8 = scmp.ge.s32.totalorder %s15_s19, 10   ;;  %s1780_s16 = smov %s1376_s18 }
 0x146   : > { %s1781_s17 = smov %s1784_s20  ;;  %s1782_s18 = smov %s1788_s21 }
 0x147   :  { %14 = sbr.rel (!%p12_p8) target bundleno = 3 (0x3), region = 77 }

// kernel: mul.53
= control target key start
LH: loop header
LB: loop body
LE: loop exit
PB: predicated region body
PF: predicated region fallthrough
CT: control target
= control target key end

     0   :  { %s34_s0 = inlined_call_operand.vmem [shape: f32[4], index: 0, kind: input, shape index: {}]   ;;  %s35_s1 = inlined_call_operand.vmem [shape: f32[4], index: 1, kind: input, shape index: {}]   ;;  %s36_s2 = inlined_call_operand.vmem [shape: f32[4], index: 2, kind: output, shape index: {}]  }
   0x1   :  { %v3_v0 = vld [vmem:[%s34_s0] sm:$0x1] }
   0x2   :  { %v4_v1 = vld [vmem:[%s35_s1] sm:$0x1] }
   0x3   :  { %v7_v2 = vmul.f32 %v4_v1, %v3_v0 }
   0x5   :  { %9 = vst [vmem:[%s36_s2] sm:$0x1] %v7_v2 }

// kernel: tile.73
= control target key start
LH: loop header
LB: loop body
LE: loop exit
PB: predicated region body
PF: predicated region fallthrough
CT: control target
= control target key end

     0   :  { %s40_s0 = inlined_call_operand.vmem [shape: f32[4], index: 0, kind: input, shape index: {}]   ;;  %s41_s1 = inlined_call_operand.vmem [shape: f32[32,4], index: 1, kind: output, shape index: {}]  }
   0x1   :  { %v4_v0 = vld [vmem:[%s40_s0] ss:$0 sm:$0xff] }
   0x2   :  { %5 = vst [vmem:[%s41_s1] sm:$0xff] %v4_v0  ;;  %12 = vst [vmem:[%s41_s1 + $0x8] sm:$0xff] %v4_v0 }
   0x3   :  { %13 = vst [vmem:[%s41_s1 + $0x10] sm:$0xff] %v4_v0  ;;  %14 = vst [vmem:[%s41_s1 + $0x18] sm:$0xff] %v4_v0 }

// kernel: tile.74
= control target key start
LH: loop header
LB: loop body
LE: loop exit
PB: predicated region body
PF: predicated region fallthrough
CT: control target
= control target key end

     0   :  { %s259_s10 = smov 124   ;;  %s260_s11 = smov 116   ;;  %vm3_vm0 = vcmask 31744   ;;  %vm9_vm1 = vcmask 1048544   ;;  %vm15_vm2 = vcmask 1015744   ;;  %vm21_vm3 = vcmask 982944   ;;  %s399_s0 = inlined_call_operand.vmem [shape: f32[32,4], index: 0, kind: input, shape index: {}]   ;;  %s400_s1 = inlined_call_operand.vmem [shape: f32[1,128], index: 1, kind: output, shape index: {}]  }
   0x1   :  { %v197_v0 = vld [vmem:[%s399_s0 + $0x1f] sm:$0x1]   ;;  %v199_v1 = vld [vmem:[%s399_s0 + $0x1d] sm:$0x1]   ;;  %v198_v2 = vld [vmem:[%s399_s0 + $0x1e] sm:$0x1]  }
   0x2   :  { %7 = vrot.lane.b32.xlu0 %v197_v0, %s259_s10  ;;  %19 = vrot.lane.b32.xlu1 %v199_v1, %s260_s11  ;;  %v200_v3 = vld [vmem:[%s399_s0 + $0x1c] sm:$0x1]   ;;  %s261_s16 = smov 120   ;;  %s262_s17 = smov 112   ;;  %v201_v4 = vld [vmem:[%s399_s0 + $0x1b] sm:$0x1]  }
   0x3   :  { %v202_v5 = vld [vmem:[%s399_s0 + $0x1a] sm:$0x1]   ;;  %s263_s22 = smov 108   ;;  %s264_s23 = smov 104   ;;  %v203_v6 = vld [vmem:[%s399_s0 + $0x19] sm:$0x1]  }
   0x4   :  { %v204_v7 = vld [vmem:[%s399_s0 + $0x18] sm:$0x1]   ;;  %s265_s28 = smov 100   ;;  %s266_s29 = smov 96   ;;  %v205_v8 = vld [vmem:[%s399_s0 + $0x17] sm:$0x1]  }
   0x5   :  { %v206_v9 = vld [vmem:[%s399_s0 + $0x16] sm:$0x1]   ;;  %v2_v10 = vld [vmem:[%s399_s0] sm:$0x1]   ;;  %s267_s7 = smov 92   ;;  %s268_s8 = smov 88  }
   0x6   :  { %13 = vrot.lane.b32.xlu0 %v198_v2, %s261_s16  ;;  %25 = vrot.lane.b32.xlu1 %v200_v3, %s262_s17  ;;  %4 = vst.msk [vmem:[#allocation0] sm:$0x1] %vm3_vm0, %v2_v10   ;;  %v207_v11 = vld [vmem:[%s399_s0 + $0x15] sm:$0x1]   ;;  %v208_v12 = vld [vmem:[%s399_s0 + $0x14] sm:$0x1]  }
   0x7   :  { %s269_s13 = smov 84   ;;  %s270_s14 = smov 80   ;;  %v209_v13 = vld [vmem:[%s399_s0 + $0x13] sm:$0x1]   ;;  %v210_v14 = vld [vmem:[%s399_s0 + $0x12] sm:$0x1]  }
   0x8   :  { %s271_s19 = smov 76   ;;  %s272_s20 = smov 72   ;;  %v211_v15 = vld [vmem:[%s399_s0 + $0x11] sm:$0x1]   ;;  %v212_v16 = vld [vmem:[%s399_s0 + $0x10] sm:$0x1]  }
   0x9   :  { %s273_s25 = smov 68   ;;  %s274_s26 = smov 64   ;;  %v213_v17 = vld [vmem:[%s399_s0 + $0xf] sm:$0x1]   ;;  %v214_v18 = vld [vmem:[%s399_s0 + $0xe] sm:$0x1]  }
   0xa   :  { %31 = vrot.lane.b32.xlu0 %v201_v4, %s263_s22  ;;  %37 = vrot.lane.b32.xlu1 %v202_v5, %s264_s23  ;;  %s275_s2 = smov 60   ;;  %s276_s3 = smov 56   ;;  %v215_v19 = vld [vmem:[%s399_s0 + $0xd] sm:$0x1]   ;;  %v216_v20 = vld [vmem:[%s399_s0 + $0xc] sm:$0x1]  }
   0xb   :  { %s278_s9 = smov 48   ;;  %v217_v21 = vld [vmem:[%s399_s0 + $0xb] sm:$0x1]   ;;  %v218_v22 = vld [vmem:[%s399_s0 + $0xa] sm:$0x1]   ;;  %s280_s15 = smov 40  }
   0xc   :  { %v219_v23 = vld [vmem:[%s399_s0 + $0x9] sm:$0x1]   ;;  %v220_v24 = vld [vmem:[%s399_s0 + $0x8] sm:$0x1]   ;;  %s282_s21 = smov 32   ;;  %s284_s27 = smov 24  }
   0xd   :  { %v221_v25 = vld [vmem:[%s399_s0 + $0x7] sm:$0x1]   ;;  %v222_v26 = vld [vmem:[%s399_s0 + $0x6] sm:$0x1]   ;;  %v223_v27 = vld [vmem:[%s399_s0 + $0x5] sm:$0x1]  }
   0xe   :  { %43 = vrot.lane.b32.xlu0 %v203_v6, %s265_s28  ;;  %49 = vrot.lane.b32.xlu1 %v204_v7, %s266_s29  ;;  %v224_v28 = vld [vmem:[%s399_s0 + $0x4] sm:$0x1]   ;;  %s286_s4 = smov 16   ;;  %v225_v29 = vld [vmem:[%s399_s0 + $0x3] sm:$0x1]   ;;  %s288_s10 = smov 8  }
   0xf   :  { %v226_v30 = vld [vmem:[%s399_s0 + $0x2] sm:$0x1]   ;;  %v227_v31 = vld [vmem:[%s399_s0 + $0x1] sm:$0x1]   ;;  %s289_s0 = smov 4   ;;  %vm27_vm4 = vcmask 950144  }
  0x10   :  { %vm33_vm5 = vcmask 917344   ;;  %vm39_vm6 = vcmask 884544   ;;  %vm45_vm7 = vcmask 851744   ;;  %vm51_vm8 = vcmask 818944  }
  0x11   :  { %vm57_vm9 = vcmask 786144   ;;  %vm63_vm10 = vcmask 753344   ;;  %vm69_vm11 = vcmask 720544   ;;  %vm75_vm12 = vcmask 687744  }
  0x12   :  { %55 = vrot.lane.b32.xlu0 %v205_v8, %s267_s7  ;;  %61 = vrot.lane.b32.xlu1 %v206_v9, %s268_s8  ;;  %s277_s8 = smov 52   ;;  %vm81_vm13 = vcmask 654944   ;;  %vm87_vm14 = vcmask 622144   ;;  %vm93_vm15 = vcmask 589344   ;;  %vm99_vm0 = vcmask 556544  }
  0x16   :  { %67 = vrot.lane.b32.xlu0 %v207_v11, %s269_s13  ;;  %73 = vrot.lane.b32.xlu1 %v208_v12, %s270_s14  ;;  %s279_s14 = smov 44  }
  0x1a   :  { %79 = vrot.lane.b32.xlu0 %v209_v13, %s271_s19  ;;  %85 = vrot.lane.b32.xlu1 %v210_v14, %s272_s20  ;;  %s281_s20 = smov 36  }
  0x1e   :  { %91 = vrot.lane.b32.xlu0 %v211_v15, %s273_s25  ;;  %97 = vrot.lane.b32.xlu1 %v212_v16, %s274_s26  ;;  %s283_s26 = smov 28  }
  0x22   :  { %103 = vrot.lane.b32.xlu0 %v213_v17, %s275_s2  ;;  %109 = vrot.lane.b32.xlu1 %v214_v18, %s276_s3  ;;  %s285_s3 = smov 20  }
  0x26   :  { %115 = vrot.lane.b32.xlu0 %v215_v19, %s277_s8  ;;  %121 = vrot.lane.b32.xlu1 %v216_v20, %s278_s9  ;;  %s287_s9 = smov 12  }
  0x2a   :  { %127 = vrot.lane.b32.xlu0 %v217_v21, %s279_s14  ;;  %133 = vrot.lane.b32.xlu1 %v218_v22, %s280_s15 }
  0x2e   :  { %139 = vrot.lane.b32.xlu0 %v219_v23, %s281_s20  ;;  %145 = vrot.lane.b32.xlu1 %v220_v24, %s282_s21 }
  0x32   :  { %151 = vrot.lane.b32.xlu0 %v221_v25, %s283_s26  ;;  %157 = vrot.lane.b32.xlu1 %v222_v26, %s284_s27 }
  0x36   :  { %163 = vrot.lane.b32.xlu0 %v223_v27, %s285_s3  ;;  %169 = vrot.lane.b32.xlu1 %v224_v28, %s286_s4 }
  0x3a   :  { %175 = vrot.lane.b32.xlu0 %v225_v29, %s287_s9  ;;  %181 = vrot.lane.b32.xlu1 %v226_v30, %s288_s10 }
  0x3e   :  { %187 = vrot.lane.b32.xlu0 %v227_v31, %s289_s0 }
  0x74   :  { %v8_v32 = vpop.permute.xlu0 %7   ;;  %v20_v33 = vpop.permute.xlu1 %19  }
  0x75   :  { %10 = vst.msk [vmem:[#allocation0] sm:$0x1] %vm9_vm1, %v8_v32   ;;  %vm105_vm1 = vcmask 523744  }
  0x78   :  { %v14_v34 = vpop.permute.xlu0 %13   ;;  %v26_v35 = vpop.permute.xlu1 %25  }
  0x79   :  { %16 = vst.msk [vmem:[#allocation0] sm:$0x1] %vm15_vm2, %v14_v34   ;;  %vm111_vm2 = vcmask 490944  }
  0x7a   :  { %22 = vst.msk [vmem:[#allocation0] sm:$0x1] %vm21_vm3, %v20_v33   ;;  %vm117_vm3 = vcmask 458144  }
  0x7b   :  { %28 = vst.msk [vmem:[#allocation0] sm:$0x1] %vm27_vm4, %v26_v35   ;;  %vm123_vm4 = vcmask 425344  }
  0x7c   :  { %v32_v36 = vpop.permute.xlu0 %31   ;;  %v38_v37 = vpop.permute.xlu1 %37  }
  0x7d   :  { %34 = vst.msk [vmem:[#allocation0] sm:$0x1] %vm33_vm5, %v32_v36   ;;  %vm129_vm5 = vcmask 392544  }
  0x7e   :  { %40 = vst.msk [vmem:[#allocation0] sm:$0x1] %vm39_vm6, %v38_v37   ;;  %vm135_vm6 = vcmask 359744  }
  0x80   :  { %v44_v38 = vpop.permute.xlu0 %43   ;;  %v50_v39 = vpop.permute.xlu1 %49  }
  0x81   :  { %46 = vst.msk [vmem:[#allocation0] sm:$0x1] %vm45_vm7, %v44_v38   ;;  %vm141_vm7 = vcmask 326944  }
  0x82   :  { %52 = vst.msk [vmem:[#allocation0] sm:$0x1] %vm51_vm8, %v50_v39   ;;  %vm147_vm8 = vcmask 294144  }
  0x84   :  { %v56_v40 = vpop.permute.xlu0 %55   ;;  %v62_v41 = vpop.permute.xlu1 %61  }
  0x85   :  { %58 = vst.msk [vmem:[#allocation0] sm:$0x1] %vm57_vm9, %v56_v40   ;;  %vm153_vm9 = vcmask 261344  }
  0x86   :  { %64 = vst.msk [vmem:[#allocation0] sm:$0x1] %vm63_vm10, %v62_v41   ;;  %vm159_vm10 = vcmask 228544  }
  0x88   :  { %v68_v42 = vpop.permute.xlu0 %67   ;;  %v74_v43 = vpop.permute.xlu1 %73  }
  0x89   :  { %70 = vst.msk [vmem:[#allocation0] sm:$0x1] %vm69_vm11, %v68_v42   ;;  %vm165_vm11 = vcmask 195744  }
  0x8a   :  { %76 = vst.msk [vmem:[#allocation0] sm:$0x1] %vm75_vm12, %v74_v43   ;;  %vm171_vm12 = vcmask 162944  }
  0x8c   :  { %v80_v44 = vpop.permute.xlu0 %79   ;;  %v86_v45 = vpop.permute.xlu1 %85  }
  0x8d   :  { %82 = vst.msk [vmem:[#allocation0] sm:$0x1] %vm81_vm13, %v80_v44   ;;  %vm177_vm13 = vcmask 130144  }
  0x8e   :  { %88 = vst.msk [vmem:[#allocation0] sm:$0x1] %vm87_vm14, %v86_v45   ;;  %vm183_vm14 = vcmask 97344  }
  0x90   :  { %v92_v46 = vpop.permute.xlu0 %91   ;;  %v98_v47 = vpop.permute.xlu1 %97  }
  0x91   :  { %94 = vst.msk [vmem:[#allocation0] sm:$0x1] %vm93_vm15, %v92_v46   ;;  %vm189_vm15 = vcmask 64544  }
  0x92   :  { %100 = vst.msk [vmem:[#allocation0] sm:$0x1] %vm99_vm0, %v98_v47  }
  0x94   :  { %v104_v48 = vpop.permute.xlu0 %103   ;;  %v110_v49 = vpop.permute.xlu1 %109  }
  0x95   :  { %106 = vst.msk [vmem:[#allocation0] sm:$0x1] %vm105_vm1, %v104_v48  }
  0x96   :  { %112 = vst.msk [vmem:[#allocation0] sm:$0x1] %vm111_vm2, %v110_v49  }
  0x98   :  { %v116_v50 = vpop.permute.xlu0 %115   ;;  %v122_v51 = vpop.permute.xlu1 %121  }
  0x99   :  { %118 = vst.msk [vmem:[#allocation0] sm:$0x1] %vm117_vm3, %v116_v50  }
  0x9a   :  { %124 = vst.msk [vmem:[#allocation0] sm:$0x1] %vm123_vm4, %v122_v51  }
  0x9c   :  { %v128_v52 = vpop.permute.xlu0 %127   ;;  %v134_v53 = vpop.permute.xlu1 %133  }
  0x9d   :  { %130 = vst.msk [vmem:[#allocation0] sm:$0x1] %vm129_vm5, %v128_v52  }
  0x9e   :  { %136 = vst.msk [vmem:[#allocation0] sm:$0x1] %vm135_vm6, %v134_v53  }
  0xa0   :  { %v140_v54 = vpop.permute.xlu0 %139   ;;  %v146_v55 = vpop.permute.xlu1 %145  }
  0xa1   :  { %142 = vst.msk [vmem:[#allocation0] sm:$0x1] %vm141_vm7, %v140_v54  }
  0xa2   :  { %148 = vst.msk [vmem:[#allocation0] sm:$0x1] %vm147_vm8, %v146_v55  }
  0xa4   :  { %v152_v56 = vpop.permute.xlu0 %151   ;;  %v158_v57 = vpop.permute.xlu1 %157  }
  0xa5   :  { %154 = vst.msk [vmem:[#allocation0] sm:$0x1] %vm153_vm9, %v152_v56  }
  0xa6   :  { %160 = vst.msk [vmem:[#allocation0] sm:$0x1] %vm159_vm10, %v158_v57  }
  0xa8   :  { %v164_v58 = vpop.permute.xlu0 %163   ;;  %v170_v59 = vpop.permute.xlu1 %169  }
  0xa9   :  { %166 = vst.msk [vmem:[#allocation0] sm:$0x1] %vm165_vm11, %v164_v58  }
  0xaa   :  { %172 = vst.msk [vmem:[#allocation0] sm:$0x1] %vm171_vm12, %v170_v59  }
  0xac   :  { %v176_v60 = vpop.permute.xlu0 %175   ;;  %v182_v61 = vpop.permute.xlu1 %181  }
  0xad   :  { %178 = vst.msk [vmem:[#allocation0] sm:$0x1] %vm177_vm13, %v176_v60  }
  0xae   :  { %184 = vst.msk [vmem:[#allocation0] sm:$0x1] %vm183_vm14, %v182_v61  }
  0xb0   :  { %v188_v62 = vpop.permute.xlu0 %187  }
  0xb1   :  { %190 = vst.msk [vmem:[#allocation0] sm:$0x1] %vm189_vm15, %v188_v62  }
  0xb8   :  { %v194_v63 = vld [vmem:[#allocation0] sm:$0x1] }
  0xb9   :  { %196 = vst [vmem:[%s400_s1] sm:$0x1] %v194_v63 }

// kernel: frame_predictor_forward.23
= control target key start
LH: loop header
LB: loop body
LE: loop exit
PB: predicated region body
PF: predicated region fallthrough
CT: control target
= control target key end

     0   :  { %s597_s15 = smov 0   ;;  %s672_s0 = inlined_call_operand.vmem [shape: bf16[64,128], index: 0, kind: input, shape index: {}]   ;;  %s673_s1 = inlined_call_operand.vmem [shape: f32[1,128], index: 1, kind: input, shape index: {}]   ;;  %s674_s2 = inlined_call_operand.vmem [shape: f32[1,128], index: 2, kind: input, shape index: {}]   ;;  %s675_s3 = inlined_call_operand.vmem [shape: f32[128,128], index: 3, kind: input, shape index: {}]   ;;  %s676_s4 = inlined_call_operand.vmem [shape: f32[64,128], index: 4, kind: output, shape index: {}]  }
   0x1 LB: > { %s412_s16 = sadd.s32 4294967295, %s570_s15   ;;  %p416_p0 = scmp.ge.s32.totalorder %s570_s15, 1  ;;  %s570_s15 = sphi %s597_s15, %s14_s15  }
   0x2   : > { %p163_p1 = scmp.lt.s32.totalorder %s570_s15, 3 }
   0x4   : > { %p164_p2 = pnand %p416_p0, %p163_p1 }
   0x5   : > { %v239_v0 = vld [vmem:[%s675_s3] sm:$0xff] (!%p164_p2)  ;;  %v240_v1 = vld [vmem:[%s675_s3 + $0x8] sm:$0xff] (!%p164_p2)  ;;  %v241_v2 = vld [vmem:[%s675_s3 + $0x10] sm:$0xff] (!%p164_p2)  ;;  %s417_s23 = sshll.u32 (!%p164_p2), %s412_s16, 2 }
   0x6   : > { %167 = sbr.rel (%p164_p2) target bundleno = 271 (0x10f), region = 36  ;;  %v492_v3 = vpack.c.bf16 (!%p164_p2), %v240_v1, %v239_v0  ;;  %v242_v4 = vld [vmem:[%s675_s3 + $0x18] sm:$0xff] (!%p164_p2)  ;;  %p190_p3 = scmp.lt.s32.totalorder (!%p164_p2), %s417_s23, 7  ;;  %v243_v6 = vld [vmem:[%s675_s3 + $0x20] sm:$0xff] (!%p164_p2)  ;;  %v244_v7 = vld [vmem:[%s675_s3 + $0x28] sm:$0xff] (!%p164_p2) }
   0x7   : > { %v496_v5 = vpack.c.bf16 (!%p164_p2), %v242_v4, %v241_v2  ;;  %v500_v8 = vpack.c.bf16 (!%p164_p2), %v244_v7, %v243_v6  ;;  %v245_v9 = vld [vmem:[%s675_s3 + $0x30] sm:$0xff] (!%p164_p2)  ;;  %v246_v10 = vld [vmem:[%s675_s3 + $0x38] sm:$0xff] (!%p164_p2)  ;;  %v421_v12 = vld [vmem:[%s673_s1] ss:$0 sm:$0xff] (!%p164_p2) }
   0x8   : > { %493 = vmatprep.subr.bf16.mxu0 (!%p164_p2), %v492_v3  ;;  %524 = vmatprep.subr.bf16.mxu1 (!%p164_p2), %v492_v3  ;;  %v504_v18 = vpack.c.bf16 (!%p164_p2), %v246_v10, %v245_v9  ;;  %v422_v19 = vld [vmem:[%s674_s2] ss:$0 sm:$0xff] (!%p164_p2)  ;;  %v248_v21 = vld [vmem:[%s675_s3 + $0x48] sm:$0xff] (!%p164_p2)  ;;  %v249_v30 = vld [vmem:[%s675_s3 + $0x50] sm:$0xff] (!%p164_p2) }
   0x9   : > { %495 = vmatpush3.bf16.msra.mxu0 (!%p164_p2), %v492_v3  ;;  %532 = vmatpush3.bf16.msra.mxu1 (!%p164_p2), %v492_v3  ;;  %v247_v20 = vld [vmem:[%s675_s3 + $0x40] sm:$0xff] (!%p164_p2)  ;;  %v250_v31 = vld [vmem:[%s675_s3 + $0x58] sm:$0xff] (!%p164_p2)  ;;  %v252_v35 = vld [vmem:[%s675_s3 + $0x68] sm:$0xff] (!%p164_p2) }
   0xa   : > { %497 = vmatprep.subr.bf16.mxu0 (!%p164_p2), %v496_v5  ;;  %525 = vmatprep.subr.bf16.mxu1 (!%p164_p2), %v496_v5  ;;  %v508_v28 = vpack.c.bf16 (!%p164_p2), %v248_v21, %v247_v20  ;;  %v512_v33 = vpack.c.bf16 (!%p164_p2), %v250_v31, %v249_v30  ;;  %v251_v34 = vld [vmem:[%s675_s3 + $0x60] sm:$0xff] (!%p164_p2)  ;;  %v253_v37 = vld [vmem:[%s675_s3 + $0x70] sm:$0xff] (!%p164_p2)  ;;  %v254_v38 = vld [vmem:[%s675_s3 + $0x78] sm:$0xff] (!%p164_p2) }
   0xb   : > { %v516_v36 = vpack.c.bf16 (!%p164_p2), %v252_v35, %v251_v34  ;;  %v520_v40 = vpack.c.bf16 (!%p164_p2), %v254_v38, %v253_v37 }
   0xd   : > { %s678_s23 = smov (!%p190_p3, %s417_s23), 7  ;;  %499 = vmatpush3.bf16.msra.mxu0 %v496_v5  ;;  %533 = vmatpush3.bf16.msra.mxu1 %v496_v5 }
   0xe   : > { %s418_s30 = sshll.u32 %s678_s23, 2  ;;  %501 = vmatprep.subr.bf16.mxu0 %v500_v8  ;;  %526 = vmatprep.subr.bf16.mxu1 %v500_v8  ;;  %s420_s8 = sshll.u32 %s678_s23, 3 }
   0xf   : > { %s193_s11 = scalar_lea.vmem %s672_s0, %s418_s30 }
  0x10   : > { %v426_v11 = vld [vmem:[%s193_s11] sm:$0xff]   ;;  %v433_v13 = vld [vmem:[%s193_s11 + $0x8] sm:$0xff]   ;;  %s199_s11 = scalar_lea.vmem %s676_s4, %s420_s8 }
  0x11   : > { %v427_v14 = vunpack.c.l.bf16 %v426_v11  ;;  %v428_v15 = vunpack.c.h.bf16 %v426_v11  ;;  %v431_v16 = vunpack.c.l.bf16 %v433_v13  ;;  %v432_v17 = vunpack.c.h.bf16 %v433_v13  ;;  %503 = vmatpush3.bf16.msra.mxu0 %v500_v8  ;;  %534 = vmatpush3.bf16.msra.mxu1 %v500_v8 }
  0x12   : > { %505 = vmatprep.subr.bf16.mxu0 %v504_v18  ;;  %527 = vmatprep.subr.bf16.mxu1 %v504_v18 }
  0x13   : > { %v216_v22 = vmul.f32 %v427_v14, %v421_v12  ;;  %v217_v23 = vmul.f32 %v428_v15, %v421_v12  ;;  %v218_v24 = vmul.f32 %v431_v16, %v421_v12  ;;  %v219_v25 = vmul.f32 %v432_v17, %v421_v12 }
  0x15   : > { %v227_v26 = vadd.f32 %v422_v19, %v216_v22  ;;  %v229_v27 = vadd.f32 %v422_v19, %v218_v24  ;;  %v228_v29 = vadd.f32 %v422_v19, %v217_v23  ;;  %v230_v32 = vadd.f32 %v422_v19, %v219_v25  ;;  %507 = vmatpush3.bf16.msra.mxu0 %v504_v18 }
  0x16   : > { %535 = vmatpush3.bf16.msra.mxu1 %v504_v18  ;;  %509 = vmatprep.subr.bf16.mxu0 %v508_v28 }
  0x17   : > { %548 = vtanh.f32 %v227_v26  ;;  %528 = vmatprep.subr.bf16.mxu1 %v508_v28 }
  0x18   : > { %550 = vtanh.f32 %v229_v27 }
  0x19   : > { %552 = vtanh.f32 %v228_v29  ;;  %511 = vmatpush3.bf16.msra.mxu0 %v508_v28 }
  0x1a   : > { %554 = vtanh.f32 %v230_v32  ;;  %536 = vmatpush3.bf16.msra.mxu1 %v508_v28  ;;  %513 = vmatprep.subr.bf16.mxu0 %v512_v33 }
  0x1b   : > { %529 = vmatprep.subr.bf16.mxu1 %v512_v33 }
  0x1d   : > { %515 = vmatpush3.bf16.msra.mxu0 %v512_v33 }
  0x1e   : > { %537 = vmatpush3.bf16.msra.mxu1 %v512_v33  ;;  %517 = vmatprep.subr.bf16.mxu0 %v516_v36 }
  0x1f   : > { %530 = vmatprep.subr.bf16.mxu1 %v516_v36 }
  0x21   : > { %v549_v39 = vpop.eup %548  ;;  %519 = vmatpush3.bf16.msra.mxu0 %v516_v36 }
  0x22   : > { %v235_v41 = vmul.f32 %v549_v39, %v549_v39  ;;  %v551_v42 = vpop.eup %550  ;;  %538 = vmatpush3.bf16.msra.mxu1 %v516_v36  ;;  %521 = vmatprep.subr.bf16.mxu0 %v520_v40 }
  0x23   : > { %v553_v43 = vpop.eup %552  ;;  %v237_v44 = vmul.f32 %v551_v42, %v551_v42  ;;  %531 = vmatprep.subr.bf16.mxu1 %v520_v40 }
  0x24   : > { %486 = vmatprep.mubr.f32.mxu0 %v235_v41  ;;  %v555_v45 = vpop.eup %554  ;;  %v236_v46 = vmul.f32 %v553_v43, %v553_v43 }
  0x25   : > { %489 = vmatprep.mubr.f32.mxu1 %v237_v44  ;;  %v238_v47 = vmul.f32 %v555_v45, %v555_v45  ;;  %523 = vmatpush3.bf16.msra.mxu0 %v520_v40 }
  0x26   : > { %539 = vmatpush3.bf16.msra.mxu1 %v520_v40 }
  0x28   : > { %487 = vmatmul.mubr.f32.vlgmr.msra.gmra.mrb[0].mxu0 %v236_v46 }
  0x29   : > { %490 = vmatmul.mubr.f32.vlgmr.msra.gmra.mrb[0].mxu1 %v238_v47 }
  0xfb   : > { %v488_v48 = vpop.f32.mrb[0].mxu0 }
  0xfc   : > { %v491_v49 = vpop.f32.mrb[0].mxu1  ;;  %v341_v50 = vmax.f32 %v488_v48, 1e-24  ;;  %v321_v51 = vpop.f32.mrb[1].mxu0 }
  0xfd   : > { %v343_v52 = vmax.f32 %v491_v49, 1e-24  ;;  %v331_v53 = vpop.f32.mrb[1].mxu1  ;;  %v340_v54 = vmax.f32 %v321_v51, 1e-24 }
  0xfe   : > { %v342_v55 = vmax.f32 %v331_v53, 1e-24  ;;  %556 = vrsqrt.f32 %v341_v50 }
  0xff   : > { %558 = vrsqrt.f32 %v340_v54 }
 0x100   : > { %560 = vrsqrt.f32 %v343_v52 }
 0x101   : > { %562 = vrsqrt.f32 %v342_v55 }
 0x108   : > { %v557_v56 = vpop.eup %556 }
 0x109   : > { %v559_v57 = vpop.eup %558  ;;  %v349_v61 = vmul.f32 %v557_v56, %v553_v43 }
 0x10a   : > { %v561_v58 = vpop.eup %560  ;;  %v348_v59 = vmul.f32 %v559_v57, %v549_v39 }
 0x10b   : > { %v563_v60 = vpop.eup %562  ;;  %353 = vst [vmem:[%s199_s11 + $0x8] sm:$0xff] %v349_v61  ;;  %v351_v63 = vmul.f32 %v561_v58, %v555_v45 }
 0x10c   : > { %352 = vst [vmem:[%s199_s11] sm:$0xff] %v348_v59  ;;  %v350_v62 = vmul.f32 %v563_v60, %v551_v42 }
 0x10d   : > { %355 = vst [vmem:[%s199_s11 + $0x18] sm:$0xff] %v351_v63 }
 0x10e   : > { %354 = vst [vmem:[%s199_s11 + $0x10] sm:$0xff] %v350_v62 }
 0x10f PF: > { %s14_s15 = sadd.s32 1, %s570_s15  }
 0x110   : > { %p11_p4 = scmp.ge.s32.totalorder %s14_s15, 4  }
 0x112   :  { %13 = sbr.rel (!%p11_p4) target bundleno = 1 (0x1), region = 66 }

</bundles_post_ra>
